<compile_context>
chip_gen: v6e
topology: v6e:2x2x1
jax: 0.10.0
libtpu: 0.0.40
codegen_flags: <defaults>
</compile_context>

<pallas_src>
import functools
import math

import jax
import jax.numpy as jnp
from jax.experimental import pallas as pl
from jax.experimental.pallas import tpu as pltpu

NEG_SLOPE = 0.2   # GATConv negative_slope default AND block LeakyReLU(0.2)
LN_EPS = 1e-5
LANE = 128


def _round_up(x, m):
    return (x + m - 1) // m * m


def _decoder_block_kernel(adst_ref, asrcT_ref, adj_ref, h_ref, colmask_ref,
                          bias_ref, gamma_ref, beta_ref, o_ref,
                          m_sc, l_sc, acc_sc, *, heads, hc_real):
    """Grid = (row_block i  [parallel], source_block k [arbitrary])."""
    kk = pl.program_id(1)
    nk = pl.num_programs(1)
    tile_n = o_ref.shape[0]
    hc_pad = o_ref.shape[1]

    # ---- reset the online-softmax state at the start of each row block ----
    @pl.when(kk == 0)
    def _():
        m_sc[...] = jnp.full(m_sc.shape, -jnp.inf, m_sc.dtype)
        l_sc[...] = jnp.zeros(l_sc.shape, l_sc.dtype)
        acc_sc[...] = jnp.zeros(acc_sc.shape, acc_sc.dtype)

    adj = adj_ref[...].astype(jnp.float32)            # [T, Tk] 0/1 mask
    neg_add = (adj - 1.0) * jnp.float32(1e30)         # 0 where edge, -1e30 elsewhere
    a_dst = adst_ref[...]                             # [T, H]   f32
    a_src_t = asrcT_ref[...]                          # [H, Tk]  f32
    h_blk = h_ref[...]                                # [Tk, HCp] bf16

    for hd in range(heads):
        # logit[i, j] = LeakyReLU(a_dst[i] + a_src[j]) + additive mask
        logits = a_dst[:, hd:hd + 1] + a_src_t[hd:hd + 1, :]          # [T, Tk]
        logits = jnp.where(logits > 0, logits, NEG_SLOPE * logits)
        logits = logits + neg_add
        # online softmax update (masked entries underflow to exactly 0 in exp)
        m_prev = m_sc[hd]                                             # [T, 1]
        m_new = jnp.maximum(m_prev, jnp.max(logits, axis=1, keepdims=True))
        alpha = jnp.exp(m_prev - m_new)                               # [T, 1]
        p = jnp.exp(logits - m_new)                                   # [T, Tk]
        l_sc[hd] = alpha * l_sc[hd] + jnp.sum(p, axis=1, keepdims=True)
        acc_sc[hd] = alpha * acc_sc[hd] + jnp.dot(
            p.astype(jnp.bfloat16), h_blk, preferred_element_type=jnp.float32)
        m_sc[hd] = m_new

    # ---- finalize: per-head normalize + column mask, bias, LayerNorm, LeakyReLU ----
    @pl.when(kk == nk - 1)
    def _():
        out = jnp.zeros((tile_n, hc_pad), jnp.float32)
        for hd in range(heads):
            inv_l = pl.reciprocal(l_sc[hd], approx=True)              # [T, 1]
            # colmask[hd] is 1 only on head hd's real output lanes -> padded and
            # foreign-head lanes stay exactly 0 (LayerNorm mean trick relies on it)
            out = out + acc_sc[hd] * inv_l * colmask_ref[hd]
        out = out + bias_ref[...]                                     # padded bias lanes are 0

        col = jax.lax.broadcasted_iota(jnp.int32, (1, hc_pad), 1)
        lanemask = (col < hc_real).astype(jnp.float32)
        inv_hc = jnp.float32(1.0 / hc_real)
        mean = jnp.sum(out, axis=-1, keepdims=True) * inv_hc          # padded cols are 0
        centered = (out - mean) * lanemask
        var = jnp.sum(centered * centered, axis=-1, keepdims=True) * inv_hc
        y = centered * jax.lax.rsqrt(var + LN_EPS) * gamma_ref[...] + beta_ref[...]

        # LeakyReLU(0.2); padded lanes stay exactly 0 (gamma/beta padded with 0)
        # TODO(synk): nn.Dropout / GAT attention dropout are eval-mode identities here.
        o_ref[...] = jnp.where(y > 0, y, NEG_SLOPE * y)


def decoder_block_forward(x, x_skip, edge_index, params, *, heads,
                          tile_n=256, tile_k=512):
    # ---- concat + hoisted projections (plain XLA matmuls) ----
    x_cat = jnp.concatenate([x, x_skip], axis=-1).astype(jnp.float32)
    n = x_cat.shape[0]
    w = params["w"].astype(jnp.float32)
    att_src = params["att_src"].astype(jnp.float32)   # [H, C]
    att_dst = params["att_dst"].astype(jnp.float32)   # [H, C]
    c_head = att_src.shape[1]
    hc = heads * c_head

    h = x_cat @ w                                     # [N, HC]
    h3 = h.reshape(n, heads, c_head)
    a_src = jnp.einsum("nhc,hc->nh", h3, att_src)     # [N, H]
    a_dst = jnp.einsum("nhc,hc->nh", h3, att_dst)     # [N, H]

    # ---- padding / tiling (re-derive per VMEM budget; lane-align the output) ----
    hc_pad = _round_up(hc, LANE)
    n_pad_min = _round_up(n, LANE)
    tile_k = max(LANE, min(_round_up(tile_k, LANE), n_pad_min))
    tile_n = max(32, min(_round_up(tile_n, 32), n_pad_min))      # int8 adj sublane tiling
    n_pad = _round_up(n, math.lcm(tile_n, tile_k))
    grid = (n_pad // tile_n, n_pad // tile_k)

    a_dst_p = jnp.zeros((n_pad, heads), jnp.float32).at[:n].set(a_dst)
    a_srcT_p = jnp.zeros((heads, n_pad), jnp.float32).at[:, :n].set(a_src.T)
    h_pad = jnp.zeros((n_pad, hc_pad), jnp.bfloat16).at[:n, :hc].set(
        h.astype(jnp.bfloat16))

    # dense int8 adjacency: adj[i, j] = 1 iff edge j -> i; self loops on every row
    # (padded rows get a self loop so their softmax stays finite; they are sliced off)
    # TODO(synk): bit-pack adj into uint32 words (32 src cols/word) or switch to
    # CSR + scalar-prefetch gather to shrink the O(N^2) HBM stream at large N.
    src, dst = edge_index[0], edge_index[1]
    adj = jnp.zeros((n_pad, n_pad), jnp.int8)
    adj = adj.at[dst, src].set(1)
    adj = adj.at[jnp.arange(n_pad), jnp.arange(n_pad)].set(1)

    # per-head output-column masks (exactly 0 on padded / foreign-head lanes)
    col = jnp.arange(hc_pad)
    sel = ((col[None, :] // c_head) == jnp.arange(heads)[:, None]) & (col[None, :] < hc)
    colmask = sel.astype(jnp.float32).reshape(heads, 1, hc_pad)

    bias_p = jnp.zeros((1, hc_pad), jnp.float32).at[0, :hc].set(params["bias"])
    gamma_p = jnp.zeros((1, hc_pad), jnp.float32).at[0, :hc].set(params["ln_gamma"])
    beta_p = jnp.zeros((1, hc_pad), jnp.float32).at[0, :hc].set(params["ln_beta"])

    # derive the VMEM limit from the actual chip (64 MiB/TC on v7x, 128 MiB earlier)
    try:
        vmem_cap = int(pltpu.get_tpu_info().vmem_capacity_bytes)
    except Exception:
        vmem_cap = 64 * 1024 * 1024
    vmem_limit = min((vmem_cap * 3) // 4, 100 * 1024 * 1024)

    kernel = functools.partial(_decoder_block_kernel, heads=heads, hc_real=hc)
    out_pad = pl.pallas_call(
        kernel,
        out_shape=jax.ShapeDtypeStruct((n_pad, hc_pad), jnp.float32),
        grid_spec=pltpu.PrefetchScalarGridSpec(
            num_scalar_prefetch=0,
            grid=grid,
            in_specs=[
                pl.BlockSpec((tile_n, heads), lambda i, k: (i, 0)),      # a_dst rows
                pl.BlockSpec((heads, tile_k), lambda i, k: (0, k)),      # a_src^T (K stream)
                pl.BlockSpec((tile_n, tile_k), lambda i, k: (i, k)),     # int8 adj block
                pl.BlockSpec((tile_k, hc_pad), lambda i, k: (k, 0)),     # bf16 h (K stream)
                pl.BlockSpec((heads, 1, hc_pad), lambda i, k: (0, 0, 0)),  # head col masks
                pl.BlockSpec((1, hc_pad), lambda i, k: (0, 0)),          # bias
                pl.BlockSpec((1, hc_pad), lambda i, k: (0, 0)),          # ln gamma
                pl.BlockSpec((1, hc_pad), lambda i, k: (0, 0)),          # ln beta
            ],
            out_specs=pl.BlockSpec((tile_n, hc_pad), lambda i, k: (i, 0)),
            scratch_shapes=[
                pltpu.VMEM((heads, tile_n, 1), jnp.float32),       # running max
                pltpu.VMEM((heads, tile_n, 1), jnp.float32),       # running denom
                pltpu.VMEM((heads, tile_n, hc_pad), jnp.float32),  # per-head accumulator
            ],
        ),
        compiler_params=pltpu.CompilerParams(
            dimension_semantics=("parallel", "arbitrary"),   # rows shardable, K sequential
            vmem_limit_bytes=int(vmem_limit),
        ),
    )(a_dst_p, a_srcT_p, adj, h_pad, colmask, bias_p, gamma_p, beta_p)

    return out_pad[:n, :hc]


def _reference(x, x_skip, edge_index, params, *, heads):
    # pure-JAX f32 dense reference for the correctness check
    xc = jnp.concatenate([x, x_skip], -1)
    n = xc.shape[0]
    h = xc @ params["w"]
    hc = h.shape[1]
    c = hc // heads
    h3 = h.reshape(n, heads, c)
    a_src = jnp.einsum("nhc,hc->nh", h3, params["att_src"])
    a_dst = jnp.einsum("nhc,hc->nh", h3, params["att_dst"])
    adj = jnp.zeros((n, n)).at[edge_index[1], edge_index[0]].set(1.0)
    adj = adj.at[jnp.arange(n), jnp.arange(n)].set(1.0)
    logits = a_dst[:, None, :] + a_src[None, :, :]               # [i, j, h]
    logits = jnp.where(logits > 0, logits, NEG_SLOPE * logits)
    mask = adj[:, :, None] > 0.5
    logits = jnp.where(mask, logits, -1e30)
    p = jax.nn.softmax(logits, axis=1)
    p = jnp.where(mask, p, 0.0)
    p = p / p.sum(1, keepdims=True)
    out = jnp.einsum("ijh,jhc->ihc", p, h3).reshape(n, hc) + params["bias"]
    mu = out.mean(-1, keepdims=True)
    var = ((out - mu) ** 2).mean(-1, keepdims=True)
    out = (out - mu) / jnp.sqrt(var + LN_EPS)
    out = out * params["ln_gamma"] + params["ln_beta"]
    return jnp.where(out > 0, out, NEG_SLOPE * out)


def _glorot(key, shape, fan_in, fan_out):
    lim = jnp.sqrt(6.0 / (fan_in + fan_out))
    return jax.random.uniform(key, shape, jnp.float32, -lim, lim)


if __name__ == "__main__":
    in_channels, skip_channels, out_channels, heads = 16, 16, 32, 4
    n_nodes, n_edges = 200, 600
    cin_total = in_channels + skip_channels
    c_head = out_channels // heads

    key = jax.random.PRNGKey(0)
    kx, ks, ke1, ke2, kw, ka1, ka2, kb, kg, kbe = jax.random.split(key, 10)

    x = jax.random.normal(kx, (n_nodes, in_channels), jnp.float32)
    x_skip = jax.random.normal(ks, (n_nodes, skip_channels), jnp.float32)
    src = jax.random.randint(ke1, (n_edges,), 0, n_nodes, jnp.int32)
    dst = jax.random.randint(ke2, (n_edges,), 0, n_nodes, jnp.int32)
    edge_index = jnp.stack([src, dst], axis=0)                   # [2, E]

    params = {
        "w": _glorot(kw, (cin_total, heads * c_head), cin_total, heads * c_head),
        "att_src": _glorot(ka1, (heads, c_head), c_head, heads * c_head),
        "att_dst": _glorot(ka2, (heads, c_head), c_head, heads * c_head),
        "bias": 0.1 * jax.random.normal(kb, (heads * c_head,), jnp.float32),
        "ln_gamma": 1.0 + 0.1 * jax.random.normal(kg, (heads * c_head,), jnp.float32),
        "ln_beta": 0.1 * jax.random.normal(kbe, (heads * c_head,), jnp.float32),
    }

    # tile_n=64 / tile_k=128 with 256 padded nodes -> grid (4, 2): exercises both
    # the row-block axis and the online-softmax K axis.
    out = decoder_block_forward(x, x_skip, edge_index, params, heads=heads,
                                tile_n=64, tile_k=128)
    out = jax.block_until_ready(out)

    ref = _reference(x, x_skip, edge_index, params, heads=heads)
    assert out.shape == (n_nodes, out_channels)
    # bf16 MXU operands + approx reciprocal in the kernel vs f32 dense reference.
    # NOTE: duplicate edges collapse in the dense adjacency (differs from PyG on
    # multigraphs); the bundled reference uses the same dense convention.
    assert bool(jnp.allclose(out, ref, atol=5e-2, rtol=5e-2)), "mismatch vs JAX reference"
    print("KERNEL_OK")
</pallas_src>

<mosaic_0001>
module attributes {stable_mosaic.version = 11 : i64} {
  func.func @_decoder_block_kernel(%arg0: i32, %arg1: i32, %arg2: memref<64x4xf32, #tpu.memory_space<vmem>>, %arg3: memref<4x128xf32, #tpu.memory_space<vmem>>, %arg4: memref<64x128xi8, #tpu.memory_space<vmem>>, %arg5: memref<128x128xbf16, #tpu.memory_space<vmem>>, %arg6: memref<4x1x128xf32, #tpu.memory_space<vmem>>, %arg7: memref<1x128xf32, #tpu.memory_space<vmem>>, %arg8: memref<1x128xf32, #tpu.memory_space<vmem>>, %arg9: memref<1x128xf32, #tpu.memory_space<vmem>>, %arg10: memref<64x128xf32, #tpu.memory_space<vmem>>, %arg11: memref<4x64x1xf32, #tpu.memory_space<vmem>>, %arg12: memref<4x64x1xf32, #tpu.memory_space<vmem>>, %arg13: memref<4x64x128xf32, #tpu.memory_space<vmem>>) attributes {dimension_semantics = [#tpu.dimension_semantics<parallel>, #tpu.dimension_semantics<arbitrary>], iteration_bounds = array<i64: 4, 2>, scalar_prefetch = 0 : i64, scratch_operands = 3 : i64, tpu.core_type = #tpu.core_type<tc>, window_params = [{transform_indices = @transform_0, window_bounds = array<i64: 64, 4>}, {transform_indices = @transform_1, window_bounds = array<i64: 4, 128>}, {transform_indices = @transform_2, window_bounds = array<i64: 64, 128>}, {transform_indices = @transform_3, window_bounds = array<i64: 128, 128>}, {pipeline_mode = #tpu.pipeline_mode<synchronous>, transform_indices = @transform_4, window_bounds = array<i64: 4, 1, 128>}, {pipeline_mode = #tpu.pipeline_mode<synchronous>, transform_indices = @transform_5, window_bounds = array<i64: 1, 128>}, {pipeline_mode = #tpu.pipeline_mode<synchronous>, transform_indices = @transform_6, window_bounds = array<i64: 1, 128>}, {pipeline_mode = #tpu.pipeline_mode<synchronous>, transform_indices = @transform_7, window_bounds = array<i64: 1, 128>}, {transform_indices = @transform_8, window_bounds = array<i64: 64, 128>}]} {
    %c0_i32 = arith.constant 0 : i32
    %0 = arith.cmpi eq, %arg1, %c0_i32 : i32
    %1 = arith.extui %0 : i1 to i32
    %c0_i32_0 = arith.constant 0 : i32
    %2 = arith.cmpi ne, %1, %c0_i32_0 : i32
    scf.if %2 {
      %cst_99 = arith.constant 0xFF800000 : f32
      %187 = vector.broadcast %cst_99 : f32 to vector<4x64x1xf32>
      %c0_100 = arith.constant 0 : index
      %c0_101 = arith.constant 0 : index
      %c0_102 = arith.constant 0 : index
      %188 = vector.load %arg11[%c0_100, %c0_101, %c0_102] : memref<4x64x1xf32, #tpu.memory_space<vmem>>, vector<4x64x1xf32>
      tpu.vector_store %arg11[%c0_100, %c0_101, %c0_102], %187 {strides = array<i32>} : memref<4x64x1xf32, #tpu.memory_space<vmem>>, vector<4x64x1xf32>,
      %cst_103 = arith.constant 0.000000e+00 : f32
      %189 = vector.broadcast %cst_103 : f32 to vector<4x64x1xf32>
      %c0_104 = arith.constant 0 : index
      %c0_105 = arith.constant 0 : index
      %c0_106 = arith.constant 0 : index
      %190 = vector.load %arg12[%c0_104, %c0_105, %c0_106] : memref<4x64x1xf32, #tpu.memory_space<vmem>>, vector<4x64x1xf32>
      tpu.vector_store %arg12[%c0_104, %c0_105, %c0_106], %189 {strides = array<i32>} : memref<4x64x1xf32, #tpu.memory_space<vmem>>, vector<4x64x1xf32>,
      %cst_107 = arith.constant 0.000000e+00 : f32
      %191 = vector.broadcast %cst_107 : f32 to vector<4x64x128xf32>
      %c0_108 = arith.constant 0 : index
      %c0_109 = arith.constant 0 : index
      %c0_110 = arith.constant 0 : index
      %192 = vector.load %arg13[%c0_108, %c0_109, %c0_110] : memref<4x64x128xf32, #tpu.memory_space<vmem>>, vector<4x64x128xf32>
      tpu.vector_store %arg13[%c0_108, %c0_109, %c0_110], %191 {strides = array<i32>} : memref<4x64x128xf32, #tpu.memory_space<vmem>>, vector<4x64x128xf32>,
    } else {
    }
    %c0 = arith.constant 0 : index
    %c0_1 = arith.constant 0 : index
    %3 = vector.load %arg4[%c0, %c0_1] : memref<64x128xi8, #tpu.memory_space<vmem>>, vector<64x128xi8>
    %4 = arith.sitofp %3 : vector<64x128xi8> to vector<64x128xf32>
    %cst = arith.constant 1.000000e+00 : f32
    %5 = vector.broadcast %cst : f32 to vector<64x128xf32>
    %6 = arith.subf %4, %5 : vector<64x128xf32>
    %cst_2 = arith.constant 1.000000e+30 : f32
    %7 = vector.broadcast %cst_2 : f32 to vector<64x128xf32>
    %8 = arith.mulf %6, %7 : vector<64x128xf32>
    %c0_3 = arith.constant 0 : index
    %c0_4 = arith.constant 0 : index
    %9 = vector.load %arg2[%c0_3, %c0_4] : memref<64x4xf32, #tpu.memory_space<vmem>>, vector<64x4xf32>
    %c0_5 = arith.constant 0 : index
    %c0_6 = arith.constant 0 : index
    %10 = vector.load %arg3[%c0_5, %c0_6] : memref<4x128xf32, #tpu.memory_space<vmem>>, vector<4x128xf32>
    %c0_7 = arith.constant 0 : index
    %c0_8 = arith.constant 0 : index
    %11 = vector.load %arg5[%c0_7, %c0_8] : memref<128x128xbf16, #tpu.memory_space<vmem>>, vector<128x128xbf16>
    %12 = vector.extract_strided_slice %9 {offsets = [0, 0], sizes = [64, 1], strides = [1, 1]} : vector<64x4xf32> to vector<64x1xf32>
    %13 = vector.extract_strided_slice %10 {offsets = [0, 0], sizes = [1, 128], strides = [1, 1]} : vector<4x128xf32> to vector<1x128xf32>
    %14 = vector.broadcast %12 : vector<64x1xf32> to vector<64x128xf32>
    %15 = vector.broadcast %13 : vector<1x128xf32> to vector<64x128xf32>
    %16 = arith.addf %14, %15 : vector<64x128xf32>
    %cst_9 = arith.constant 0.000000e+00 : f32
    %17 = vector.broadcast %cst_9 : f32 to vector<64x128xf32>
    %18 = arith.cmpf ogt, %16, %17 : vector<64x128xf32>
    %cst_10 = arith.constant 2.000000e-01 : f32
    %19 = vector.broadcast %cst_10 : f32 to vector<64x128xf32>
    %20 = arith.mulf %19, %16 : vector<64x128xf32>
    %21 = arith.select %18, %16, %20 : vector<64x128xi1>, vector<64x128xf32>
    %22 = arith.addf %21, %8 : vector<64x128xf32>
    %c0_11 = arith.constant 0 : index
    %c0_12 = arith.constant 0 : index
    %c0_13 = arith.constant 0 : index
    %23 = vector.load %arg11[%c0_11, %c0_12, %c0_13] : memref<4x64x1xf32, #tpu.memory_space<vmem>>, vector<1x64x1xf32>
    %24 = vector.shape_cast %23 : vector<1x64x1xf32> to vector<64x1xf32>
    %cst_14 = arith.constant dense<0xFF800000> : vector<64xf32>
    %25 = vector.multi_reduction <maximumf>, %22, %cst_14 [1] : vector<64x128xf32> to vector<64xf32>
    %26 = vector.shape_cast %25 : vector<64xf32> to vector<64x1xf32>
    %27 = arith.maximumf %24, %26 : vector<64x1xf32>
    %28 = arith.subf %24, %27 : vector<64x1xf32>
    %29 = math.exp %28 : vector<64x1xf32>
    %30 = vector.broadcast %27 : vector<64x1xf32> to vector<64x128xf32>
    %31 = arith.subf %22, %30 : vector<64x128xf32>
    %32 = math.exp %31 : vector<64x128xf32>
    %c0_15 = arith.constant 0 : index
    %c0_16 = arith.constant 0 : index
    %c0_17 = arith.constant 0 : index
    %33 = vector.load %arg12[%c0_15, %c0_16, %c0_17] : memref<4x64x1xf32, #tpu.memory_space<vmem>>, vector<1x64x1xf32>
    %34 = vector.shape_cast %33 : vector<1x64x1xf32> to vector<64x1xf32>
    %35 = arith.mulf %29, %34 : vector<64x1xf32>
    %cst_18 = arith.constant dense<0.000000e+00> : vector<64xf32>
    %36 = vector.multi_reduction <add>, %32, %cst_18 [1] : vector<64x128xf32> to vector<64xf32>
    %37 = vector.shape_cast %36 : vector<64xf32> to vector<64x1xf32>
    %38 = arith.addf %35, %37 : vector<64x1xf32>
    %c0_19 = arith.constant 0 : index
    %c0_20 = arith.constant 0 : index
    %c0_21 = arith.constant 0 : index
    %39 = vector.load %arg12[%c0_19, %c0_20, %c0_21] : memref<4x64x1xf32, #tpu.memory_space<vmem>>, vector<1x64x1xf32>
    %40 = vector.shape_cast %39 : vector<1x64x1xf32> to vector<64x1xf32>
    %41 = vector.shape_cast %38 : vector<64x1xf32> to vector<1x64x1xf32>
    tpu.vector_store %arg12[%c0_19, %c0_20, %c0_21], %41 {strides = array<i32>} : memref<4x64x1xf32, #tpu.memory_space<vmem>>, vector<1x64x1xf32>,
    %c0_22 = arith.constant 0 : index
    %c0_23 = arith.constant 0 : index
    %c0_24 = arith.constant 0 : index
    %42 = vector.load %arg13[%c0_22, %c0_23, %c0_24] : memref<4x64x128xf32, #tpu.memory_space<vmem>>, vector<1x64x128xf32>
    %43 = vector.shape_cast %42 : vector<1x64x128xf32> to vector<64x128xf32>
    %44 = vector.broadcast %29 : vector<64x1xf32> to vector<64x128xf32>
    %45 = arith.mulf %44, %43 : vector<64x128xf32>
    %46 = arith.truncf %32 : vector<64x128xf32> to vector<64x128xbf16>
    %cst_25 = arith.constant dense<0.000000e+00> : vector<64x128xf32>
    %47 = tpu.matmul %46, %11, %cst_25 {dimension_numbers = #tpu.dot_dimension_numbers<[1], [0], [0], [1], [0, 0, 1, 1], [], []>} : vector<64x128xbf16>, vector<128x128xbf16>, vector<64x128xf32> -> vector<64x128xf32>
    %48 = arith.addf %45, %47 : vector<64x128xf32>
    %c0_26 = arith.constant 0 : index
    %c0_27 = arith.constant 0 : index
    %c0_28 = arith.constant 0 : index
    %49 = vector.load %arg13[%c0_26, %c0_27, %c0_28] : memref<4x64x128xf32, #tpu.memory_space<vmem>>, vector<1x64x128xf32>
    %50 = vector.shape_cast %49 : vector<1x64x128xf32> to vector<64x128xf32>
    %51 = vector.shape_cast %48 : vector<64x128xf32> to vector<1x64x128xf32>
    tpu.vector_store %arg13[%c0_26, %c0_27, %c0_28], %51 {strides = array<i32>} : memref<4x64x128xf32, #tpu.memory_space<vmem>>, vector<1x64x128xf32>,
    %c0_29 = arith.constant 0 : index
    %c0_30 = arith.constant 0 : index
    %c0_31 = arith.constant 0 : index
    %52 = vector.load %arg11[%c0_29, %c0_30, %c0_31] : memref<4x64x1xf32, #tpu.memory_space<vmem>>, vector<1x64x1xf32>
    %53 = vector.shape_cast %52 : vector<1x64x1xf32> to vector<64x1xf32>
    %54 = vector.shape_cast %27 : vector<64x1xf32> to vector<1x64x1xf32>
    tpu.vector_store %arg11[%c0_29, %c0_30, %c0_31], %54 {strides = array<i32>} : memref<4x64x1xf32, #tpu.memory_space<vmem>>, vector<1x64x1xf32>,
    %55 = vector.extract_strided_slice %9 {offsets = [0, 1], sizes = [64, 1], strides = [1, 1]} : vector<64x4xf32> to vector<64x1xf32>
    %56 = vector.extract_strided_slice %10 {offsets = [1, 0], sizes = [1, 128], strides = [1, 1]} : vector<4x128xf32> to vector<1x128xf32>
    %57 = vector.broadcast %55 : vector<64x1xf32> to vector<64x128xf32>
    %58 = vector.broadcast %56 : vector<1x128xf32> to vector<64x128xf32>
    %59 = arith.addf %57, %58 : vector<64x128xf32>
    %cst_32 = arith.constant 0.000000e+00 : f32
    %60 = vector.broadcast %cst_32 : f32 to vector<64x128xf32>
    %61 = arith.cmpf ogt, %59, %60 : vector<64x128xf32>
    %cst_33 = arith.constant 2.000000e-01 : f32
    %62 = vector.broadcast %cst_33 : f32 to vector<64x128xf32>
    %63 = arith.mulf %62, %59 : vector<64x128xf32>
    %64 = arith.select %61, %59, %63 : vector<64x128xi1>, vector<64x128xf32>
    %65 = arith.addf %64, %8 : vector<64x128xf32>
    %c1 = arith.constant 1 : index
    %c0_34 = arith.constant 0 : index
    %c0_35 = arith.constant 0 : index
    %66 = vector.load %arg11[%c1, %c0_34, %c0_35] : memref<4x64x1xf32, #tpu.memory_space<vmem>>, vector<1x64x1xf32>
    %67 = vector.shape_cast %66 : vector<1x64x1xf32> to vector<64x1xf32>
    %cst_36 = arith.constant dense<0xFF800000> : vector<64xf32>
    %68 = vector.multi_reduction <maximumf>, %65, %cst_36 [1] : vector<64x128xf32> to vector<64xf32>
    %69 = vector.shape_cast %68 : vector<64xf32> to vector<64x1xf32>
    %70 = arith.maximumf %67, %69 : vector<64x1xf32>
    %71 = arith.subf %67, %70 : vector<64x1xf32>
    %72 = math.exp %71 : vector<64x1xf32>
    %73 = vector.broadcast %70 : vector<64x1xf32> to vector<64x128xf32>
    %74 = arith.subf %65, %73 : vector<64x128xf32>
    %75 = math.exp %74 : vector<64x128xf32>
    %c1_37 = arith.constant 1 : index
    %c0_38 = arith.constant 0 : index
    %c0_39 = arith.constant 0 : index
    %76 = vector.load %arg12[%c1_37, %c0_38, %c0_39] : memref<4x64x1xf32, #tpu.memory_space<vmem>>, vector<1x64x1xf32>
    %77 = vector.shape_cast %76 : vector<1x64x1xf32> to vector<64x1xf32>
    %78 = arith.mulf %72, %77 : vector<64x1xf32>
    %cst_40 = arith.constant dense<0.000000e+00> : vector<64xf32>
    %79 = vector.multi_reduction <add>, %75, %cst_40 [1] : vector<64x128xf32> to vector<64xf32>
    %80 = vector.shape_cast %79 : vector<64xf32> to vector<64x1xf32>
    %81 = arith.addf %78, %80 : vector<64x1xf32>
    %c1_41 = arith.constant 1 : index
    %c0_42 = arith.constant 0 : index
    %c0_43 = arith.constant 0 : index
    %82 = vector.load %arg12[%c1_41, %c0_42, %c0_43] : memref<4x64x1xf32, #tpu.memory_space<vmem>>, vector<1x64x1xf32>
    %83 = vector.shape_cast %82 : vector<1x64x1xf32> to vector<64x1xf32>
    %84 = vector.shape_cast %81 : vector<64x1xf32> to vector<1x64x1xf32>
    tpu.vector_store %arg12[%c1_41, %c0_42, %c0_43], %84 {strides = array<i32>} : memref<4x64x1xf32, #tpu.memory_space<vmem>>, vector<1x64x1xf32>,
    %c1_44 = arith.constant 1 : index
    %c0_45 = arith.constant 0 : index
    %c0_46 = arith.constant 0 : index
    %85 = vector.load %arg13[%c1_44, %c0_45, %c0_46] : memref<4x64x128xf32, #tpu.memory_space<vmem>>, vector<1x64x128xf32>
    %86 = vector.shape_cast %85 : vector<1x64x128xf32> to vector<64x128xf32>
    %87 = vector.broadcast %72 : vector<64x1xf32> to vector<64x128xf32>
    %88 = arith.mulf %87, %86 : vector<64x128xf32>
    %89 = arith.truncf %75 : vector<64x128xf32> to vector<64x128xbf16>
    %cst_47 = arith.constant dense<0.000000e+00> : vector<64x128xf32>
    %90 = tpu.matmul %89, %11, %cst_47 {dimension_numbers = #tpu.dot_dimension_numbers<[1], [0], [0], [1], [0, 0, 1, 1], [], []>} : vector<64x128xbf16>, vector<128x128xbf16>, vector<64x128xf32> -> vector<64x128xf32>
    %91 = arith.addf %88, %90 : vector<64x128xf32>
    %c1_48 = arith.constant 1 : index
    %c0_49 = arith.constant 0 : index
    %c0_50 = arith.constant 0 : index
    %92 = vector.load %arg13[%c1_48, %c0_49, %c0_50] : memref<4x64x128xf32, #tpu.memory_space<vmem>>, vector<1x64x128xf32>
    %93 = vector.shape_cast %92 : vector<1x64x128xf32> to vector<64x128xf32>
    %94 = vector.shape_cast %91 : vector<64x128xf32> to vector<1x64x128xf32>
    tpu.vector_store %arg13[%c1_48, %c0_49, %c0_50], %94 {strides = array<i32>} : memref<4x64x128xf32, #tpu.memory_space<vmem>>, vector<1x64x128xf32>,
    %c1_51 = arith.constant 1 : index
    %c0_52 = arith.constant 0 : index
    %c0_53 = arith.constant 0 : index
    %95 = vector.load %arg11[%c1_51, %c0_52, %c0_53] : memref<4x64x1xf32, #tpu.memory_space<vmem>>, vector<1x64x1xf32>
    %96 = vector.shape_cast %95 : vector<1x64x1xf32> to vector<64x1xf32>
    %97 = vector.shape_cast %70 : vector<64x1xf32> to vector<1x64x1xf32>
    tpu.vector_store %arg11[%c1_51, %c0_52, %c0_53], %97 {strides = array<i32>} : memref<4x64x1xf32, #tpu.memory_space<vmem>>, vector<1x64x1xf32>,
    %98 = vector.extract_strided_slice %9 {offsets = [0, 2], sizes = [64, 1], strides = [1, 1]} : vector<64x4xf32> to vector<64x1xf32>
    %99 = vector.extract_strided_slice %10 {offsets = [2, 0], sizes = [1, 128], strides = [1, 1]} : vector<4x128xf32> to vector<1x128xf32>
    %100 = vector.broadcast %98 : vector<64x1xf32> to vector<64x128xf32>
    %101 = vector.broadcast %99 : vector<1x128xf32> to vector<64x128xf32>
    %102 = arith.addf %100, %101 : vector<64x128xf32>
    %cst_54 = arith.constant 0.000000e+00 : f32
    %103 = vector.broadcast %cst_54 : f32 to vector<64x128xf32>
    %104 = arith.cmpf ogt, %102, %103 : vector<64x128xf32>
    %cst_55 = arith.constant 2.000000e-01 : f32
    %105 = vector.broadcast %cst_55 : f32 to vector<64x128xf32>
    %106 = arith.mulf %105, %102 : vector<64x128xf32>
    %107 = arith.select %104, %102, %106 : vector<64x128xi1>, vector<64x128xf32>
    %108 = arith.addf %107, %8 : vector<64x128xf32>
    %c2 = arith.constant 2 : index
    %c0_56 = arith.constant 0 : index
    %c0_57 = arith.constant 0 : index
    %109 = vector.load %arg11[%c2, %c0_56, %c0_57] : memref<4x64x1xf32, #tpu.memory_space<vmem>>, vector<1x64x1xf32>
    %110 = vector.shape_cast %109 : vector<1x64x1xf32> to vector<64x1xf32>
    %cst_58 = arith.constant dense<0xFF800000> : vector<64xf32>
    %111 = vector.multi_reduction <maximumf>, %108, %cst_58 [1] : vector<64x128xf32> to vector<64xf32>
    %112 = vector.shape_cast %111 : vector<64xf32> to vector<64x1xf32>
    %113 = arith.maximumf %110, %112 : vector<64x1xf32>
    %114 = arith.subf %110, %113 : vector<64x1xf32>
    %115 = math.exp %114 : vector<64x1xf32>
    %116 = vector.broadcast %113 : vector<64x1xf32> to vector<64x128xf32>
    %117 = arith.subf %108, %116 : vector<64x128xf32>
    %118 = math.exp %117 : vector<64x128xf32>
    %c2_59 = arith.constant 2 : index
    %c0_60 = arith.constant 0 : index
    %c0_61 = arith.constant 0 : index
    %119 = vector.load %arg12[%c2_59, %c0_60, %c0_61] : memref<4x64x1xf32, #tpu.memory_space<vmem>>, vector<1x64x1xf32>
    %120 = vector.shape_cast %119 : vector<1x64x1xf32> to vector<64x1xf32>
    %121 = arith.mulf %115, %120 : vector<64x1xf32>
    %cst_62 = arith.constant dense<0.000000e+00> : vector<64xf32>
    %122 = vector.multi_reduction <add>, %118, %cst_62 [1] : vector<64x128xf32> to vector<64xf32>
    %123 = vector.shape_cast %122 : vector<64xf32> to vector<64x1xf32>
    %124 = arith.addf %121, %123 : vector<64x1xf32>
    %c2_63 = arith.constant 2 : index
    %c0_64 = arith.constant 0 : index
    %c0_65 = arith.constant 0 : index
    %125 = vector.load %arg12[%c2_63, %c0_64, %c0_65] : memref<4x64x1xf32, #tpu.memory_space<vmem>>, vector<1x64x1xf32>
    %126 = vector.shape_cast %125 : vector<1x64x1xf32> to vector<64x1xf32>
    %127 = vector.shape_cast %124 : vector<64x1xf32> to vector<1x64x1xf32>
    tpu.vector_store %arg12[%c2_63, %c0_64, %c0_65], %127 {strides = array<i32>} : memref<4x64x1xf32, #tpu.memory_space<vmem>>, vector<1x64x1xf32>,
    %c2_66 = arith.constant 2 : index
    %c0_67 = arith.constant 0 : index
    %c0_68 = arith.constant 0 : index
    %128 = vector.load %arg13[%c2_66, %c0_67, %c0_68] : memref<4x64x128xf32, #tpu.memory_space<vmem>>, vector<1x64x128xf32>
    %129 = vector.shape_cast %128 : vector<1x64x128xf32> to vector<64x128xf32>
    %130 = vector.broadcast %115 : vector<64x1xf32> to vector<64x128xf32>
    %131 = arith.mulf %130, %129 : vector<64x128xf32>
    %132 = arith.truncf %118 : vector<64x128xf32> to vector<64x128xbf16>
    %cst_69 = arith.constant dense<0.000000e+00> : vector<64x128xf32>
    %133 = tpu.matmul %132, %11, %cst_69 {dimension_numbers = #tpu.dot_dimension_numbers<[1], [0], [0], [1], [0, 0, 1, 1], [], []>} : vector<64x128xbf16>, vector<128x128xbf16>, vector<64x128xf32> -> vector<64x128xf32>
    %134 = arith.addf %131, %133 : vector<64x128xf32>
    %c2_70 = arith.constant 2 : index
    %c0_71 = arith.constant 0 : index
    %c0_72 = arith.constant 0 : index
    %135 = vector.load %arg13[%c2_70, %c0_71, %c0_72] : memref<4x64x128xf32, #tpu.memory_space<vmem>>, vector<1x64x128xf32>
    %136 = vector.shape_cast %135 : vector<1x64x128xf32> to vector<64x128xf32>
    %137 = vector.shape_cast %134 : vector<64x128xf32> to vector<1x64x128xf32>
    tpu.vector_store %arg13[%c2_70, %c0_71, %c0_72], %137 {strides = array<i32>} : memref<4x64x128xf32, #tpu.memory_space<vmem>>, vector<1x64x128xf32>,
    %c2_73 = arith.constant 2 : index
    %c0_74 = arith.constant 0 : index
    %c0_75 = arith.constant 0 : index
    %138 = vector.load %arg11[%c2_73, %c0_74, %c0_75] : memref<4x64x1xf32, #tpu.memory_space<vmem>>, vector<1x64x1xf32>
    %139 = vector.shape_cast %138 : vector<1x64x1xf32> to vector<64x1xf32>
    %140 = vector.shape_cast %113 : vector<64x1xf32> to vector<1x64x1xf32>
    tpu.vector_store %arg11[%c2_73, %c0_74, %c0_75], %140 {strides = array<i32>} : memref<4x64x1xf32, #tpu.memory_space<vmem>>, vector<1x64x1xf32>,
    %141 = vector.extract_strided_slice %9 {offsets = [0, 3], sizes = [64, 1], strides = [1, 1]} : vector<64x4xf32> to vector<64x1xf32>
    %142 = vector.extract_strided_slice %10 {offsets = [3, 0], sizes = [1, 128], strides = [1, 1]} : vector<4x128xf32> to vector<1x128xf32>
    %143 = vector.broadcast %141 : vector<64x1xf32> to vector<64x128xf32>
    %144 = vector.broadcast %142 : vector<1x128xf32> to vector<64x128xf32>
    %145 = arith.addf %143, %144 : vector<64x128xf32>
    %cst_76 = arith.constant 0.000000e+00 : f32
    %146 = vector.broadcast %cst_76 : f32 to vector<64x128xf32>
    %147 = arith.cmpf ogt, %145, %146 : vector<64x128xf32>
    %cst_77 = arith.constant 2.000000e-01 : f32
    %148 = vector.broadcast %cst_77 : f32 to vector<64x128xf32>
    %149 = arith.mulf %148, %145 : vector<64x128xf32>
    %150 = arith.select %147, %145, %149 : vector<64x128xi1>, vector<64x128xf32>
    %151 = arith.addf %150, %8 : vector<64x128xf32>
    %c3 = arith.constant 3 : index
    %c0_78 = arith.constant 0 : index
    %c0_79 = arith.constant 0 : index
    %152 = vector.load %arg11[%c3, %c0_78, %c0_79] : memref<4x64x1xf32, #tpu.memory_space<vmem>>, vector<1x64x1xf32>
    %153 = vector.shape_cast %152 : vector<1x64x1xf32> to vector<64x1xf32>
    %cst_80 = arith.constant dense<0xFF800000> : vector<64xf32>
    %154 = vector.multi_reduction <maximumf>, %151, %cst_80 [1] : vector<64x128xf32> to vector<64xf32>
    %155 = vector.shape_cast %154 : vector<64xf32> to vector<64x1xf32>
    %156 = arith.maximumf %153, %155 : vector<64x1xf32>
    %157 = arith.subf %153, %156 : vector<64x1xf32>
    %158 = math.exp %157 : vector<64x1xf32>
    %159 = vector.broadcast %156 : vector<64x1xf32> to vector<64x128xf32>
    %160 = arith.subf %151, %159 : vector<64x128xf32>
    %161 = math.exp %160 : vector<64x128xf32>
    %c3_81 = arith.constant 3 : index
    %c0_82 = arith.constant 0 : index
    %c0_83 = arith.constant 0 : index
    %162 = vector.load %arg12[%c3_81, %c0_82, %c0_83] : memref<4x64x1xf32, #tpu.memory_space<vmem>>, vector<1x64x1xf32>
    %163 = vector.shape_cast %162 : vector<1x64x1xf32> to vector<64x1xf32>
    %164 = arith.mulf %158, %163 : vector<64x1xf32>
    %cst_84 = arith.constant dense<0.000000e+00> : vector<64xf32>
    %165 = vector.multi_reduction <add>, %161, %cst_84 [1] : vector<64x128xf32> to vector<64xf32>
    %166 = vector.shape_cast %165 : vector<64xf32> to vector<64x1xf32>
    %167 = arith.addf %164, %166 : vector<64x1xf32>
    %c3_85 = arith.constant 3 : index
    %c0_86 = arith.constant 0 : index
    %c0_87 = arith.constant 0 : index
    %168 = vector.load %arg12[%c3_85, %c0_86, %c0_87] : memref<4x64x1xf32, #tpu.memory_space<vmem>>, vector<1x64x1xf32>
    %169 = vector.shape_cast %168 : vector<1x64x1xf32> to vector<64x1xf32>
    %170 = vector.shape_cast %167 : vector<64x1xf32> to vector<1x64x1xf32>
    tpu.vector_store %arg12[%c3_85, %c0_86, %c0_87], %170 {strides = array<i32>} : memref<4x64x1xf32, #tpu.memory_space<vmem>>, vector<1x64x1xf32>,
    %c3_88 = arith.constant 3 : index
    %c0_89 = arith.constant 0 : index
    %c0_90 = arith.constant 0 : index
    %171 = vector.load %arg13[%c3_88, %c0_89, %c0_90] : memref<4x64x128xf32, #tpu.memory_space<vmem>>, vector<1x64x128xf32>
    %172 = vector.shape_cast %171 : vector<1x64x128xf32> to vector<64x128xf32>
    %173 = vector.broadcast %158 : vector<64x1xf32> to vector<64x128xf32>
    %174 = arith.mulf %173, %172 : vector<64x128xf32>
    %175 = arith.truncf %161 : vector<64x128xf32> to vector<64x128xbf16>
    %cst_91 = arith.constant dense<0.000000e+00> : vector<64x128xf32>
    %176 = tpu.matmul %175, %11, %cst_91 {dimension_numbers = #tpu.dot_dimension_numbers<[1], [0], [0], [1], [0, 0, 1, 1], [], []>} : vector<64x128xbf16>, vector<128x128xbf16>, vector<64x128xf32> -> vector<64x128xf32>
    %177 = arith.addf %174, %176 : vector<64x128xf32>
    %c3_92 = arith.constant 3 : index
    %c0_93 = arith.constant 0 : index
    %c0_94 = arith.constant 0 : index
    %178 = vector.load %arg13[%c3_92, %c0_93, %c0_94] : memref<4x64x128xf32, #tpu.memory_space<vmem>>, vector<1x64x128xf32>
    %179 = vector.shape_cast %178 : vector<1x64x128xf32> to vector<64x128xf32>
    %180 = vector.shape_cast %177 : vector<64x128xf32> to vector<1x64x128xf32>
    tpu.vector_store %arg13[%c3_92, %c0_93, %c0_94], %180 {strides = array<i32>} : memref<4x64x128xf32, #tpu.memory_space<vmem>>, vector<1x64x128xf32>,
    %c3_95 = arith.constant 3 : index
    %c0_96 = arith.constant 0 : index
    %c0_97 = arith.constant 0 : index
    %181 = vector.load %arg11[%c3_95, %c0_96, %c0_97] : memref<4x64x1xf32, #tpu.memory_space<vmem>>, vector<1x64x1xf32>
    %182 = vector.shape_cast %181 : vector<1x64x1xf32> to vector<64x1xf32>
    %183 = vector.shape_cast %156 : vector<64x1xf32> to vector<1x64x1xf32>
    tpu.vector_store %arg11[%c3_95, %c0_96, %c0_97], %183 {strides = array<i32>} : memref<4x64x1xf32, #tpu.memory_space<vmem>>, vector<1x64x1xf32>,
    %c1_i32 = arith.constant 1 : i32
    %184 = arith.cmpi eq, %arg1, %c1_i32 : i32
    %185 = arith.extui %184 : i1 to i32
    %c0_i32_98 = arith.constant 0 : i32
    %186 = arith.cmpi ne, %185, %c0_i32_98 : i32
    scf.if %186 {
      %cst_99 = arith.constant 0.000000e+00 : f32
      %187 = vector.broadcast %cst_99 : f32 to vector<64x128xf32>
      %c0_100 = arith.constant 0 : index
      %c0_101 = arith.constant 0 : index
      %c0_102 = arith.constant 0 : index
      %188 = vector.load %arg12[%c0_100, %c0_101, %c0_102] : memref<4x64x1xf32, #tpu.memory_space<vmem>>, vector<1x64x1xf32>
      %189 = vector.shape_cast %188 : vector<1x64x1xf32> to vector<64x1xf32>
      %190 = tpu.reciprocal %189 {approx = true} : vector<64x1xf32> -> vector<64x1xf32>
      %c0_103 = arith.constant 0 : index
      %c0_104 = arith.constant 0 : index
      %c0_105 = arith.constant 0 : index
      %191 = vector.load %arg13[%c0_103, %c0_104, %c0_105] : memref<4x64x128xf32, #tpu.memory_space<vmem>>, vector<1x64x128xf32>
      %192 = vector.shape_cast %191 : vector<1x64x128xf32> to vector<64x128xf32>
      %193 = vector.broadcast %190 : vector<64x1xf32> to vector<64x128xf32>
      %194 = arith.mulf %192, %193 : vector<64x128xf32>
      %c0_106 = arith.constant 0 : index
      %c0_107 = arith.constant 0 : index
      %c0_108 = arith.constant 0 : index
      %195 = vector.load %arg6[%c0_106, %c0_107, %c0_108] : memref<4x1x128xf32, #tpu.memory_space<vmem>>, vector<1x1x128xf32>
      %196 = vector.shape_cast %195 : vector<1x1x128xf32> to vector<1x128xf32>
      %197 = vector.broadcast %196 : vector<1x128xf32> to vector<64x128xf32>
      %198 = arith.mulf %194, %197 : vector<64x128xf32>
      %199 = arith.addf %187, %198 : vector<64x128xf32>
      %c1_109 = arith.constant 1 : index
      %c0_110 = arith.constant 0 : index
      %c0_111 = arith.constant 0 : index
      %200 = vector.load %arg12[%c1_109, %c0_110, %c0_111] : memref<4x64x1xf32, #tpu.memory_space<vmem>>, vector<1x64x1xf32>
      %201 = vector.shape_cast %200 : vector<1x64x1xf32> to vector<64x1xf32>
      %202 = tpu.reciprocal %201 {approx = true} : vector<64x1xf32> -> vector<64x1xf32>
      %c1_112 = arith.constant 1 : index
      %c0_113 = arith.constant 0 : index
      %c0_114 = arith.constant 0 : index
      %203 = vector.load %arg13[%c1_112, %c0_113, %c0_114] : memref<4x64x128xf32, #tpu.memory_space<vmem>>, vector<1x64x128xf32>
      %204 = vector.shape_cast %203 : vector<1x64x128xf32> to vector<64x128xf32>
      %205 = vector.broadcast %202 : vector<64x1xf32> to vector<64x128xf32>
      %206 = arith.mulf %204, %205 : vector<64x128xf32>
      %c1_115 = arith.constant 1 : index
      %c0_116 = arith.constant 0 : index
      %c0_117 = arith.constant 0 : index
      %207 = vector.load %arg6[%c1_115, %c0_116, %c0_117] : memref<4x1x128xf32, #tpu.memory_space<vmem>>, vector<1x1x128xf32>
      %208 = vector.shape_cast %207 : vector<1x1x128xf32> to vector<1x128xf32>
      %209 = vector.broadcast %208 : vector<1x128xf32> to vector<64x128xf32>
      %210 = arith.mulf %206, %209 : vector<64x128xf32>
      %211 = arith.addf %199, %210 : vector<64x128xf32>
      %c2_118 = arith.constant 2 : index
      %c0_119 = arith.constant 0 : index
      %c0_120 = arith.constant 0 : index
      %212 = vector.load %arg12[%c2_118, %c0_119, %c0_120] : memref<4x64x1xf32, #tpu.memory_space<vmem>>, vector<1x64x1xf32>
      %213 = vector.shape_cast %212 : vector<1x64x1xf32> to vector<64x1xf32>
      %214 = tpu.reciprocal %213 {approx = true} : vector<64x1xf32> -> vector<64x1xf32>
      %c2_121 = arith.constant 2 : index
      %c0_122 = arith.constant 0 : index
      %c0_123 = arith.constant 0 : index
      %215 = vector.load %arg13[%c2_121, %c0_122, %c0_123] : memref<4x64x128xf32, #tpu.memory_space<vmem>>, vector<1x64x128xf32>
      %216 = vector.shape_cast %215 : vector<1x64x128xf32> to vector<64x128xf32>
      %217 = vector.broadcast %214 : vector<64x1xf32> to vector<64x128xf32>
      %218 = arith.mulf %216, %217 : vector<64x128xf32>
      %c2_124 = arith.constant 2 : index
      %c0_125 = arith.constant 0 : index
      %c0_126 = arith.constant 0 : index
      %219 = vector.load %arg6[%c2_124, %c0_125, %c0_126] : memref<4x1x128xf32, #tpu.memory_space<vmem>>, vector<1x1x128xf32>
      %220 = vector.shape_cast %219 : vector<1x1x128xf32> to vector<1x128xf32>
      %221 = vector.broadcast %220 : vector<1x128xf32> to vector<64x128xf32>
      %222 = arith.mulf %218, %221 : vector<64x128xf32>
      %223 = arith.addf %211, %222 : vector<64x128xf32>
      %c3_127 = arith.constant 3 : index
      %c0_128 = arith.constant 0 : index
      %c0_129 = arith.constant 0 : index
      %224 = vector.load %arg12[%c3_127, %c0_128, %c0_129] : memref<4x64x1xf32, #tpu.memory_space<vmem>>, vector<1x64x1xf32>
      %225 = vector.shape_cast %224 : vector<1x64x1xf32> to vector<64x1xf32>
      %226 = tpu.reciprocal %225 {approx = true} : vector<64x1xf32> -> vector<64x1xf32>
      %c3_130 = arith.constant 3 : index
      %c0_131 = arith.constant 0 : index
      %c0_132 = arith.constant 0 : index
      %227 = vector.load %arg13[%c3_130, %c0_131, %c0_132] : memref<4x64x128xf32, #tpu.memory_space<vmem>>, vector<1x64x128xf32>
      %228 = vector.shape_cast %227 : vector<1x64x128xf32> to vector<64x128xf32>
      %229 = vector.broadcast %226 : vector<64x1xf32> to vector<64x128xf32>
      %230 = arith.mulf %228, %229 : vector<64x128xf32>
      %c3_133 = arith.constant 3 : index
      %c0_134 = arith.constant 0 : index
      %c0_135 = arith.constant 0 : index
      %231 = vector.load %arg6[%c3_133, %c0_134, %c0_135] : memref<4x1x128xf32, #tpu.memory_space<vmem>>, vector<1x1x128xf32>
      %232 = vector.shape_cast %231 : vector<1x1x128xf32> to vector<1x128xf32>
      %233 = vector.broadcast %232 : vector<1x128xf32> to vector<64x128xf32>
      %234 = arith.mulf %230, %233 : vector<64x128xf32>
      %235 = arith.addf %223, %234 : vector<64x128xf32>
      %c0_136 = arith.constant 0 : index
      %c0_137 = arith.constant 0 : index
      %236 = vector.load %arg7[%c0_136, %c0_137] : memref<1x128xf32, #tpu.memory_space<vmem>>, vector<1x128xf32>
      %237 = vector.broadcast %236 : vector<1x128xf32> to vector<64x128xf32>
      %238 = arith.addf %235, %237 : vector<64x128xf32>
      %239 = tpu.iota {dimensions = array<i32: 1>} : vector<1x128xi32>
      %c32_i32 = arith.constant 32 : i32
      %240 = vector.broadcast %c32_i32 : i32 to vector<1x128xi32>
      %241 = arith.cmpi slt, %239, %240 : vector<1x128xi32>
      %242 = arith.extui %241 : vector<1x128xi1> to vector<1x128xi32>
      %243 = arith.sitofp %242 : vector<1x128xi32> to vector<1x128xf32>
      %cst_138 = arith.constant dense<0.000000e+00> : vector<64xf32>
      %244 = vector.multi_reduction <add>, %238, %cst_138 [1] : vector<64x128xf32> to vector<64xf32>
      %245 = vector.shape_cast %244 : vector<64xf32> to vector<64x1xf32>
      %cst_139 = arith.constant 3.125000e-02 : f32
      %246 = vector.broadcast %cst_139 : f32 to vector<64x1xf32>
      %247 = arith.mulf %245, %246 : vector<64x1xf32>
      %248 = vector.broadcast %247 : vector<64x1xf32> to vector<64x128xf32>
      %249 = arith.subf %238, %248 : vector<64x128xf32>
      %250 = vector.broadcast %243 : vector<1x128xf32> to vector<64x128xf32>
      %251 = arith.mulf %249, %250 : vector<64x128xf32>
      %252 = arith.mulf %251, %251 : vector<64x128xf32>
      %cst_140 = arith.constant dense<0.000000e+00> : vector<64xf32>
      %253 = vector.multi_reduction <add>, %252, %cst_140 [1] : vector<64x128xf32> to vector<64xf32>
      %254 = vector.shape_cast %253 : vector<64xf32> to vector<64x1xf32>
      %cst_141 = arith.constant 3.125000e-02 : f32
      %255 = vector.broadcast %cst_141 : f32 to vector<64x1xf32>
      %256 = arith.mulf %254, %255 : vector<64x1xf32>
      %cst_142 = arith.constant 9.99999974E-6 : f32
      %257 = vector.broadcast %cst_142 : f32 to vector<64x1xf32>
      %258 = arith.addf %256, %257 : vector<64x1xf32>
      %259 = math.rsqrt %258 : vector<64x1xf32>
      %260 = vector.broadcast %259 : vector<64x1xf32> to vector<64x128xf32>
      %261 = arith.mulf %251, %260 : vector<64x128xf32>
      %c0_143 = arith.constant 0 : index
      %c0_144 = arith.constant 0 : index
      %262 = vector.load %arg8[%c0_143, %c0_144] : memref<1x128xf32, #tpu.memory_space<vmem>>, vector<1x128xf32>
      %263 = vector.broadcast %262 : vector<1x128xf32> to vector<64x128xf32>
      %264 = arith.mulf %261, %263 : vector<64x128xf32>
      %c0_145 = arith.constant 0 : index
      %c0_146 = arith.constant 0 : index
      %265 = vector.load %arg9[%c0_145, %c0_146] : memref<1x128xf32, #tpu.memory_space<vmem>>, vector<1x128xf32>
      %266 = vector.broadcast %265 : vector<1x128xf32> to vector<64x128xf32>
      %267 = arith.addf %264, %266 : vector<64x128xf32>
      %cst_147 = arith.constant 0.000000e+00 : f32
      %268 = vector.broadcast %cst_147 : f32 to vector<64x128xf32>
      %269 = arith.cmpf ogt, %267, %268 : vector<64x128xf32>
      %cst_148 = arith.constant 2.000000e-01 : f32
      %270 = vector.broadcast %cst_148 : f32 to vector<64x128xf32>
      %271 = arith.mulf %270, %267 : vector<64x128xf32>
      %272 = arith.select %269, %267, %271 : vector<64x128xi1>, vector<64x128xf32>
      %c0_149 = arith.constant 0 : index
      %c0_150 = arith.constant 0 : index
      %273 = vector.load %arg10[%c0_149, %c0_150] : memref<64x128xf32, #tpu.memory_space<vmem>>, vector<64x128xf32>
      tpu.vector_store %arg10[%c0_149, %c0_150], %272 {strides = array<i32>} : memref<64x128xf32, #tpu.memory_space<vmem>>, vector<64x128xf32>,
    } else {
    }
    return
  }
  func.func @transform_0(%arg0: i32, %arg1: i32) -> (i32, i32) {
    %c0_i32 = arith.constant 0 : i32
    %c0_i32_0 = arith.constant 0 : i32
    return %arg0, %c0_i32 : i32, i32
  }
  func.func @transform_1(%arg0: i32, %arg1: i32) -> (i32, i32) {
    %c0_i32 = arith.constant 0 : i32
    %c0_i32_0 = arith.constant 0 : i32
    return %c0_i32, %arg1 : i32, i32
  }
  func.func @transform_2(%arg0: i32, %arg1: i32) -> (i32, i32) {
    %c0_i32 = arith.constant 0 : i32
    return %arg0, %arg1 : i32, i32
  }
  func.func @transform_3(%arg0: i32, %arg1: i32) -> (i32, i32) {
    %c0_i32 = arith.constant 0 : i32
    %c0_i32_0 = arith.constant 0 : i32
    return %arg1, %c0_i32 : i32, i32
  }
  func.func @transform_4(%arg0: i32, %arg1: i32) -> (i32, i32, i32) {
    %c0_i32 = arith.constant 0 : i32
    %c0_i32_0 = arith.constant 0 : i32
    %c0_i32_1 = arith.constant 0 : i32
    %c0_i32_2 = arith.constant 0 : i32
    return %c0_i32, %c0_i32_0, %c0_i32_1 : i32, i32, i32
  }
  func.func @transform_5(%arg0: i32, %arg1: i32) -> (i32, i32) {
    %c0_i32 = arith.constant 0 : i32
    %c0_i32_0 = arith.constant 0 : i32
    %c0_i32_1 = arith.constant 0 : i32
    return %c0_i32, %c0_i32_0 : i32, i32
  }
  func.func @transform_6(%arg0: i32, %arg1: i32) -> (i32, i32) {
    %c0_i32 = arith.constant 0 : i32
    %c0_i32_0 = arith.constant 0 : i32
    %c0_i32_1 = arith.constant 0 : i32
    return %c0_i32, %c0_i32_0 : i32, i32
  }
  func.func @transform_7(%arg0: i32, %arg1: i32) -> (i32, i32) {
    %c0_i32 = arith.constant 0 : i32
    %c0_i32_0 = arith.constant 0 : i32
    %c0_i32_1 = arith.constant 0 : i32
    return %c0_i32, %c0_i32_0 : i32, i32
  }
  func.func @transform_8(%arg0: i32, %arg1: i32) -> (i32, i32) {
    %c0_i32 = arith.constant 0 : i32
    %c0_i32_0 = arith.constant 0 : i32
    return %arg0, %c0_i32 : i32, i32
  }
}

</mosaic_0001>

<bundles_post_ra>
// kernel: tpu_custom_call.1
= control target key start
LH: loop header
LB: loop body
LE: loop exit
PB: predicated region body
PF: predicated region fallthrough
CT: control target
= control target key end

     0   :  { %s5029_s0 = inlined_call_operand.vmem [shape: f32[256,4], index: 0, kind: input, shape index: {}]   ;;  %s5030_s1 = inlined_call_operand.vmem [shape: f32[4,256], index: 1, kind: input, shape index: {}]   ;;  %s5031_s2 = inlined_call_operand.vmem [shape: s8[256,256], index: 2, kind: input, shape index: {}]   ;;  %s5032_s3 = inlined_call_operand.vmem [shape: bf16[256,128], index: 3, kind: input, shape index: {}]   ;;  %s5033_s4 = inlined_call_operand.vmem [shape: f32[4,1,128], index: 4, kind: input, shape index: {}]   ;;  %s5034_s5 = inlined_call_operand.vmem [shape: f32[1,128], index: 5, kind: input, shape index: {}]   ;;  %s5035_s6 = inlined_call_operand.vmem [shape: f32[1,128], index: 6, kind: input, shape index: {}]   ;;  %s5036_s7 = inlined_call_operand.vmem [shape: f32[1,128], index: 7, kind: input, shape index: {}]   ;;  %s5037_s8 = inlined_call_operand.hbm [shape: f32[256,128], index: 8, kind: output, shape index: {}]  }
   0x1   :  { %5081 = sst [smem:[#allocation44_spill]] %s5031_s2 }
   0x2   :  { %13 = vsyncpa [#allocation7], 0 }
   0x3   :  { %15 = vsyncpa [#allocation7 + $0x1], 0  ;;  %s3611_s27 = smov 0   ;;  %s3613_s28 = smov 0  }
   0x4   :  { %s3615_s29 = smov 0   ;;  %s3617_s30 = smov 0  }
   0x5   :  { %s3619_s9 = smov 0   ;;  %s3621_s10 = smov 0  }
   0x6   :  { %s3623_s11 = smov 0   ;;  %s3625_s12 = smov 0  }
   0x7   :  { %s3627_s13 = smov 0   ;;  %s3629_s14 = smov 0  }
   0x8 LB: > { %5082 = sst [smem:[#allocation9_spill]] %s3517_s27  ;;  %s2918_s15 = sadd.s32 4294967295, %s3553_s14   ;;  %s3553_s14 = sphi %s3629_s14, %s21_s14   ;;  %s3549_s13 = sphi %s3627_s13, %s5197_s13   ;;  %s3545_s12 = sphi %s3625_s12, %s5196_s12   ;;  %s3541_s11 = sphi %s3623_s11, %s5195_s11   ;;  %s3537_s10 = sphi %s3621_s10, %s5194_s10   ;;  %s3533_s9 = sphi %s3619_s9, %s5200_s9   ;;  %s3529_s30 = sphi %s3617_s30, %s5192_s30   ;;  %s3525_s29 = sphi %s3615_s29, %s5191_s29   ;;  %s3521_s28 = sphi %s3613_s28, %s5199_s28   ;;  %s3517_s27 = sphi %s3611_s27, %s5198_s27  }
   0x9   : > { %5083 = sst [smem:[#allocation10_spill]] %s3525_s29  ;;  %s2919_s16 = sadd.s32 4294967294, %s3553_s14  }
   0xa   : > { %5084 = sst [smem:[#allocation11_spill]] %s3533_s9  ;;  %s30_s17 = sadd.s32 1, %s3545_s12 }
   0xb   : > { %5085 = sst [smem:[#allocation12_spill]] %s3545_s12  ;;  %s33_s18 = sadd.s32 1, %s3549_s13 }
   0xc   : > { %5086 = sst [smem:[#allocation13_spill]] %s3549_s13  ;;  %p31_p0 = scmp.ge.s32.totalorder %s30_s17, 2 }
   0xd   : > { %s94_s19 = sadd.s32 1, %s3533_s9  ;;  %p101_p1 = scmp.ne.s32.totalorder %s3533_s9, %s3529_s30 }
   0xe   : > { %p102_p2 = scmp.eq.s32.totalorder %s3553_s14, 0  ;;  %s5202_s17 = smov (%p31_p0, %s30_s17), 0 }
   0xf   : > { %5087 = sst [smem:[#allocation14_spill]] %s5202_s17  ;;  %s5204_s18 = smov (!%p31_p0, %s33_s18), %s3549_s13 }
  0x10   : > { %s90_s20 = ssub.s32 %s3545_s12, %s5202_s17  ;;  %p3674_p3 = por %p102_p2, %p101_p1 }
  0x11   : > { %p35_p4 = scmp.ge.s32.totalorder %s5204_s18, 4  ;;  %s230_s22 = sadd.s32 1, %s3525_s29 }
  0x12   : > { %p240_p5 = scmp.ne.s32.totalorder %s3525_s29, %s3521_s28  ;;  %p241_p6 = scmp.eq.s32.totalorder %s2918_s15, 7 }
  0x13   : > { %s5206_s18 = smov (%p35_p4, %s5204_s18), 0  ;;  %p246_p8 = scmp.ne.s32.totalorder %s3521_s28, %s3517_s27 }
  0x14   : > { %5089 = sst [smem:[#allocation15_spill]] %s5206_s18  ;;  %p3683_p7 = por %p241_p6, %p240_p5 }
  0x15   : > { %s89_s24 = ssub.s32 %s3549_s13, %s5206_s18  ;;  %p247_p9 = scmp.eq.s32.totalorder %s2919_s16, 7 }
  0x16   : > { %s91_s25 = sor.u32 %s90_s20, %s89_s24  ;;  %p228_p10 = scmp.eq.s32.totalorder %s89_s24, 0 }
  0x17   : > { %p92_p11 = scmp.eq.s32.totalorder %s91_s25, 0  ;;  %p3691_p12 = por %p247_p9, %p246_p8 }
  0x18   : > { %s3696_s17 = scalar_select %p228_p10, %s3525_s29, %s230_s22  }
  0x19   : > { %s5091_s26 = scalar_select %p3691_p12, 1, 0 }
  0x1a   : > { %5093 = sst [smem:[#allocation17_spill]] %s3696_s17  ;;  %p2921_p13 = scmp.ge.s32.totalorder %s3553_s14, 8 }
  0x1b   : > { %5092 = sst [smem:[#allocation16_spill]] %s5091_s26 }
  0x1c   : > { %s3699_s15 = scalar_select %p92_p11, %s3533_s9, %s94_s19  }
  0x1d   : > { %275 = sbr.rel (%p2921_p13) target bundleno = 45 (0x2d), region = 32 }
  0x1e   : > { %5094 = sst [smem:[#allocation18_spill]] %s3699_s15 }
  0x22   : > { %294 = sbr.rel (!%p3674_p3) target bundleno = 45 (0x2d), region = 44  ;;  %s296_s16 = sand.u32 (%p3674_p3), 1, %s3533_s9  }
  0x23   : > { %s2968_s20 = sshll.u32 (%p3674_p3), %s3549_s13, 2  ;;  %s2922_s24 = sshll.u32 (%p3674_p3), %s296_s16, 4 }
  0x24   : > { %s301_s25 = sadd.s32 (%p3674_p3), %s3545_s12, %s2968_s20  ;;  %s5095_s2 = sld [smem:[#allocation44_spill]] (%p3674_p3) }
  0x25   : > { %s2925_s18 = sshll.u32 (%p3674_p3), %s301_s25, 3  ;;  %s298_s19 = scalar_lea.vmem (%p3674_p3), [#allocation5], %s2922_s24 }
  0x2a   : > { %s303_s22 = scalar_lea.vmem %s5095_s2, %s2925_s18 }
  0x2b   : > { %v334_v0 = vld [vmem:[%s303_s22] sm:$0xff]  ;;  %v336_v1 = vld [vmem:[%s303_s22 + $0x10] sm:$0xff] }
  0x2c   : > { %335 = vst [vmem:[%s298_s19] sm:$0xff] %v334_v0  ;;  %337 = vst [vmem:[%s298_s19 + $0x8] sm:$0xff] %v336_v1 }
  0x2d PF: > { %p2926_p0 = scmp.ge.s32.totalorder %s3553_s14, 1  ;;  %p351_p1 = scmp.lt.s32.totalorder %s3553_s14, 9 }
  0x2f   : > { %p352_p2 = pnand %p2926_p0, %p351_p1 }
  0x31   : > { %355 = sbr.rel (%p352_p2) target bundleno = 1661 (0x67d), region = 86 }
  0x36   : > { %s358_s27 = sand.u32 1, %s3529_s30   ;;  %s5044_s18 = sand.u32 1, %s3521_s28  }
  0x37   : > { %s3714_s21 = sshll.u32 %s358_s27, 4  ;;  %s2928_s26 = sshll.u32 %s5044_s18, 6 }
  0x38   : > { %s2929_s16 = sshll.u32 %s3541_s11, 3  ;;  %p411_p3 = scmp.lt.s32.totalorder %s3537_s10, 1 }
  0x39   : > { %p406_p4 = scmp.lt.s32.totalorder %s2929_s16, 31  ;;  %s2932_s20 = sshll.u32 %s3537_s10, 4 }
  0x3a   : > { %s412_s24 = scalar_select %p411_p3, %s3537_s10, 1 }
  0x3b   : > { %s5208_s16 = smov (!%p406_p4, %s2929_s16), 31  ;;  %p417_p5 = scmp.lt.s32.totalorder %s2932_s20, 31 }
  0x3c   : > { %s2931_s25 = sshll.u32 %s412_s24, 2  ;;  %s2930_s22 = sshll.u32 %s5208_s16, 3 }
  0x3d   : > { %s3725_s13 = scalar_lea.vmem %s5030_s1, %s2931_s25  ;;  %s3730_s12 = scalar_lea.vmem %s5029_s0, %s2930_s22 }
  0x3e   : > { %s5210_s20 = smov (!%p417_p5, %s2932_s20), 31  ;;  %s360_s24 = scalar_lea.vmem [#allocation5], %s3714_s21 }
  0x3f   : > { %s2933_s18 = sshll.u32 %s5210_s20, 2  ;;  %s3738_s29 = scalar_lea.vmem [#allocation6], %s2928_s26 }
  0x40   : > { %s3735_s17 = scalar_lea.vmem %s5032_s3, %s2933_s18  ;;  %p2934_p6 = scmp.ne.s32.totalorder %s3537_s10, 0 }
  0x42   : > { %427 = sbr.rel (%p2934_p6) target bundleno = 120 (0x78), region = 94 }
  0x47   : > { %vm428_vm0 = vcmask 7168   ;;  %v3555_v2 = vmov -inf   ;;  %v3556_v3 = vmov 0.0  }
  0x48   : > { %429 = vst.msk [vmem:[#allocation2] sm:$0xff] %vm428_vm0, %v3555_v2  ;;  %430 = vst.msk [vmem:[#allocation2 + $0x8] sm:$0xff] %vm428_vm0, %v3555_v2 }
  0x49   : > { %431 = vst.msk [vmem:[#allocation2 + $0x10] sm:$0xff] %vm428_vm0, %v3555_v2  ;;  %432 = vst.msk [vmem:[#allocation2 + $0x18] sm:$0xff] %vm428_vm0, %v3555_v2 }
  0x4a   : > { %433 = vst.msk [vmem:[#allocation2 + $0x20] sm:$0xff] %vm428_vm0, %v3555_v2  ;;  %434 = vst.msk [vmem:[#allocation2 + $0x28] sm:$0xff] %vm428_vm0, %v3555_v2 }
  0x4b   : > { %435 = vst.msk [vmem:[#allocation2 + $0x30] sm:$0xff] %vm428_vm0, %v3555_v2  ;;  %436 = vst.msk [vmem:[#allocation2 + $0x38] sm:$0xff] %vm428_vm0, %v3555_v2 }
  0x4c   : > { %437 = vst.msk [vmem:[#allocation2 + $0x40] sm:$0xff] %vm428_vm0, %v3555_v2  ;;  %438 = vst.msk [vmem:[#allocation2 + $0x48] sm:$0xff] %vm428_vm0, %v3555_v2 }
  0x4d   : > { %439 = vst.msk [vmem:[#allocation2 + $0x50] sm:$0xff] %vm428_vm0, %v3555_v2  ;;  %440 = vst.msk [vmem:[#allocation2 + $0x58] sm:$0xff] %vm428_vm0, %v3555_v2 }
  0x4e   : > { %441 = vst.msk [vmem:[#allocation2 + $0x60] sm:$0xff] %vm428_vm0, %v3555_v2  ;;  %442 = vst.msk [vmem:[#allocation2 + $0x68] sm:$0xff] %vm428_vm0, %v3555_v2 }
  0x4f   : > { %443 = vst.msk [vmem:[#allocation2 + $0x70] sm:$0xff] %vm428_vm0, %v3555_v2  ;;  %444 = vst.msk [vmem:[#allocation2 + $0x78] sm:$0xff] %vm428_vm0, %v3555_v2 }
  0x50   : > { %445 = vst.msk [vmem:[#allocation2 + $0x80] sm:$0xff] %vm428_vm0, %v3555_v2  ;;  %446 = vst.msk [vmem:[#allocation2 + $0x88] sm:$0xff] %vm428_vm0, %v3555_v2 }
  0x51   : > { %447 = vst.msk [vmem:[#allocation2 + $0x90] sm:$0xff] %vm428_vm0, %v3555_v2  ;;  %448 = vst.msk [vmem:[#allocation2 + $0x98] sm:$0xff] %vm428_vm0, %v3555_v2 }
  0x52   : > { %449 = vst.msk [vmem:[#allocation2 + $0xa0] sm:$0xff] %vm428_vm0, %v3555_v2  ;;  %450 = vst.msk [vmem:[#allocation2 + $0xa8] sm:$0xff] %vm428_vm0, %v3555_v2 }
  0x53   : > { %451 = vst.msk [vmem:[#allocation2 + $0xb0] sm:$0xff] %vm428_vm0, %v3555_v2  ;;  %452 = vst.msk [vmem:[#allocation2 + $0xb8] sm:$0xff] %vm428_vm0, %v3555_v2 }
  0x54   : > { %453 = vst.msk [vmem:[#allocation2 + $0xc0] sm:$0xff] %vm428_vm0, %v3555_v2  ;;  %454 = vst.msk [vmem:[#allocation2 + $0xc8] sm:$0xff] %vm428_vm0, %v3555_v2 }
  0x55   : > { %455 = vst.msk [vmem:[#allocation2 + $0xd0] sm:$0xff] %vm428_vm0, %v3555_v2  ;;  %456 = vst.msk [vmem:[#allocation2 + $0xd8] sm:$0xff] %vm428_vm0, %v3555_v2 }
  0x56   : > { %457 = vst.msk [vmem:[#allocation2 + $0xe0] sm:$0xff] %vm428_vm0, %v3555_v2  ;;  %458 = vst.msk [vmem:[#allocation2 + $0xe8] sm:$0xff] %vm428_vm0, %v3555_v2 }
  0x57   : > { %459 = vst.msk [vmem:[#allocation2 + $0xf0] sm:$0xff] %vm428_vm0, %v3555_v2  ;;  %460 = vst.msk [vmem:[#allocation2 + $0xf8] sm:$0xff] %vm428_vm0, %v3555_v2 }
  0x58   : > { %461 = vst.msk [vmem:[#allocation3] sm:$0xff] %vm428_vm0, %v3556_v3  ;;  %462 = vst.msk [vmem:[#allocation3 + $0x8] sm:$0xff] %vm428_vm0, %v3556_v3 }
  0x59   : > { %463 = vst.msk [vmem:[#allocation3 + $0x10] sm:$0xff] %vm428_vm0, %v3556_v3  ;;  %464 = vst.msk [vmem:[#allocation3 + $0x18] sm:$0xff] %vm428_vm0, %v3556_v3 }
  0x5a   : > { %465 = vst.msk [vmem:[#allocation3 + $0x20] sm:$0xff] %vm428_vm0, %v3556_v3  ;;  %466 = vst.msk [vmem:[#allocation3 + $0x28] sm:$0xff] %vm428_vm0, %v3556_v3 }
  0x5b   : > { %467 = vst.msk [vmem:[#allocation3 + $0x30] sm:$0xff] %vm428_vm0, %v3556_v3  ;;  %468 = vst.msk [vmem:[#allocation3 + $0x38] sm:$0xff] %vm428_vm0, %v3556_v3 }
  0x5c   : > { %469 = vst.msk [vmem:[#allocation3 + $0x40] sm:$0xff] %vm428_vm0, %v3556_v3  ;;  %470 = vst.msk [vmem:[#allocation3 + $0x48] sm:$0xff] %vm428_vm0, %v3556_v3 }
  0x5d   : > { %471 = vst.msk [vmem:[#allocation3 + $0x50] sm:$0xff] %vm428_vm0, %v3556_v3  ;;  %472 = vst.msk [vmem:[#allocation3 + $0x58] sm:$0xff] %vm428_vm0, %v3556_v3 }
  0x5e   : > { %473 = vst.msk [vmem:[#allocation3 + $0x60] sm:$0xff] %vm428_vm0, %v3556_v3  ;;  %474 = vst.msk [vmem:[#allocation3 + $0x68] sm:$0xff] %vm428_vm0, %v3556_v3 }
  0x5f   : > { %475 = vst.msk [vmem:[#allocation3 + $0x70] sm:$0xff] %vm428_vm0, %v3556_v3  ;;  %476 = vst.msk [vmem:[#allocation3 + $0x78] sm:$0xff] %vm428_vm0, %v3556_v3 }
  0x60   : > { %477 = vst.msk [vmem:[#allocation3 + $0x80] sm:$0xff] %vm428_vm0, %v3556_v3  ;;  %478 = vst.msk [vmem:[#allocation3 + $0x88] sm:$0xff] %vm428_vm0, %v3556_v3 }
  0x61   : > { %479 = vst.msk [vmem:[#allocation3 + $0x90] sm:$0xff] %vm428_vm0, %v3556_v3  ;;  %480 = vst.msk [vmem:[#allocation3 + $0x98] sm:$0xff] %vm428_vm0, %v3556_v3 }
  0x62   : > { %481 = vst.msk [vmem:[#allocation3 + $0xa0] sm:$0xff] %vm428_vm0, %v3556_v3  ;;  %482 = vst.msk [vmem:[#allocation3 + $0xa8] sm:$0xff] %vm428_vm0, %v3556_v3 }
  0x63   : > { %483 = vst.msk [vmem:[#allocation3 + $0xb0] sm:$0xff] %vm428_vm0, %v3556_v3  ;;  %484 = vst.msk [vmem:[#allocation3 + $0xb8] sm:$0xff] %vm428_vm0, %v3556_v3 }
  0x64   : > { %485 = vst.msk [vmem:[#allocation3 + $0xc0] sm:$0xff] %vm428_vm0, %v3556_v3  ;;  %486 = vst.msk [vmem:[#allocation3 + $0xc8] sm:$0xff] %vm428_vm0, %v3556_v3 }
  0x65   : > { %487 = vst.msk [vmem:[#allocation3 + $0xd0] sm:$0xff] %vm428_vm0, %v3556_v3  ;;  %488 = vst.msk [vmem:[#allocation3 + $0xd8] sm:$0xff] %vm428_vm0, %v3556_v3 }
  0x66   : > { %489 = vst.msk [vmem:[#allocation3 + $0xe0] sm:$0xff] %vm428_vm0, %v3556_v3  ;;  %490 = vst.msk [vmem:[#allocation3 + $0xe8] sm:$0xff] %vm428_vm0, %v3556_v3 }
  0x67   : > { %491 = vst.msk [vmem:[#allocation3 + $0xf0] sm:$0xff] %vm428_vm0, %v3556_v3  ;;  %492 = vst.msk [vmem:[#allocation3 + $0xf8] sm:$0xff] %vm428_vm0, %v3556_v3 }
  0x68   : > { %493 = vst [vmem:[#allocation4 + $0xb0] sm:$0xff] %v3556_v3  ;;  %494 = vst [vmem:[#allocation4] sm:$0xff] %v3556_v3 }
  0x69   : > { %495 = vst [vmem:[#allocation4 + $0xd8] sm:$0xff] %v3556_v3  ;;  %496 = vst [vmem:[#allocation4 + $0x18] sm:$0xff] %v3556_v3 }
  0x6a   : > { %497 = vst [vmem:[#allocation4 + $0x50] sm:$0xff] %v3556_v3  ;;  %498 = vst [vmem:[#allocation4 + $0x68] sm:$0xff] %v3556_v3 }
  0x6b   : > { %499 = vst [vmem:[#allocation4 + $0x30] sm:$0xff] %v3556_v3  ;;  %500 = vst [vmem:[#allocation4 + $0x48] sm:$0xff] %v3556_v3 }
  0x6c   : > { %501 = vst [vmem:[#allocation4 + $0x80] sm:$0xff] %v3556_v3  ;;  %502 = vst [vmem:[#allocation4 + $0x88] sm:$0xff] %v3556_v3 }
  0x6d   : > { %503 = vst [vmem:[#allocation4 + $0xe8] sm:$0xff] %v3556_v3  ;;  %504 = vst [vmem:[#allocation4 + $0xb8] sm:$0xff] %v3556_v3 }
  0x6e   : > { %505 = vst [vmem:[#allocation4 + $0x60] sm:$0xff] %v3556_v3  ;;  %506 = vst [vmem:[#allocation4 + $0xf0] sm:$0xff] %v3556_v3 }
  0x6f   : > { %507 = vst [vmem:[#allocation4 + $0x8] sm:$0xff] %v3556_v3  ;;  %508 = vst [vmem:[#allocation4 + $0x78] sm:$0xff] %v3556_v3 }
  0x70   : > { %509 = vst [vmem:[#allocation4 + $0x38] sm:$0xff] %v3556_v3  ;;  %510 = vst [vmem:[#allocation4 + $0x58] sm:$0xff] %v3556_v3 }
  0x71   : > { %511 = vst [vmem:[#allocation4 + $0x40] sm:$0xff] %v3556_v3  ;;  %512 = vst [vmem:[#allocation4 + $0xc8] sm:$0xff] %v3556_v3 }
  0x72   : > { %513 = vst [vmem:[#allocation4 + $0xe0] sm:$0xff] %v3556_v3  ;;  %514 = vst [vmem:[#allocation4 + $0x90] sm:$0xff] %v3556_v3 }
  0x73   : > { %515 = vst [vmem:[#allocation4 + $0x70] sm:$0xff] %v3556_v3  ;;  %516 = vst [vmem:[#allocation4 + $0xc0] sm:$0xff] %v3556_v3 }
  0x74   : > { %517 = vst [vmem:[#allocation4 + $0xa8] sm:$0xff] %v3556_v3  ;;  %518 = vst [vmem:[#allocation4 + $0xd0] sm:$0xff] %v3556_v3 }
  0x75   : > { %519 = vst [vmem:[#allocation4 + $0x10] sm:$0xff] %v3556_v3  ;;  %520 = vst [vmem:[#allocation4 + $0x28] sm:$0xff] %v3556_v3 }
  0x76   : > { %521 = vst [vmem:[#allocation4 + $0xa0] sm:$0xff] %v3556_v3  ;;  %522 = vst [vmem:[#allocation4 + $0xf8] sm:$0xff] %v3556_v3 }
  0x77   : > { %523 = vst [vmem:[#allocation4 + $0x20] sm:$0xff] %v3556_v3  ;;  %524 = vst [vmem:[#allocation4 + $0x98] sm:$0xff] %v3556_v3 }
  0x78 PF: > { %v3870_v4 = vld [vmem:[%s3730_s12 + $0x10] sm:$0xff]  ;;  %v3873_v5 = vld [vmem:[%s3730_s12] sm:$0xff]  ;;  %v3557_v6 = vmov 0   ;;  %v3880_v7 = vld [vmem:[%s3730_s12 + $0x18] sm:$0xff]  ;;  %v3558_v13 = vmov 1   ;;  %v3559_v14 = vmov 2   ;;  %v5047_v16 = vlaneseq }
  0x79   : > { %3212 = vset.pattern.permute.xlu1 %v3557_v6  ;;  %3211 = vset.pattern.permute.xlu0 %v3557_v6  ;;  %v3883_v8 = vld [vmem:[%s3730_s12 + $0x8] sm:$0xff]  ;;  %v3889_v10 = vld [vmem:[%s3730_s12 + $0x20] sm:$0xff]  ;;  %v3896_v11 = vld [vmem:[%s3730_s12 + $0x38] sm:$0xff]  ;;  %v3560_v15 = vmov 3   ;;  %p2951_p8 = scmp.ne.s32.totalorder %s3537_s10, 1 }
  0x7a   : > { %596 = vperm.xlu1 %3212, %v3870_v4   ;;  %586 = vperm.xlu0 %3211, %v3873_v5   ;;  %v3886_v9 = vld [vmem:[%s3730_s12 + $0x28] sm:$0xff]  ;;  %v3899_v12 = vld [vmem:[%s3730_s12 + $0x30] sm:$0xff]  ;;  %v3916_v18 = vshrl.u32 %v5047_v16, 7  ;;  %v3922_v22 = vld [vmem:[%s3725_s13] sm:$0xf] }
  0x7b   : > { %v525_v17 = vld [vmem:[%s360_s24] sm:$0xff]  ;;  %v526_v21 = vld [vmem:[%s360_s24 + $0x8] sm:$0xff] }
  0x7c   : > { %v527_v19 = vunpack.c.0.s8 %v525_v17  ;;  %v626_v20 = vsub.s32 0, %v3916_v18  ;;  %v528_v24 = vunpack.c.1.s8 %v525_v17  ;;  %v529_v25 = vunpack.c.2.s8 %v525_v17 }
  0x7d   : > { %v531_v26 = vunpack.c.0.s8 %v526_v21  ;;  %v530_v28 = vunpack.c.3.s8 %v525_v17  ;;  %v532_v35 = vunpack.c.1.s8 %v526_v21  ;;  %v533_v42 = vunpack.c.2.s8 %v526_v21 }
  0x7e   : > { %601 = vperm.xlu1 %3212, %v3880_v7   ;;  %591 = vperm.xlu0 %3211, %v3883_v8   ;;  %v535_v23 = vcvt.s32.f32 %v527_v19  ;;  %v3925_v27 = vrot.slane %v3922_v22, %v626_v20  ;;  %v536_v30 = vcvt.s32.f32 %v528_v24  ;;  %v537_v31 = vcvt.s32.f32 %v529_v25 }
  0x7f   : > { %v539_v34 = vcvt.s32.f32 %v531_v26  ;;  %v538_v38 = vcvt.s32.f32 %v530_v28  ;;  %v540_v48 = vcvt.s32.f32 %v532_v35  ;;  %v534_v49 = vunpack.c.3.s8 %v526_v21 }
  0x80   : > { %v2935_v29 = vadd.f32 -1.0, %v535_v23  ;;  %v2936_v40 = vadd.f32 -1.0, %v536_v30  ;;  %v2937_v41 = vadd.f32 -1.0, %v537_v31  ;;  %v541_v57 = vcvt.s32.f32 %v533_v42 }
  0x81   : > { %v2939_v47 = vadd.f32 -1.0, %v539_v34  ;;  %v2938_v53 = vadd.f32 -1.0, %v538_v38  ;;  %v2940_v0 = vadd.f32 -1.0, %v540_v48  ;;  %v542_v1 = vcvt.s32.f32 %v534_v49 }
  0x82   : > { %611 = vperm.xlu1 %3212, %v3886_v9   ;;  %606 = vperm.xlu0 %3211, %v3889_v10   ;;  %v3929_v39 = vmul.f32 1e+30, %v2935_v29  ;;  %v3936_v55 = vmul.f32 1e+30, %v2936_v40  ;;  %v3938_v56 = vmul.f32 1e+30, %v2937_v41 }
  0x83   : > { %v3941_v63 = vmul.f32 1e+30, %v2939_v47  ;;  %v3945_v17 = vmul.f32 1e+30, %v2938_v53  ;;  %v1068_v21 = vsub.s32 1, %v3916_v18  ;;  %v2941_v23 = vadd.f32 -1.0, %v541_v57 }
  0x84   : > { %v3956_v30 = vmul.f32 1e+30, %v2940_v0  ;;  %v2942_v34 = vadd.f32 -1.0, %v542_v1 }
  0x85   : > { %v3967_v38 = vmul.f32 1e+30, %v2941_v23 }
  0x86   : > { %621 = vperm.xlu1 %3212, %v3896_v11   ;;  %616 = vperm.xlu0 %3211, %v3899_v12  }
  0x8a   : > { %3214 = vset.pattern.permute.xlu1 %v3558_v13  ;;  %3213 = vset.pattern.permute.xlu0 %v3558_v13 }
  0x8b   : > { %1039 = vperm.xlu1 %3214, %v3883_v8   ;;  %1035 = vperm.xlu0 %3213, %v3873_v5  }
  0x8f   : > { %1043 = vperm.xlu1 %3214, %v3870_v4   ;;  %1047 = vperm.xlu0 %3213, %v3880_v7  }
  0x93   : > { %1051 = vperm.xlu1 %3214, %v3889_v10   ;;  %1055 = vperm.xlu0 %3213, %v3886_v9  }
  0x97   : > { %1059 = vperm.xlu1 %3214, %v3899_v12   ;;  %1063 = vperm.xlu0 %3213, %v3896_v11  }
  0x9b   : > { %3215 = vset.pattern.permute.xlu1 %v3559_v14  ;;  %3220 = vset.pattern.permute.xlu0 %v3560_v15 }
  0xf5   : > { %v597_v32 = vpop.permute.xlu1 %596  ;;  %v587_v33 = vpop.permute.xlu0 %586 }
  0xf6   : > { %v630_v36 = vadd.f32 %v3925_v27, %v597_v32  ;;  %v628_v37 = vadd.f32 %v3925_v27, %v587_v33 }
  0xf8   : > { %v646_v43 = vmul.f32 0.2, %v630_v36  ;;  %v644_v44 = vmul.f32 0.2, %v628_v37  ;;  %vm636_vm1 = vcmp.gt.f32.partialorder %v628_v37, 0.0  ;;  %vm638_vm2 = vcmp.gt.f32.partialorder %v630_v36, 0.0 }
  0xf9   : > { %v602_v45 = vpop.permute.xlu1 %601  ;;  %v592_v46 = vpop.permute.xlu0 %591 }
  0xfa   : > { %v631_v50 = vadd.f32 %v3925_v27, %v602_v45  ;;  %v629_v51 = vadd.f32 %v3925_v27, %v592_v46  ;;  %v652_v52 = vsel %vm636_vm1, %v628_v37, %v644_v44  ;;  %v654_v60 = vsel %vm638_vm2, %v630_v36, %v646_v43 }
  0xfb   : > { %v3934_v54 = vadd.f32 %v652_v52, %v3929_v39  ;;  %v3951_v20 = vadd.f32 %v654_v60, %v3938_v56  ;;  %v1069_v37 = vrot.slane %v3922_v22, %v1068_v21  ;;  %v3971_v45 = vmul.f32 1e+30, %v2942_v34 }
  0xfc   : > { %v647_v58 = vmul.f32 0.2, %v631_v50  ;;  %v645_v59 = vmul.f32 0.2, %v629_v51  ;;  %vm637_vm3 = vcmp.gt.f32.partialorder %v629_v51, 0.0  ;;  %vm639_vm4 = vcmp.gt.f32.partialorder %v631_v50, 0.0 }
  0xfd   : > { %v612_v61 = vpop.permute.xlu1 %611  ;;  %v607_v62 = vpop.permute.xlu0 %606  ;;  %676 = vmax.xlane.f32.xlu0 %v3934_v54  ;;  %vm828_vm1 = vcmask 7168  }
  0xfe   : > { %v633_v2 = vadd.f32 %v3925_v27, %v612_v61  ;;  %v632_v3 = vadd.f32 %v3925_v27, %v607_v62  ;;  %v653_v13 = vsel %vm637_vm3, %v629_v51, %v645_v59  ;;  %v655_v26 = vsel %vm639_vm4, %v631_v50, %v647_v58 }
  0xff   : > { %v3948_v19 = vadd.f32 %v653_v13, %v3936_v55  ;;  %v3964_v36 = vadd.f32 %v655_v26, %v3945_v17 }
 0x100   : > { %v649_v24 = vmul.f32 0.2, %v633_v2  ;;  %v648_v25 = vmul.f32 0.2, %v632_v3  ;;  %vm640_vm5 = vcmp.gt.f32.partialorder %v632_v3, 0.0  ;;  %vm641_vm6 = vcmp.gt.f32.partialorder %v633_v2, 0.0 }
 0x101   : > { %v622_v28 = vpop.permute.xlu1 %621  ;;  %v617_v29 = vpop.permute.xlu0 %616  ;;  %678 = vmax.xlane.f32.xlu1 %v3948_v19  ;;  %680 = vmax.xlane.f32.xlu0 %v3951_v20 }
 0x102   : > { %v635_v31 = vadd.f32 %v3925_v27, %v622_v28  ;;  %v634_v32 = vadd.f32 %v3925_v27, %v617_v29  ;;  %v656_v33 = vsel %vm640_vm5, %v632_v3, %v648_v25  ;;  %v657_v42 = vsel %vm641_vm6, %v633_v2, %v649_v24 }
 0x103   : > { %v3961_v35 = vadd.f32 %v656_v33, %v3941_v63  ;;  %v3977_v49 = vadd.f32 %v657_v42, %v3956_v30 }
 0x104   : > { %v651_v40 = vmul.f32 0.2, %v635_v31  ;;  %v650_v41 = vmul.f32 0.2, %v634_v32  ;;  %vm642_vm7 = vcmp.gt.f32.partialorder %v634_v32, 0.0  ;;  %vm643_vm8 = vcmp.gt.f32.partialorder %v635_v31, 0.0 }
 0x105   : > { %684 = vmax.xlane.f32.xlu1 %v3961_v35  ;;  %682 = vmax.xlane.f32.xlu0 %v3964_v36 }
 0x106   : > { %v1040_v27 = vpop.permute.xlu1 %1039  ;;  %v1036_v43 = vpop.permute.xlu0 %1035  ;;  %v658_v44 = vsel %vm642_vm7, %v634_v32, %v650_v41  ;;  %v659_v50 = vsel %vm643_vm8, %v635_v31, %v651_v40 }
 0x107   : > { %v1071_v46 = vadd.f32 %v1069_v37, %v1040_v27  ;;  %v1070_v47 = vadd.f32 %v1069_v37, %v1036_v43  ;;  %v3974_v48 = vadd.f32 %v658_v44, %v3967_v38  ;;  %v3982_v60 = vadd.f32 %v659_v50, %v3971_v45 }
 0x109   : > { %v1087_v51 = vmul.f32 0.2, %v1071_v46  ;;  %v1086_v52 = vmul.f32 0.2, %v1070_v47  ;;  %688 = vmax.xlane.f32.xlu1 %v3974_v48  ;;  %686 = vmax.xlane.f32.xlu0 %v3977_v49  ;;  %vm1078_vm9 = vcmp.gt.f32.partialorder %v1070_v47, 0.0  ;;  %vm1079_vm10 = vcmp.gt.f32.partialorder %v1071_v46, 0.0 }
 0x10a   : > { %v1044_v53 = vpop.permute.xlu1 %1043  ;;  %v1048_v57 = vpop.permute.xlu0 %1047 }
 0x10b   : > { %v1072_v58 = vadd.f32 %v1069_v37, %v1044_v53  ;;  %v1073_v59 = vadd.f32 %v1069_v37, %v1048_v57  ;;  %v1094_v61 = vsel %vm1078_vm9, %v1070_v47, %v1086_v52  ;;  %v1095_v0 = vsel %vm1079_vm10, %v1071_v46, %v1087_v51  ;;  %v672_v57 = vld [vmem:[#allocation2 + $0x20] sm:$0xff] }
 0x10c   : > { %v3985_v62 = vadd.f32 %v1094_v61, %v3929_v39  ;;  %v3990_v24 = vadd.f32 %v1095_v0, %v3936_v55 }
 0x10d   : > { %v1088_v1 = vmul.f32 0.2, %v1072_v58  ;;  %v1089_v2 = vmul.f32 0.2, %v1073_v59  ;;  %690 = vmax.xlane.f32.xlu0 %v3982_v60  ;;  %vm1081_vm11 = vcmp.gt.f32.partialorder %v1073_v59, 0.0  ;;  %vm1080_vm12 = vcmp.gt.f32.partialorder %v1072_v58, 0.0 }
 0x10e   : > { %v1052_v3 = vpop.permute.xlu1 %1051  ;;  %v1056_v13 = vpop.permute.xlu0 %1055  ;;  %1119 = vmax.xlane.f32.xlu1 %v3985_v62 }
 0x10f   : > { %v1074_v21 = vadd.f32 %v1069_v37, %v1052_v3  ;;  %v1075_v23 = vadd.f32 %v1069_v37, %v1056_v13  ;;  %v1097_v25 = vsel %vm1081_vm11, %v1073_v59, %v1089_v2  ;;  %v1096_v28 = vsel %vm1080_vm12, %v1072_v58, %v1088_v1  ;;  %v4077_v58 = vld [vmem:[#allocation2 + $0x18] sm:$0xff]  ;;  %v4080_v59 = vld [vmem:[%s3735_s17 + $0x20] sm:$0xff]  }
 0x110   : > { %v3993_v26 = vadd.f32 %v1097_v25, %v3945_v17  ;;  %v3998_v41 = vadd.f32 %v1096_v28, %v3938_v56  ;;  %v4096_v25 = vld [vmem:[%s3735_s17 + $0x18] sm:$0xff]  }
 0x111   : > { %v1090_v29 = vmul.f32 0.2, %v1074_v21  ;;  %v1091_v31 = vmul.f32 0.2, %v1075_v23  ;;  %1121 = vmax.xlane.f32.xlu0 %v3990_v24  ;;  %vm1083_vm13 = vcmp.gt.f32.partialorder %v1075_v23, 0.0  ;;  %vm1082_vm14 = vcmp.gt.f32.partialorder %v1074_v21, 0.0 }
 0x112   : > { %v1060_v32 = vpop.permute.xlu1 %1059  ;;  %v1064_v33 = vpop.permute.xlu0 %1063  ;;  %1125 = vmax.xlane.f32.xlu1 %v3993_v26 }
 0x113   : > { %v1076_v34 = vadd.f32 %v1069_v37, %v1060_v32  ;;  %v1077_v40 = vadd.f32 %v1069_v37, %v1064_v33  ;;  %v1099_v42 = vsel %vm1083_vm13, %v1075_v23, %v1091_v31  ;;  %v1098_v43 = vsel %vm1082_vm14, %v1074_v21, %v1090_v29  ;;  %v674_v21 = vld [vmem:[#allocation2 + $0x30] sm:$0xff]  ;;  %v4093_v23 = vld [vmem:[#allocation2 + $0x28] sm:$0xff] }
 0x114   : > { %v4001_v27 = vadd.f32 %v1099_v42, %v3956_v30  ;;  %v4006_v47 = vadd.f32 %v1098_v43, %v3941_v63  ;;  %v4112_v42 = vld [vmem:[%s3735_s17 + $0x10] sm:$0xff]  }
 0x115   : > { %v1092_v44 = vmul.f32 0.2, %v1076_v34  ;;  %v1093_v46 = vmul.f32 0.2, %v1077_v40  ;;  %1123 = vmax.xlane.f32.xlu0 %v3998_v41  ;;  %vm1085_vm15 = vcmp.gt.f32.partialorder %v1077_v40, 0.0  ;;  %vm1084_vm0 = vcmp.gt.f32.partialorder %v1076_v34, 0.0 }
 0x116   : > { %1129 = vmax.xlane.f32.xlu1 %v4001_v27 }
 0x117   : > { %v1101_v37 = vsel %vm1085_vm15, %v1077_v40, %v1093_v46  ;;  %v1100_v51 = vsel %vm1084_vm0, %v1076_v34, %v1092_v44  ;;  %v4109_v40 = vld [vmem:[#allocation2 + $0x38] sm:$0xff]  ;;  %v4118_v44 = vld [vmem:[#allocation2 + $0x40] sm:$0xff] }
 0x118   : > { %v4009_v50 = vadd.f32 %v1101_v37, %v3971_v45  ;;  %v4014_v52 = vadd.f32 %v1100_v51, %v3967_v38  ;;  %5096 = vst [vmem:[#allocation19_spill] sm:$0xff] %v4118_v44 }
 0x119   : > { %1127 = vmax.xlane.f32.xlu0 %v4006_v47 }
 0x11a   : > { %1133 = vmax.xlane.f32.xlu1 %v4009_v50 }
 0x11d   : > { %1131 = vmax.xlane.f32.xlu0 %v4014_v52 }
 0x12b   : > { %1435 = vperm.xlu1 %3215, %v3883_v8  }
 0x12f   : > { %3216 = vset.pattern.permute.xlu1 %v3560_v15 }
 0x130   : > { %1827 = vperm.xlu1 %3216, %v3873_v5  }
 0x133   : > { %1843 = vperm.xlu0 %3220, %v3889_v10  }
 0x134   : > { %1831 = vperm.xlu1 %3216, %v3883_v8  }
 0x137   : > { %3221 = vset.pattern.permute.xlu0 %v3559_v14 }
 0x138   : > { %3217 = vset.pattern.permute.xlu1 %v3559_v14  ;;  %1431 = vperm.xlu0 %3221, %v3873_v5   ;;  %v4050_v5 = vld [vmem:[#allocation2] sm:$0xff] }
 0x139   : > { %1439 = vperm.xlu1 %3217, %v3870_v4  }
 0x13c   : > { %1447 = vperm.xlu0 %3221, %v3889_v10   ;;  %v669_v10 = vld [vmem:[#allocation2 + $0x8] sm:$0xff] }
 0x13d   : > { %1443 = vperm.xlu1 %3217, %v3880_v7  }
 0x140   : > { %1459 = vperm.xlu0 %3221, %v3896_v11  }
 0x141   : > { %3218 = vset.pattern.permute.xlu1 %v3560_v15 }
 0x142   : > { %1835 = vperm.xlu1 %3218, %v3870_v4   ;;  %v4042_v4 = vld [vmem:[%s3735_s17 + $0x38] sm:$0xff]  }
 0x143   : > { %3018 = vmatprep.subr.bf16.mxu0 %v4042_v4  ;;  %3042 = vmatprep.subr.bf16.mxu1 %v4042_v4 }
 0x144   : > { %3226 = vset.pattern.permute.xlu0 %v3557_v6  ;;  %3019 = vmatpush3.bf16.msra.mxu0 %v4042_v4 }
 0x145   : > { %3043 = vmatpush3.bf16.msra.mxu1 %v4042_v4 }
 0x146   : > { %1839 = vperm.xlu1 %3218, %v3880_v7   ;;  %v4053_v7 = vld [vmem:[%s3735_s17 + $0x30] sm:$0xff]  }
 0x147   : > { %3020 = vmatprep.subr.bf16.mxu0 %v4053_v7  ;;  %3044 = vmatprep.subr.bf16.mxu1 %v4053_v7 }
 0x148   : > { %3021 = vmatpush3.bf16.msra.mxu0 %v4053_v7 }
 0x149   : > { %3045 = vmatpush3.bf16.msra.mxu1 %v4053_v7 }
 0x14a   : > { %3219 = vset.pattern.permute.xlu1 %v3559_v14 }
 0x14b   : > { %1451 = vperm.xlu1 %3219, %v3886_v9  }
 0x14f   : > { %3222 = vset.pattern.permute.xlu1 %v3560_v15 }
 0x150   : > { %1847 = vperm.xlu1 %3222, %v3886_v9  }
 0x154   : > { %3223 = vset.pattern.permute.xlu1 %v3559_v14 }
 0x155   : > { %1455 = vperm.xlu1 %3223, %v3899_v12  }
 0x159   : > { %3224 = vset.pattern.permute.xlu1 %v3560_v15 }
 0x15a   : > { %1851 = vperm.xlu1 %3224, %v3899_v12  }
 0x15e   : > { %1855 = vperm.xlu1 %3224, %v3896_v11   ;;  %v4065_v11 = vld [vmem:[%s3735_s17 + $0x28] sm:$0xff]  }
 0x15f   : > { %3022 = vmatprep.subr.bf16.mxu0 %v4065_v11  ;;  %3046 = vmatprep.subr.bf16.mxu1 %v4065_v11 }
 0x160   : > { %3023 = vmatpush3.bf16.msra.mxu0 %v4065_v11  ;;  %3047 = vmatpush3.bf16.msra.mxu1 %v4065_v11 }
 0x161   : > { %3024 = vmatprep.subr.bf16.mxu0 %v4080_v59  ;;  %3048 = vmatprep.subr.bf16.mxu1 %v4080_v59 }
 0x162   : > { %3225 = vset.pattern.permute.xlu1 %v3557_v6  ;;  %v4062_v6 = vld [vmem:[#allocation2 + $0x10] sm:$0xff] }
 0x164   : > { %3025 = vmatpush3.bf16.msra.mxu0 %v4080_v59  ;;  %3049 = vmatpush3.bf16.msra.mxu1 %v4080_v59 }
 0x165   : > { %3026 = vmatprep.subr.bf16.mxu0 %v4096_v25  ;;  %3050 = vmatprep.subr.bf16.mxu1 %v4096_v25 }
 0x168   : > { %3027 = vmatpush3.bf16.msra.mxu0 %v4096_v25  ;;  %3051 = vmatpush3.bf16.msra.mxu1 %v4096_v25 }
 0x169   : > { %3028 = vmatprep.subr.bf16.mxu0 %v4112_v42  ;;  %3052 = vmatprep.subr.bf16.mxu1 %v4112_v42 }
 0x16c   : > { %3029 = vmatpush3.bf16.msra.mxu0 %v4112_v42  ;;  %3053 = vmatpush3.bf16.msra.mxu1 %v4112_v42 }
 0x186   : > { %v677_v8 = vpop.xlane.xlu0 %676 }
 0x187   : > { %v4058_v9 = vmax.f32 %v4050_v5, %v677_v8 }
 0x189   : > { %1026 = vst.msk [vmem:[#allocation2] sm:$0xff] %vm828_vm1, %v4058_v9  ;;  %726 = vperm.xlu1 %3225, %v4058_v9  }
 0x18a   : > { %v679_v12 = vpop.xlane.xlu1 %678  ;;  %v681_v14 = vpop.xlane.xlu0 %680 }
 0x18b   : > { %v693_v15 = vmax.f32 %v669_v10, %v679_v12  ;;  %v4073_v53 = vmax.f32 %v4062_v6, %v681_v14  ;;  %v4130_v12 = vld [vmem:[#allocation2 + $0x48] sm:$0xff] }
 0x18c   : > { %5098 = vst [vmem:[#allocation21_spill] sm:$0xff] %v4130_v12  ;;  %v4133_v14 = vld [vmem:[%s3735_s17 + $0x8] sm:$0xff]  }
 0x18d   : > { %v701_v61 = vsub.f32 %v669_v10, %v693_v15  ;;  %1027 = vst.msk [vmem:[#allocation2 + $0x8] sm:$0xff] %vm828_vm1, %v693_v15  ;;  %1028 = vst.msk [vmem:[#allocation2 + $0x10] sm:$0xff] %vm828_vm1, %v4073_v53  ;;  %731 = vperm.xlu0 %3226, %v693_v15   ;;  %736 = vperm.xlu1 %3225, %v4073_v53   ;;  %v4138_v15 = vld [vmem:[#allocation2 + $0x58] sm:$0xff] }
 0x18e   : > { %v685_v0 = vpop.xlane.xlu1 %684  ;;  %v683_v1 = vpop.xlane.xlu0 %682  ;;  %5099 = vst [vmem:[#allocation22_spill] sm:$0xff] %v4138_v15  ;;  %3030 = vmatprep.subr.bf16.mxu0 %v4133_v14  ;;  %3054 = vmatprep.subr.bf16.mxu1 %v4133_v14 }
 0x18f   : > { %v710_v2 = vmul.f32 1.442695, %v701_v61  ;;  %v696_v3 = vmax.f32 %v672_v57, %v685_v0  ;;  %v4089_v13 = vmax.f32 %v4077_v58, %v683_v1  ;;  %3031 = vmatpush3.bf16.msra.mxu0 %v4133_v14  ;;  %3055 = vmatpush3.bf16.msra.mxu1 %v4133_v14 }
 0x191   : > { %3235 = vpow2.f32 %v710_v2  ;;  %v704_v28 = vsub.f32 %v672_v57, %v696_v3  ;;  %1030 = vst.msk [vmem:[#allocation2 + $0x20] sm:$0xff] %vm828_vm1, %v696_v3  ;;  %1029 = vst.msk [vmem:[#allocation2 + $0x18] sm:$0xff] %vm828_vm1, %v4089_v13  ;;  %746 = vperm.xlu0 %3226, %v696_v3   ;;  %741 = vperm.xlu1 %3225, %v4089_v13   ;;  %v4154_v3 = vld [vmem:[#allocation2 + $0x50] sm:$0xff] }
 0x192   : > { %v689_v29 = vpop.xlane.xlu1 %688  ;;  %v687_v31 = vpop.xlane.xlu0 %686  ;;  %5102 = vst [vmem:[#allocation25_spill] sm:$0xff] %v4154_v3 }
 0x193   : > { %v716_v32 = vmul.f32 1.442695, %v704_v28  ;;  %v698_v33 = vmax.f32 %v674_v21, %v689_v29  ;;  %v4105_v34 = vmax.f32 %v4093_v23, %v687_v31  ;;  %v4165_v29 = vld [vmem:[#allocation2 + $0x68] sm:$0xff] }
 0x194   : > { %5103 = vst [vmem:[#allocation26_spill] sm:$0xff] %v4165_v29 }
 0x195   : > { %3237 = vpow2.f32 %v716_v32  ;;  %v706_v43 = vsub.f32 %v674_v21, %v698_v33  ;;  %1032 = vst.msk [vmem:[#allocation2 + $0x30] sm:$0xff] %vm828_vm1, %v698_v33  ;;  %1031 = vst.msk [vmem:[#allocation2 + $0x28] sm:$0xff] %vm828_vm1, %v4105_v34  ;;  %756 = vperm.xlu0 %3226, %v698_v33   ;;  %751 = vperm.xlu1 %3225, %v4105_v34   ;;  %v4157_v21 = vld [vmem:[%s3735_s17] sm:$0xff]   ;;  %v700_v32 = vsub.f32 %v4050_v5, %v4058_v9 }
 0x196   : > { %v691_v46 = vpop.xlane.xlu0 %690  ;;  %3032 = vmatprep.subr.bf16.mxu0 %v4157_v21  ;;  %3056 = vmatprep.subr.bf16.mxu1 %v4157_v21 }
 0x197   : > { %v720_v37 = vmul.f32 1.442695, %v706_v43  ;;  %v4123_v51 = vmax.f32 %v4109_v40, %v691_v46  ;;  %v1120_v8 = vpop.xlane.xlu1 %1119  ;;  %3033 = vmatpush3.bf16.msra.mxu0 %v4157_v21  ;;  %3057 = vmatpush3.bf16.msra.mxu1 %v4157_v21 }
 0x198   : > { %v4128_v10 = vmax.f32 %v4118_v44, %v1120_v8  ;;  %v4183_v8 = vld [vmem:[#allocation2 + $0x60] sm:$0xff]  ;;  %3066 = vmatprep.subr.bf16.mxu0 %v4042_v4  ;;  %3090 = vmatprep.subr.bf16.mxu1 %v4042_v4 }
 0x199   : > { %3239 = vpow2.f32 %v720_v37  ;;  %1033 = vst.msk [vmem:[#allocation2 + $0x38] sm:$0xff] %vm828_vm1, %v4123_v51  ;;  %761 = vperm.xlu1 %3225, %v4123_v51   ;;  %5107 = vst [vmem:[#allocation30_spill] sm:$0xff] %v4183_v8 }
 0x19a   : > { %5097 = vst [vmem:[#allocation20_spill] sm:$0xff] %v4128_v10  ;;  %1422 = vst.msk [vmem:[#allocation2 + $0x40] sm:$0xff] %vm828_vm1, %v4128_v10  ;;  %1169 = vperm.xlu0 %3226, %v4128_v10   ;;  %v1122_v61 = vpop.xlane.xlu0 %1121 }
 0x19b   : > { %v4147_v0 = vmax.f32 %v4130_v12, %v1122_v61  ;;  %v1126_v1 = vpop.xlane.xlu1 %1125 }
 0x19c   : > { %v4152_v2 = vmax.f32 %v4138_v15, %v1126_v1  ;;  %v4192_v1 = vld [vmem:[#allocation2 + $0x78] sm:$0xff]  ;;  %v4210_v15 = vld [vmem:[#allocation2 + $0x70] sm:$0xff] }
 0x19d   : > { %5100 = vst [vmem:[#allocation23_spill] sm:$0xff] %v4147_v0  ;;  %1423 = vst.msk [vmem:[#allocation2 + $0x48] sm:$0xff] %vm828_vm1, %v4147_v0  ;;  %1174 = vperm.xlu1 %3225, %v4147_v0  }
 0x19e   : > { %5101 = vst [vmem:[#allocation24_spill] sm:$0xff] %v4152_v2  ;;  %v4167_v31 = vpop.eup %3235  ;;  %1425 = vst.msk [vmem:[#allocation2 + $0x58] sm:$0xff] %vm828_vm1, %v4152_v2  ;;  %v1124_v33 = vpop.xlane.xlu0 %1123 }
 0x19f   : > { %5104 = vst [vmem:[#allocation27_spill] sm:$0xff] %v4167_v31  ;;  %v4176_v43 = vmax.f32 %v4154_v3, %v1124_v33  ;;  %v1130_v46 = vpop.xlane.xlu1 %1129  ;;  %852 = vperm.xlu0 %3226, %v4167_v31   ;;  %5108 = vst [vmem:[#allocation31_spill] sm:$0xff] %v4192_v1 }
 0x1a0   : > { %v4181_v37 = vmax.f32 %v4165_v29, %v1130_v46  ;;  %5112 = vst [vmem:[#allocation35_spill] sm:$0xff] %v4210_v15  ;;  %v702_v29 = vsub.f32 %v4062_v6, %v4073_v53 }
 0x1a1   : > { %5105 = vst [vmem:[#allocation28_spill] sm:$0xff] %v4176_v43  ;;  %1424 = vst.msk [vmem:[#allocation2 + $0x50] sm:$0xff] %vm828_vm1, %v4176_v43  ;;  %1179 = vperm.xlu1 %3225, %v4176_v43  }
 0x1a2   : > { %5106 = vst [vmem:[#allocation29_spill] sm:$0xff] %v4181_v37  ;;  %v4195_v33 = vpop.eup %3237  ;;  %1427 = vst.msk [vmem:[#allocation2 + $0x68] sm:$0xff] %vm828_vm1, %v4181_v37  ;;  %v1128_v16 = vpop.xlane.xlu0 %1127 }
 0x1a3   : > { %5109 = vst [vmem:[#allocation32_spill] sm:$0xff] %v4195_v33  ;;  %v4204_v61 = vmax.f32 %v4183_v8, %v1128_v16  ;;  %v1134_v28 = vpop.xlane.xlu1 %1133  ;;  %867 = vperm.xlu0 %3226, %v4195_v33   ;;  %v712_v16 = vmul.f32 1.442695, %v702_v29  ;;  %v1464_v8 = vsub.s32 2, %v3916_v18  ;;  %v707_v29 = vsub.f32 %v4109_v40, %v4123_v51 }
 0x1a4   : > { %v4208_v57 = vmax.f32 %v4192_v1, %v1134_v28  ;;  %v708_v28 = vmul.f32 1.442695, %v700_v32  ;;  %v703_v32 = vsub.f32 %v4077_v58, %v4089_v13 }
 0x1a5   : > { %5110 = vst [vmem:[#allocation33_spill] sm:$0xff] %v4204_v61  ;;  %1426 = vst.msk [vmem:[#allocation2 + $0x60] sm:$0xff] %vm828_vm1, %v4204_v61  ;;  %1184 = vperm.xlu1 %3225, %v4152_v2   ;;  %v4247_v58 = vrot.slane %v3922_v22, %v1464_v8  ;;  %v722_v13 = vmul.f32 1.442695, %v707_v29 }
 0x1a6   : > { %5111 = vst [vmem:[#allocation34_spill] sm:$0xff] %v4208_v57  ;;  %v4217_v5 = vpop.eup %3239  ;;  %1429 = vst.msk [vmem:[#allocation2 + $0x78] sm:$0xff] %vm828_vm1, %v4208_v57  ;;  %v1132_v9 = vpop.xlane.xlu0 %1131  ;;  %3241 = vpow2.f32 %v708_v28  ;;  %v714_v53 = vmul.f32 1.442695, %v703_v32 }
 0x1a7   : > { %5113 = vst [vmem:[#allocation36_spill] sm:$0xff] %v4217_v5  ;;  %v4226_v46 = vmax.f32 %v4210_v15, %v1132_v9  ;;  %877 = vperm.xlu0 %3226, %v4217_v5   ;;  %3243 = vpow2.f32 %v712_v16  ;;  %v705_v9 = vsub.f32 %v4093_v23, %v4105_v34  ;;  %v4258_v8 = vpop.permute.xlu1 %1435 }
 0x1a8   : > { %3245 = vpow2.f32 %v714_v53 }
 0x1a9   : > { %5114 = vst [vmem:[#allocation37_spill] sm:$0xff] %v4226_v46  ;;  %1428 = vst.msk [vmem:[#allocation2 + $0x70] sm:$0xff] %vm828_vm1, %v4226_v46  ;;  %1189 = vperm.xlu1 %3225, %v4204_v61   ;;  %v718_v1 = vmul.f32 1.442695, %v705_v9 }
 0x1ab   : > { %3247 = vpow2.f32 %v718_v1  ;;  %v4267_v9 = vpop.permute.xlu1 %1827 }
 0x1ac   : > { %3249 = vpow2.f32 %v722_v13 }
 0x1ad   : > { %1194 = vperm.xlu1 %3225, %v4181_v37  }
 0x1ae   : > { %v4237_v6 = vpop.permute.xlu0 %1843 }
 0x1b1   : > { %1199 = vperm.xlu1 %3225, %v4226_v46  }
 0x1b3   : > { %v1432_v28 = vpop.permute.xlu0 %1431  ;;  %v4250_v23 = vpop.eup %3241 }
 0x1b4   : > { %v1466_v16 = vadd.f32 %v4247_v58, %v1432_v28  ;;  %5115 = vst [vmem:[#allocation38_spill] sm:$0xff] %v4250_v23  ;;  %v4253_v32 = vpop.eup %3243  ;;  %v4273_v28 = vpop.permute.xlu1 %1831 }
 0x1b5   : > { %1204 = vperm.xlu1 %3225, %v4208_v57   ;;  %5116 = vst [vmem:[#allocation39_spill] sm:$0xff] %v4253_v32  ;;  %v4256_v51 = vpop.eup %3245 }
 0x1b6   : > { %v1482_v34 = vmul.f32 0.2, %v1466_v16  ;;  %vm1474_vm2 = vcmp.gt.f32.partialorder %v1466_v16, 0.0  ;;  %5117 = vst [vmem:[#allocation40_spill] sm:$0xff] %v4256_v51 }
 0x1b7   : > { %v4291_v37 = vpop.permute.xlu0 %1447 }
 0x1b8   : > { %v1490_v40 = vsel %vm1474_vm2, %v1466_v16, %v1482_v34  ;;  %v4264_v53 = vpop.eup %3247  ;;  %v4275_v13 = vpop.permute.xlu1 %1439 }
 0x1b9   : > { %847 = vperm.xlu1 %3225, %v4250_v23   ;;  %v4262_v1 = vadd.f32 %v1490_v40, %v3929_v39  ;;  %5119 = vst [vmem:[#allocation42_spill] sm:$0xff] %v4264_v53  ;;  %v4270_v29 = vpop.eup %3249 }
 0x1ba   : > { %5120 = vst [vmem:[#allocation43_spill] sm:$0xff] %v4270_v29 }
 0x1bb   : > { %5118 = vst [vmem:[#allocation41_spill] sm:$0xff] %v4262_v1  ;;  %v4295_v5 = vpop.permute.xlu0 %1459 }
 0x1bc   : > { %v4277_v16 = vpop.permute.xlu1 %1443 }
 0x1bd   : > { %857 = vperm.xlu1 %3225, %v4253_v32  }
 0x1c0   : > { %v4279_v34 = vpop.permute.xlu1 %1835 }
 0x1c1   : > { %862 = vperm.xlu1 %3225, %v4256_v51  }
 0x1c4   : > { %v4281_v40 = vpop.permute.xlu1 %1839 }
 0x1c5   : > { %872 = vperm.xlu1 %3225, %v4264_v53  }
 0x1c6   : > { %1515 = vmax.xlane.f32.xlu0 %v4262_v1 }
 0x1c8   : > { %v4283_v57 = vpop.permute.xlu1 %1451 }
 0x1c9   : > { %882 = vperm.xlu1 %3225, %v4270_v29  }
 0x1cc   : > { %v4285_v46 = vpop.permute.xlu1 %1847 }
 0x1d0   : > { %v4287_v15 = vpop.permute.xlu1 %1455 }
 0x1d5   : > { %v4289_v1 = vpop.permute.xlu1 %1851 }
 0x1d9   : > { %v4293_v29 = vpop.permute.xlu1 %1855 }
 0x204   : > { %v727_v53 = vpop.permute.xlu1 %726 }
 0x205   : > { %v764_v61 = vsub.f32 %v3934_v54, %v727_v53 }
 0x207   : > { %v772_v33 = vmul.f32 1.442695, %v764_v61 }
 0x208   : > { %v737_v51 = vpop.permute.xlu1 %736  ;;  %v732_v2 = vpop.permute.xlu0 %731 }
 0x209   : > { %3251 = vpow2.f32 %v772_v33  ;;  %v766_v31 = vsub.f32 %v3951_v20, %v737_v51  ;;  %v765_v32 = vsub.f32 %v3948_v19, %v732_v2 }
 0x20b   : > { %v776_v43 = vmul.f32 1.442695, %v766_v31  ;;  %v774_v3 = vmul.f32 1.442695, %v765_v32 }
 0x20c   : > { %v742_v23 = vpop.permute.xlu1 %741  ;;  %v747_v0 = vpop.permute.xlu0 %746 }
 0x20d   : > { %3253 = vpow2.f32 %v776_v43  ;;  %v767_v12 = vsub.f32 %v3964_v36, %v742_v23  ;;  %v768_v10 = vsub.f32 %v3961_v35, %v747_v0 }
 0x20e   : > { %3255 = vpow2.f32 %v774_v3 }
 0x20f   : > { %v778_v44 = vmul.f32 1.442695, %v767_v12  ;;  %v780_v54 = vmul.f32 1.442695, %v768_v10 }
 0x210   : > { %v752_v61 = vpop.permute.xlu1 %751  ;;  %v757_v53 = vpop.permute.xlu0 %756 }
 0x211   : > { %3257 = vpow2.f32 %v778_v44  ;;  %v769_v33 = vsub.f32 %v3977_v49, %v752_v61  ;;  %v770_v20 = vsub.f32 %v3974_v48, %v757_v53 }
 0x212   : > { %3259 = vpow2.f32 %v780_v54 }
 0x213   : > { %v782_v19 = vmul.f32 1.442695, %v769_v33  ;;  %v784_v2 = vmul.f32 1.442695, %v770_v20 }
 0x214   : > { %v762_v31 = vpop.permute.xlu1 %761 }
 0x215   : > { %3261 = vpow2.f32 %v782_v19  ;;  %v771_v43 = vsub.f32 %v3982_v60, %v762_v31  ;;  %v1170_v36 = vpop.permute.xlu0 %1169 }
 0x216   : > { %v3252_v23 = vpop.eup %3251  ;;  %3263 = vpow2.f32 %v784_v2  ;;  %v1207_v35 = vsub.f32 %v3985_v62, %v1170_v36 }
 0x217   : > { %v786_v10 = vmul.f32 1.442695, %v771_v43  ;;  %804 = vadd.xlane.f32.xlu0 %v3252_v23 }
 0x218   : > { %v1215_v12 = vmul.f32 1.442695, %v1207_v35  ;;  %v1175_v44 = vpop.permute.xlu1 %1174 }
 0x219   : > { %3265 = vpow2.f32 %v786_v10  ;;  %v1208_v49 = vsub.f32 %v3990_v24, %v1175_v44 }
 0x21a   : > { %v3254_v48 = vpop.eup %3253  ;;  %3267 = vpow2.f32 %v1215_v12 }
 0x21b   : > { %v3256_v0 = vpop.eup %3255  ;;  %v1217_v3 = vmul.f32 1.442695, %v1208_v49  ;;  %808 = vadd.xlane.f32.xlu0 %v3254_v48 }
 0x21c   : > { %806 = vadd.xlane.f32.xlu1 %v3256_v0  ;;  %v1180_v32 = vpop.permute.xlu1 %1179  ;;  %v893_v60 = vpack.c.bf16 %v3256_v0, %v3252_v23 }
 0x21d   : > { %3269 = vpow2.f32 %v1217_v3  ;;  %v1209_v51 = vsub.f32 %v3998_v41, %v1180_v32  ;;  %v1860_v32 = vsub.s32 3, %v3916_v18 }
 0x21e   : > { %v3258_v54 = vpop.eup %3257  ;;  %3034 = vmatprep.mubr.bf16.mxu0 %v893_v60 }
 0x21f   : > { %v3260_v62 = vpop.eup %3259  ;;  %v1219_v61 = vmul.f32 1.442695, %v1209_v51  ;;  %810 = vadd.xlane.f32.xlu0 %v3258_v54  ;;  %v894_v53 = vpack.c.bf16 %v3258_v54, %v3254_v48 }
 0x220   : > { %812 = vadd.xlane.f32.xlu1 %v3260_v62  ;;  %v1185_v33 = vpop.permute.xlu1 %1184 }
 0x221   : > { %3271 = vpow2.f32 %v1219_v61  ;;  %v1210_v24 = vsub.f32 %v3993_v26, %v1185_v33  ;;  %3035 = vmatmul.mubr.bf16.vlgmr.msra.gmra.mxu0 %v894_v53 }
 0x222   : > { %v3262_v20 = vpop.eup %3261  ;;  %3067 = vmatpush3.bf16.msra.mxu0 %v4042_v4 }
 0x223   : > { %v3264_v19 = vpop.eup %3263  ;;  %v1221_v2 = vmul.f32 1.442695, %v1210_v24  ;;  %814 = vadd.xlane.f32.xlu0 %v3262_v20  ;;  %v895_v31 = vpack.c.bf16 %v3262_v20, %v3260_v62  ;;  %3068 = vmatprep.subr.bf16.mxu0 %v4053_v7  ;;  %v4323_v62 = vrot.slane %v3922_v22, %v1860_v32  ;;  %v1467_v22 = vadd.f32 %v4247_v58, %v4258_v8 }
 0x224   : > { %816 = vadd.xlane.f32.xlu1 %v3264_v19  ;;  %v1190_v41 = vpop.permute.xlu1 %1189  ;;  %v1468_v8 = vadd.f32 %v4247_v58, %v4275_v13 }
 0x225   : > { %3273 = vpow2.f32 %v1221_v2  ;;  %v1211_v43 = vsub.f32 %v4006_v47, %v1190_v41  ;;  %3038 = vmatprep.mubr.bf16.mxu0 %v895_v31  ;;  %v1862_v53 = vadd.f32 %v4323_v62, %v4267_v9  ;;  %v1483_v9 = vmul.f32 0.2, %v1467_v22  ;;  %v4347_v2 = vpop.permute.xlu0 %852 }
 0x226   : > { %v3266_v36 = vpop.eup %3265  ;;  %3069 = vmatpush3.bf16.msra.mxu0 %v4053_v7  ;;  %vm1475_vm4 = vcmp.gt.f32.partialorder %v1467_v22, 0.0  ;;  %v1484_v31 = vmul.f32 0.2, %v1468_v8  ;;  %vm1476_vm6 = vcmp.gt.f32.partialorder %v1468_v8, 0.0 }
 0x227   : > { %v3268_v26 = vpop.eup %3267  ;;  %v1223_v23 = vmul.f32 1.442695, %v1211_v43  ;;  %818 = vadd.xlane.f32.xlu0 %v3266_v36  ;;  %v896_v35 = vpack.c.bf16 %v3266_v36, %v3264_v19  ;;  %3070 = vmatprep.subr.bf16.mxu0 %v4065_v11  ;;  %v1878_v24 = vmul.f32 0.2, %v1862_v53  ;;  %vm1870_vm3 = vcmp.gt.f32.partialorder %v1862_v53, 0.0 }
 0x228   : > { %v1195_v10 = vpop.permute.xlu1 %1194  ;;  %1248 = vadd.xlane.f32.xlu1 %v3268_v26  ;;  %v1491_v43 = vsel %vm1475_vm4, %v1467_v22, %v1483_v9  ;;  %v1868_v22 = vadd.f32 %v4323_v62, %v4289_v1 }
 0x229   : > { %3275 = vpow2.f32 %v1223_v23  ;;  %v1212_v12 = vsub.f32 %v4001_v27, %v1195_v10  ;;  %3039 = vmatmul.mubr.bf16.gmra.mxu0 %v896_v35  ;;  %v1886_v19 = vsel %vm1870_vm3, %v1862_v53, %v1878_v24  ;;  %v4362_v35 = vpop.permute.xlu0 %867 }
 0x22a   : > { %v3270_v44 = vpop.eup %3269  ;;  %3071 = vmatpush3.bf16.msra.mxu0 %v4065_v11  ;;  %v4351_v13 = vadd.f32 %v1886_v19, %v3929_v39  ;;  %v1470_v39 = vadd.f32 %v4247_v58, %v4291_v37  ;;  %v1866_v37 = vadd.f32 %v4323_v62, %v4237_v6  ;;  %vm1876_vm0 = vcmp.gt.f32.partialorder %v1868_v22, 0.0  ;;  %v5122_v19 = vld [vmem:[#allocation20_spill] sm:$0xff] }
 0x22b   : > { %v1225_v47 = vmul.f32 1.442695, %v1212_v12  ;;  %1250 = vadd.xlane.f32.xlu0 %v3270_v44  ;;  %v1337_v49 = vpack.c.bf16 %v3270_v44, %v3268_v26  ;;  %3072 = vmatprep.subr.bf16.mxu0 %v4080_v59  ;;  %v1864_v26 = vadd.f32 %v4323_v62, %v4279_v34  ;;  %v1471_v44 = vadd.f32 %v4247_v58, %v4283_v57 }
 0x22c   : > { %v1200_v48 = vpop.permute.xlu1 %1199  ;;  %vm1478_vm10 = vcmp.gt.f32.partialorder %v1470_v39, 0.0  ;;  %vm1874_vm12 = vcmp.gt.f32.partialorder %v1866_v37, 0.0 }
 0x22d   : > { %3277 = vpow2.f32 %v1225_v47  ;;  %v1213_v0 = vsub.f32 %v4014_v52, %v1200_v48  ;;  %3058 = vmatprep.mubr.bf16.mxu1 %v1337_v49  ;;  %v1880_v10 = vmul.f32 0.2, %v1864_v26  ;;  %vm1872_vm8 = vcmp.gt.f32.partialorder %v1864_v26, 0.0  ;;  %v4387_v32 = vpop.permute.xlu0 %877 }
 0x22e   : > { %v3272_v3 = vpop.eup %3271  ;;  %3073 = vmatpush3.bf16.msra.mxu0 %v4080_v59  ;;  %v1486_v48 = vmul.f32 0.2, %v1470_v39  ;;  %vm1479_vm11 = vcmp.gt.f32.partialorder %v1471_v44, 0.0 }
 0x22f   : > { %v1227_v27 = vmul.f32 1.442695, %v1213_v0  ;;  %1252 = vadd.xlane.f32.xlu0 %v3272_v3  ;;  %3074 = vmatprep.subr.bf16.mxu0 %v4096_v25 }
 0x230   : > { %v1205_v60 = vpop.permute.xlu1 %1204 }
 0x231   : > { %3279 = vpow2.f32 %v1227_v27  ;;  %v1214_v51 = vsub.f32 %v4009_v50, %v1205_v60  ;;  %v1863_v50 = vadd.f32 %v4323_v62, %v4273_v28  ;;  %v1473_v27 = vadd.f32 %v4247_v58, %v4295_v5 }
 0x232   : > { %v3274_v54 = vpop.eup %3273  ;;  %3075 = vmatpush3.bf16.msra.mxu0 %v4096_v25 }
 0x233   : > { %v1229_v52 = vmul.f32 1.442695, %v1214_v51  ;;  %1254 = vadd.xlane.f32.xlu1 %v3274_v54  ;;  %v1338_v61 = vpack.c.bf16 %v3274_v54, %v3272_v3  ;;  %3076 = vmatprep.subr.bf16.mxu0 %v4112_v42  ;;  %v1879_v20 = vmul.f32 0.2, %v1863_v50  ;;  %vm1871_vm5 = vcmp.gt.f32.partialorder %v1863_v50, 0.0  ;;  %v4400_v51 = vld [vmem:[#allocation2 + $0x80] sm:$0xff] }
 0x234   : > { %v1888_v3 = vsel %vm1872_vm8, %v1864_v26, %v1880_v10  ;;  %v1472_v54 = vadd.f32 %v4247_v58, %v4287_v15  ;;  %vm1481_vm15 = vcmp.gt.f32.partialorder %v1473_v27, 0.0  ;;  %v788_v26 = vld [vmem:[#allocation3] sm:$0xff]  ;;  %v5127_v10 = vld [vmem:[#allocation38_spill] sm:$0xff] }
 0x235   : > { %3281 = vpow2.f32 %v1229_v52  ;;  %3059 = vmatmul.mubr.bf16.vlgmr.msra.gmra.mxu1 %v1338_v61  ;;  %v1887_v41 = vsel %vm1871_vm5, %v1863_v50, %v1879_v20  ;;  %v1494_v61 = vsel %vm1478_vm10, %v1470_v39, %v1486_v48  ;;  %v1869_v50 = vadd.f32 %v4323_v62, %v4293_v29  ;;  %v5128_v48 = vld [vmem:[#allocation25_spill] sm:$0xff] }
 0x236   : > { %v3276_v18 = vpop.eup %3275  ;;  %3091 = vmatpush3.bf16.msra.mxu1 %v4042_v4  ;;  %3077 = vmatpush3.bf16.msra.mxu0 %v4112_v42  ;;  %v4365_v34 = vadd.f32 %v1887_v41, %v3936_v55  ;;  %v1488_v53 = vmul.f32 0.2, %v1472_v54  ;;  %vm1480_vm14 = vcmp.gt.f32.partialorder %v1472_v54, 0.0  ;;  %v1884_v29 = vmul.f32 0.2, %v1868_v22 }
 0x237   : > { %1256 = vadd.xlane.f32.xlu0 %v3276_v18  ;;  %3092 = vmatprep.subr.bf16.mxu1 %v4053_v7  ;;  %vm1877_vm2 = vcmp.gt.f32.partialorder %v1869_v50, 0.0 }
 0x238   : > { %3078 = vmatprep.subr.bf16.mxu0 %v4133_v14  ;;  %v1496_v9 = vsel %vm1480_vm14, %v1472_v54, %v1488_v53  ;;  %v5132_v54 = vld [vmem:[#allocation27_spill] sm:$0xff] }
 0x239   : > { %v4441_v20 = vadd.f32 %v1496_v9, %v3967_v38 }
 0x23a   : > { %v3278_v33 = vpop.eup %3277  ;;  %3093 = vmatpush3.bf16.msra.mxu1 %v4053_v7  ;;  %3079 = vmatpush3.bf16.msra.mxu0 %v4133_v14  ;;  %v1469_v7 = vadd.f32 %v4247_v58, %v4277_v16  ;;  %v4416_v58 = vadd.f32 %v1494_v61, %v3941_v63 }
 0x23b   : > { %1258 = vadd.xlane.f32.xlu1 %v3278_v33  ;;  %v1339_v4 = vpack.c.bf16 %v3278_v33, %v3276_v18  ;;  %3094 = vmatprep.subr.bf16.mxu1 %v4065_v11  ;;  %v1489_v18 = vmul.f32 0.2, %v1473_v27  ;;  %v4631_v33 = vld [vmem:[#allocation2 + $0xb0] sm:$0xff] }
 0x23c   : > { %3080 = vmatprep.subr.bf16.mxu0 %v4157_v21  ;;  %v1485_v16 = vmul.f32 0.2, %v1469_v7  ;;  %vm1477_vm7 = vcmp.gt.f32.partialorder %v1469_v7, 0.0 }
 0x23d   : > { %3062 = vmatprep.mubr.bf16.mxu1 %v1339_v4  ;;  %v1497_v4 = vsel %vm1481_vm15, %v1473_v27, %v1489_v18 }
 0x23e   : > { %v3280_v28 = vpop.eup %3279  ;;  %3095 = vmatpush3.bf16.msra.mxu1 %v4065_v11  ;;  %3081 = vmatpush3.bf16.msra.mxu0 %v4157_v21  ;;  %v1865_v11 = vadd.f32 %v4323_v62, %v4281_v40  ;;  %v4368_v40 = vadd.f32 %v1491_v43, %v3936_v55  ;;  %v1493_v47 = vsel %vm1477_vm7, %v1469_v7, %v1485_v16  ;;  %v5121_v7 = vld [vmem:[#allocation19_spill] sm:$0xff] }
 0x23f   : > { %1260 = vadd.xlane.f32.xlu0 %v3280_v28  ;;  %3096 = vmatprep.subr.bf16.mxu1 %v4080_v59  ;;  %v1867_v55 = vadd.f32 %v4323_v62, %v4285_v46  ;;  %v4381_v49 = vadd.f32 %v1493_v47, %v3945_v17  ;;  %v1882_v46 = vmul.f32 0.2, %v1866_v37  ;;  %v1885_v62 = vmul.f32 0.2, %v1869_v50  ;;  %v790_v47 = vld [vmem:[#allocation3 + $0x10] sm:$0xff] }
 0x240   : > { %v1881_v12 = vmul.f32 0.2, %v1865_v11  ;;  %vm1873_vm9 = vcmp.gt.f32.partialorder %v1865_v11, 0.0 }
 0x241   : > { %v1883_v6 = vmul.f32 0.2, %v1867_v55  ;;  %vm1875_vm13 = vcmp.gt.f32.partialorder %v1867_v55, 0.0 }
 0x242   : > { %v3282_v36 = vpop.eup %3281  ;;  %3097 = vmatpush3.bf16.msra.mxu1 %v4080_v59  ;;  %v1492_v59 = vsel %vm1476_vm6, %v1468_v8, %v1484_v31  ;;  %v1889_v0 = vsel %vm1873_vm9, %v1865_v11, %v1881_v12  ;;  %v1892_v8 = vsel %vm1876_vm0, %v1868_v22, %v1884_v29  ;;  %v5123_v31 = vsub.f32 %v5121_v7, %v5122_v19  ;;  %v5124_v11 = vld [vmem:[#allocation21_spill] sm:$0xff]  ;;  %v5133_v22 = vld [vmem:[#allocation22_spill] sm:$0xff]  ;;  %v793_v19 = vld [vmem:[#allocation3 + $0x28] sm:$0xff] }
 0x243   : > { %1911 = vmax.xlane.f32.xlu0 %v4351_v13  ;;  %1262 = vadd.xlane.f32.xlu1 %v3282_v36  ;;  %v1340_v23 = vpack.c.bf16 %v3282_v36, %v3280_v28  ;;  %v4384_v57 = vadd.f32 %v1492_v59, %v3938_v56  ;;  %v4395_v60 = vadd.f32 %v1889_v0, %v3945_v17  ;;  %v4457_v36 = vpop.permute.xlu1 %847  ;;  %v5129_v0 = vld [vmem:[#allocation28_spill] sm:$0xff] }
 0x244   : > { %3098 = vmatprep.subr.bf16.mxu1 %v4096_v25  ;;  %v1890_v17 = vsel %vm1874_vm12, %v1866_v37, %v1882_v46  ;;  %v4449_v28 = vadd.f32 %v1892_v8, %v3967_v38  ;;  %v1151_v41 = vmul.f32 1.442695, %v5123_v31  ;;  %v796_v12 = vmul.f32 %v5127_v10, %v788_v26  ;;  %v794_v26 = vld [vmem:[#allocation3 + $0x30] sm:$0xff] }
 0x245   : > { %3063 = vmatmul.mubr.bf16.gmra.mxu1 %v1340_v23  ;;  %v4433_v1 = vadd.f32 %v1890_v17, %v3941_v63  ;;  %v5125_v23 = vld [vmem:[#allocation23_spill] sm:$0xff] }
 0x246   : > { %3099 = vmatpush3.bf16.msra.mxu1 %v4096_v25  ;;  %v1487_v25 = vmul.f32 0.2, %v1471_v44  ;;  %3283 = vpow2.f32 %v1151_v41  ;;  %v5126_v39 = vsub.f32 %v5124_v11, %v5125_v23  ;;  %v5138_v23 = vld [vmem:[#allocation30_spill] sm:$0xff] }
 0x247   : > { %1913 = vmax.xlane.f32.xlu0 %v4365_v34  ;;  %1517 = vmax.xlane.f32.xlu1 %v4368_v40 }
 0x248   : > { %3100 = vmatprep.subr.bf16.mxu1 %v4112_v42  ;;  %v1495_v52 = vsel %vm1479_vm11, %v1471_v44, %v1487_v25  ;;  %v1153_v59 = vmul.f32 1.442695, %v5126_v39  ;;  %v789_v25 = vld [vmem:[#allocation3 + $0x8] sm:$0xff]  ;;  %v5139_v39 = vld [vmem:[#allocation33_spill] sm:$0xff] }
 0x249   : > { %v4413_v15 = vadd.f32 %v1495_v52, %v3956_v30  ;;  %v797_v52 = vmul.f32 %v5132_v54, %v789_v25  ;;  %v5144_v54 = vld [vmem:[#allocation29_spill] sm:$0xff] }
 0x24a   : > { %3101 = vmatpush3.bf16.msra.mxu1 %v4112_v42  ;;  %v4398_v42 = vadd.f32 %v1888_v3, %v3938_v56  ;;  %3285 = vpow2.f32 %v1153_v59  ;;  %v5130_v3 = vsub.f32 %v5128_v48, %v5129_v0  ;;  %v5140_v59 = vsub.f32 %v5138_v23, %v5139_v39  ;;  %v795_v48 = vld [vmem:[#allocation3 + $0x38] sm:$0xff] }
 0x24b   : > { %1521 = vmax.xlane.f32.xlu0 %v4381_v49  ;;  %1519 = vmax.xlane.f32.xlu1 %v4384_v57 }
 0x24c   : > { %3102 = vmatprep.subr.bf16.mxu1 %v4133_v14  ;;  %v1155_v46 = vmul.f32 1.442695, %v5130_v3  ;;  %v1159_v10 = vmul.f32 1.442695, %v5140_v59 }
 0x24e   : > { %3103 = vmatpush3.bf16.msra.mxu1 %v4133_v14  ;;  %v1891_v14 = vsel %vm1875_vm13, %v1867_v55, %v1883_v6  ;;  %v5131_v6 = vld [vmem:[#allocation39_spill] sm:$0xff]  ;;  %3287 = vpow2.f32 %v1155_v46 }
 0x24f   : > { %1917 = vmax.xlane.f32.xlu0 %v4395_v60  ;;  %1915 = vmax.xlane.f32.xlu1 %v4398_v42  ;;  %v1516_v5 = vpop.xlane.xlu0 %1515  ;;  %v4430_v24 = vadd.f32 %v1891_v14, %v3956_v30  ;;  %v1893_v30 = vsel %vm1877_vm2, %v1869_v50, %v1885_v62  ;;  %v798_v27 = vmul.f32 %v5131_v6, %v790_v47  ;;  %v792_v14 = vld [vmem:[#allocation3 + $0x20] sm:$0xff]  ;;  %v5134_v50 = vld [vmem:[#allocation24_spill] sm:$0xff] }
 0x250   : > { %v4409_v56 = vmax.f32 %v4400_v51, %v1516_v5  ;;  %3104 = vmatprep.subr.bf16.mxu1 %v4157_v21  ;;  %v4446_v63 = vadd.f32 %v1893_v30, %v3971_v45  ;;  %v791_v5 = vld [vmem:[#allocation3 + $0x18] sm:$0xff]  ;;  %v5135_v29 = vsub.f32 %v5133_v22, %v5134_v50  ;;  %v5137_v30 = vld [vmem:[#allocation32_spill] sm:$0xff]  ;;  %v1232_v46 = vld [vmem:[#allocation3 + $0x40] sm:$0xff] }
 0x251   : > { %v800_v8 = vmul.f32 %v5137_v30, %v792_v14  ;;  %v5142_v47 = vld [vmem:[#allocation36_spill] sm:$0xff] }
 0x252   : > { %1818 = vst.msk [vmem:[#allocation2 + $0x80] sm:$0xff] %vm828_vm1, %v4409_v56  ;;  %3105 = vmatpush3.bf16.msra.mxu1 %v4157_v21  ;;  %v4438_v21 = vadd.f32 %v1497_v4, %v3971_v45  ;;  %v4459_v45 = vpop.permute.xlu1 %857  ;;  %v1157_v62 = vmul.f32 1.442695, %v5135_v29  ;;  %v5136_v4 = vld [vmem:[#allocation40_spill] sm:$0xff] }
 0x253   : > { %1525 = vmax.xlane.f32.xlu0 %v4413_v15  ;;  %1523 = vmax.xlane.f32.xlu1 %v4416_v58  ;;  %v3284_v43 = vpop.eup %3283  ;;  %v799_v9 = vmul.f32 %v5136_v4, %v791_v5  ;;  %v5146_v5 = vld [vmem:[#allocation43_spill] sm:$0xff]  ;;  %v1233_v22 = vld [vmem:[#allocation3 + $0x48] sm:$0xff] }
 0x254   : > { %3289 = vpow2.f32 %v1157_v62  ;;  %v5147_v4 = vld [vmem:[#allocation35_spill] sm:$0xff] }
 0x255   : > { %3291 = vpow2.f32 %v1159_v10 }
 0x256   : > { %v4461_v16 = vpop.permute.xlu1 %862 }
 0x257   : > { %1921 = vmax.xlane.f32.xlu0 %v4430_v24  ;;  %1919 = vmax.xlane.f32.xlu1 %v4433_v1 }
 0x25a   : > { %v4463_v38 = vpop.permute.xlu1 %872 }
 0x25b   : > { %1529 = vmax.xlane.f32.xlu0 %v4438_v21  ;;  %1527 = vmax.xlane.f32.xlu1 %v4441_v20 }
 0x25e   : > { %v4469_v37 = vpop.permute.xlu1 %882 }
 0x25f   : > { %1925 = vmax.xlane.f32.xlu0 %v4446_v63  ;;  %1923 = vmax.xlane.f32.xlu1 %v4449_v28 }
 0x270   : > { %1291 = vperm.xlu1 %3225, %v3284_v43  }
 0x275   : > { %1565 = vperm.xlu0 %3226, %v4409_v56  }
 0x2a0   : > { %v805_v44 = vpop.xlane.xlu0 %804 }
 0x2a1   : > { %v820_v55 = vadd.f32 %v805_v44, %v796_v12  ;;  %v5141_v12 = vld [vmem:[#allocation42_spill] sm:$0xff] }
 0x2a2   : > { %v801_v44 = vmul.f32 %v5141_v12, %v793_v19 }
 0x2a3   : > { %829 = vst.msk [vmem:[#allocation3] sm:$0xff] %vm828_vm1, %v820_v55  ;;  %v802_v55 = vmul.f32 %v5142_v47, %v794_v26  ;;  %v5150_v26 = vld [vmem:[#allocation31_spill] sm:$0xff] }
 0x2a4   : > { %v809_v61 = vpop.xlane.xlu0 %808 }
 0x2a5   : > { %v807_v17 = vpop.xlane.xlu1 %806  ;;  %v822_v18 = vadd.f32 %v809_v61, %v798_v27  ;;  %v5143_v27 = vld [vmem:[#allocation26_spill] sm:$0xff] }
 0x2a6   : > { %v821_v53 = vadd.f32 %v807_v17, %v797_v52  ;;  %v5145_v52 = vsub.f32 %v5143_v27, %v5144_v54  ;;  %v803_v17 = vmul.f32 %v5146_v5, %v795_v48  ;;  %v1237_v54 = vld [vmem:[#allocation3 + $0x68] sm:$0xff] }
 0x2a7   : > { %831 = vst.msk [vmem:[#allocation3 + $0x10] sm:$0xff] %vm828_vm1, %v822_v18  ;;  %v4496_v18 = vpop.eup %3285 }
 0x2a8   : > { %830 = vst.msk [vmem:[#allocation3 + $0x8] sm:$0xff] %vm828_vm1, %v821_v53  ;;  %v811_v7 = vpop.xlane.xlu0 %810  ;;  %v1161_v61 = vmul.f32 1.442695, %v5145_v52  ;;  %v1240_v53 = vmul.f32 %v3284_v43, %v1232_v46  ;;  %v4504_v19 = vpop.eup %3287 }
 0x2a9   : > { %v813_v31 = vpop.xlane.xlu1 %812  ;;  %v823_v41 = vadd.f32 %v811_v7, %v799_v9  ;;  %v5148_v9 = vld [vmem:[#allocation37_spill] sm:$0xff]  ;;  %v1241_v7 = vmul.f32 %v4496_v18, %v1233_v22  ;;  %v4512_v10 = vpop.eup %3289 }
 0x2aa   : > { %v824_v11 = vadd.f32 %v813_v31, %v800_v8  ;;  %3293 = vpow2.f32 %v1161_v61  ;;  %v5149_v30 = vsub.f32 %v5147_v4, %v5148_v9  ;;  %v4530_v9 = vld [vmem:[#allocation2 + $0xc0] sm:$0xff] }
 0x2ab   : > { %832 = vst.msk [vmem:[#allocation3 + $0x18] sm:$0xff] %vm828_vm1, %v823_v41  ;;  %v1234_v41 = vld [vmem:[#allocation3 + $0x50] sm:$0xff]  ;;  %5154 = vst [vmem:[#allocation20_spill] sm:$0xff] %v4530_v9 }
 0x2ac   : > { %833 = vst.msk [vmem:[#allocation3 + $0x20] sm:$0xff] %vm828_vm1, %v824_v11  ;;  %v815_v25 = vpop.xlane.xlu0 %814  ;;  %v1163_v8 = vmul.f32 1.442695, %v5149_v30  ;;  %v5151_v11 = vld [vmem:[#allocation34_spill] sm:$0xff]  ;;  %v1242_v59 = vmul.f32 %v4504_v19, %v1234_v41 }
 0x2ad   : > { %v817_v0 = vpop.xlane.xlu1 %816  ;;  %v825_v3 = vadd.f32 %v815_v25, %v801_v44  ;;  %v5152_v23 = vsub.f32 %v5150_v26, %v5151_v11  ;;  %v1235_v44 = vld [vmem:[#allocation3 + $0x58] sm:$0xff]  ;;  %v4516_v25 = vpop.eup %3291  ;;  %v4539_v26 = vld [vmem:[#allocation2 + $0xc8] sm:$0xff] }
 0x2ae   : > { %v826_v6 = vadd.f32 %v817_v0, %v802_v55  ;;  %3295 = vpow2.f32 %v1163_v8  ;;  %v1243_v55 = vmul.f32 %v4512_v10, %v1235_v44  ;;  %v1236_v0 = vld [vmem:[#allocation3 + $0x60] sm:$0xff]  ;;  %v4552_v44 = vld [vmem:[#allocation2 + $0x90] sm:$0xff] }
 0x2af   : > { %834 = vst.msk [vmem:[#allocation3 + $0x28] sm:$0xff] %vm828_vm1, %v825_v3  ;;  %v1165_v39 = vmul.f32 1.442695, %v5152_v23  ;;  %v1244_v46 = vmul.f32 %v4516_v25, %v1236_v0 }
 0x2b0   : > { %835 = vst.msk [vmem:[#allocation3 + $0x30] sm:$0xff] %vm828_vm1, %v826_v6  ;;  %v819_v14 = vpop.xlane.xlu0 %818 }
 0x2b1   : > { %v827_v50 = vadd.f32 %v819_v14, %v803_v17  ;;  %v1249_v29 = vpop.xlane.xlu1 %1248  ;;  %3297 = vpow2.f32 %v1165_v39  ;;  %v1238_v14 = vld [vmem:[#allocation3 + $0x70] sm:$0xff] }
 0x2b2   : > { %v1264_v62 = vadd.f32 %v1249_v29, %v1240_v53 }
 0x2b3   : > { %836 = vst.msk [vmem:[#allocation3 + $0x38] sm:$0xff] %vm828_vm1, %v827_v50 }
 0x2b4   : > { %1272 = vst.msk [vmem:[#allocation3 + $0x40] sm:$0xff] %vm828_vm1, %v1264_v62  ;;  %v1251_v31 = vpop.xlane.xlu0 %1250  ;;  %v1239_v62 = vld [vmem:[#allocation3 + $0x78] sm:$0xff] }
 0x2b5   : > { %v1265_v43 = vadd.f32 %v1251_v31, %v1241_v7 }
 0x2b7   : > { %1273 = vst.msk [vmem:[#allocation3 + $0x48] sm:$0xff] %vm828_vm1, %v1265_v43  ;;  %v4520_v6 = vpop.eup %3293  ;;  %v4537_v43 = vld [vmem:[#allocation2 + $0x88] sm:$0xff] }
 0x2b8   : > { %v1253_v12 = vpop.xlane.xlu0 %1252  ;;  %v1245_v61 = vmul.f32 %v4520_v6, %v1237_v54  ;;  %v4571_v54 = vld [vmem:[#allocation2 + $0xd0] sm:$0xff] }
 0x2b9   : > { %v1266_v47 = vadd.f32 %v1253_v12, %v1242_v59  ;;  %5156 = vst [vmem:[#allocation23_spill] sm:$0xff] %v4571_v54 }
 0x2bb   : > { %1274 = vst.msk [vmem:[#allocation3 + $0x50] sm:$0xff] %vm828_vm1, %v1266_v47  ;;  %v4524_v5 = vpop.eup %3295  ;;  %v4554_v47 = vld [vmem:[#allocation2 + $0x98] sm:$0xff] }
 0x2bc   : > { %v1255_v48 = vpop.xlane.xlu1 %1254  ;;  %v1246_v22 = vmul.f32 %v4524_v5, %v1238_v14 }
 0x2bd   : > { %v1267_v3 = vadd.f32 %v1255_v48, %v1243_v55  ;;  %v840_v48 = vld [vmem:[#allocation4 + $0x18] sm:$0xff] }
 0x2be   : > { %v4528_v50 = vpop.eup %3297 }
 0x2bf   : > { %1275 = vst.msk [vmem:[#allocation3 + $0x58] sm:$0xff] %vm828_vm1, %v1267_v3  ;;  %5153 = vst [vmem:[#allocation19_spill] sm:$0xff] %v4528_v50  ;;  %v1247_v30 = vmul.f32 %v4528_v50, %v1239_v62  ;;  %v4590_v62 = vld [vmem:[#allocation2 + $0xa0] sm:$0xff]  ;;  %v4653_v50 = vld [vmem:[#allocation2 + $0xf0] sm:$0xff] }
 0x2c0   : > { %v1257_v27 = vpop.xlane.xlu0 %1256 }
 0x2c1   : > { %v1268_v52 = vadd.f32 %v1257_v27, %v1244_v46 }
 0x2c3   : > { %1276 = vst.msk [vmem:[#allocation3 + $0x60] sm:$0xff] %vm828_vm1, %v1268_v52  ;;  %v4573_v52 = vld [vmem:[#allocation2 + $0xd8] sm:$0xff] }
 0x2c4   : > { %v1259_v17 = vpop.xlane.xlu1 %1258  ;;  %5157 = vst [vmem:[#allocation38_spill] sm:$0xff] %v4573_v52 }
 0x2c5   : > { %v1269_v53 = vadd.f32 %v1259_v17, %v1245_v61 }
 0x2c7   : > { %1277 = vst.msk [vmem:[#allocation3 + $0x68] sm:$0xff] %vm828_vm1, %v1269_v53 }
 0x2c8   : > { %v1261_v29 = vpop.xlane.xlu0 %1260 }
 0x2c9   : > { %v1270_v4 = vadd.f32 %v1261_v29, %v1246_v22 }
 0x2cb   : > { %1278 = vst.msk [vmem:[#allocation3 + $0x70] sm:$0xff] %vm828_vm1, %v1270_v4  ;;  %v4592_v4 = vld [vmem:[#allocation2 + $0xa8] sm:$0xff] }
 0x2cc   : > { %v1263_v8 = vpop.xlane.xlu1 %1262  ;;  %v1912_v7 = vpop.xlane.xlu0 %1911 }
 0x2cd   : > { %v1271_v31 = vadd.f32 %v1263_v8, %v1247_v30  ;;  %v4535_v41 = vmax.f32 %v4530_v9, %v1912_v7 }
 0x2cf   : > { %5155 = vst [vmem:[#allocation21_spill] sm:$0xff] %v4535_v41  ;;  %1279 = vst.msk [vmem:[#allocation3 + $0x78] sm:$0xff] %vm828_vm1, %v1271_v31 }
 0x2d0   : > { %2214 = vst.msk [vmem:[#allocation2 + $0xc0] sm:$0xff] %vm828_vm1, %v4535_v41  ;;  %v1518_v23 = vpop.xlane.xlu1 %1517  ;;  %v1914_v39 = vpop.xlane.xlu0 %1913 }
 0x2d1   : > { %v4547_v59 = vmax.f32 %v4537_v43, %v1518_v23  ;;  %v4550_v12 = vmax.f32 %v4539_v26, %v1914_v39  ;;  %v839_v23 = vld [vmem:[#allocation4 + $0xd8] sm:$0xff] }
 0x2d3   : > { %1819 = vst.msk [vmem:[#allocation2 + $0x88] sm:$0xff] %vm828_vm1, %v4547_v59  ;;  %2215 = vst.msk [vmem:[#allocation2 + $0xc8] sm:$0xff] %vm828_vm1, %v4550_v12  ;;  %1570 = vperm.xlu1 %3225, %v4547_v59  }
 0x2d4   : > { %v1520_v0 = vpop.xlane.xlu1 %1519  ;;  %v1522_v3 = vpop.xlane.xlu0 %1521 }
 0x2d5   : > { %v4566_v46 = vmax.f32 %v4552_v44, %v1520_v0  ;;  %v4569_v27 = vmax.f32 %v4554_v47, %v1522_v3  ;;  %v4609_v3 = vld [vmem:[#allocation2 + $0xe0] sm:$0xff] }
 0x2d7   : > { %1820 = vst.msk [vmem:[#allocation2 + $0x90] sm:$0xff] %vm828_vm1, %v4566_v46  ;;  %1821 = vst.msk [vmem:[#allocation2 + $0x98] sm:$0xff] %vm828_vm1, %v4569_v27  ;;  %1961 = vperm.xlu1 %3225, %v4535_v41  }
 0x2d8   : > { %v1916_v14 = vpop.xlane.xlu1 %1915  ;;  %v1918_v53 = vpop.xlane.xlu0 %1917 }
 0x2d9   : > { %v4585_v22 = vmax.f32 %v4571_v54, %v1916_v14  ;;  %v4588_v29 = vmax.f32 %v4573_v52, %v1918_v53  ;;  %v4611_v14 = vld [vmem:[#allocation2 + $0xe8] sm:$0xff]  ;;  %v837_v53 = vld [vmem:[#allocation4 + $0xb0] sm:$0xff]  ;;  %v4633_v52 = vld [vmem:[#allocation2 + $0xb8] sm:$0xff] }
 0x2da   : > { %5159 = vst [vmem:[#allocation28_spill] sm:$0xff] %v4611_v14  ;;  %v885_v30 = vmul.f32 %v4457_v36, %v837_v53  ;;  %v838_v54 = vld [vmem:[#allocation4] sm:$0xff]  ;;  %v888_v36 = vmul.f32 %v4461_v16, %v840_v48  ;;  %v841_v16 = vld [vmem:[#allocation4 + $0x50] sm:$0xff] }
 0x2db   : > { %5158 = vst [vmem:[#allocation25_spill] sm:$0xff] %v4585_v22  ;;  %2216 = vst.msk [vmem:[#allocation2 + $0xd0] sm:$0xff] %vm828_vm1, %v4585_v22  ;;  %1966 = vperm.xlu1 %3225, %v4550_v12   ;;  %v886_v41 = vmul.f32 %v4347_v2, %v838_v54  ;;  %v889_v48 = vmul.f32 %v4362_v35, %v841_v16 }
 0x2dc   : > { %2217 = vst.msk [vmem:[#allocation2 + $0xd8] sm:$0xff] %vm828_vm1, %v4588_v29  ;;  %v1524_v7 = vpop.xlane.xlu1 %1523  ;;  %v1526_v31 = vpop.xlane.xlu0 %1525 }
 0x2dd   : > { %v4604_v39 = vmax.f32 %v4590_v62, %v1524_v7  ;;  %v4607_v0 = vmax.f32 %v4592_v4, %v1526_v31  ;;  %v887_v7 = vmul.f32 %v4459_v45, %v839_v23 }
 0x2df   : > { %1822 = vst.msk [vmem:[#allocation2 + $0xa0] sm:$0xff] %vm828_vm1, %v4604_v39  ;;  %1823 = vst.msk [vmem:[#allocation2 + $0xa8] sm:$0xff] %vm828_vm1, %v4607_v0  ;;  %1575 = vperm.xlu1 %3225, %v4566_v46   ;;  %1590 = vperm.xlu0 %3226, %v4607_v0  }
 0x2e0   : > { %v1920_v31 = vpop.xlane.xlu1 %1919  ;;  %v1922_v11 = vpop.xlane.xlu0 %1921 }
 0x2e1   : > { %v4625_v17 = vmax.f32 %v4609_v3, %v1920_v31  ;;  %v4628_v61 = vmax.f32 %v4611_v14, %v1922_v11  ;;  %v3036_v8 = vpop.f32.mrf.mxu0  ;;  %v843_v31 = vld [vmem:[#allocation4 + $0x30] sm:$0xff] }
 0x2e2   : > { %v1012_v55 = vadd.f32 %v3036_v8, %v887_v7  ;;  %v891_v54 = vmul.f32 %v4387_v32, %v843_v31  ;;  %v5161_v32 = vld [vmem:[#allocation41_spill] sm:$0xff] }
 0x2e3   : > { %5160 = vst [vmem:[#allocation39_spill] sm:$0xff] %v4628_v61  ;;  %2218 = vst.msk [vmem:[#allocation2 + $0xe0] sm:$0xff] %vm828_vm1, %v4625_v17  ;;  %v979_v11 = vpop.f32.mrf.mxu0  ;;  %1580 = vperm.xlu1 %3225, %v4569_v27   ;;  %1986 = vperm.xlu0 %3226, %v4628_v61  }
 0x2e4   : > { %2219 = vst.msk [vmem:[#allocation2 + $0xe8] sm:$0xff] %vm828_vm1, %v4628_v61  ;;  %1020 = vst [vmem:[#allocation4 + $0xd8] sm:$0xff] %v1012_v55  ;;  %v1010_v8 = vadd.f32 %v979_v11, %v885_v30  ;;  %v1528_v53 = vpop.xlane.xlu1 %1527  ;;  %v1530_v7 = vpop.xlane.xlu0 %1529  ;;  %v4655_v61 = vld [vmem:[#allocation2 + $0xf8] sm:$0xff] }
 0x2e5   : > { %v4647_v45 = vmax.f32 %v4631_v33, %v1528_v53  ;;  %v4650_v23 = vmax.f32 %v4633_v52, %v1530_v7  ;;  %v3037_v14 = vpop.f32.mrf.mxu0 }
 0x2e6   : > { %1018 = vst [vmem:[#allocation4 + $0xb0] sm:$0xff] %v1010_v8  ;;  %v1013_v9 = vadd.f32 %v3037_v14, %v888_v36  ;;  %v844_v36 = vld [vmem:[#allocation4 + $0x48] sm:$0xff] }
 0x2e7   : > { %1824 = vst.msk [vmem:[#allocation2 + $0xb0] sm:$0xff] %vm828_vm1, %v4647_v45  ;;  %1825 = vst.msk [vmem:[#allocation2 + $0xb8] sm:$0xff] %vm828_vm1, %v4650_v23  ;;  %v982_v2 = vpop.f32.mrf.mxu0  ;;  %1971 = vperm.xlu1 %3225, %v4585_v22   ;;  %1600 = vperm.xlu0 %3226, %v4650_v23   ;;  %v842_v22 = vld [vmem:[#allocation4 + $0x68] sm:$0xff]  ;;  %v892_v35 = vmul.f32 %v4469_v37, %v844_v36 }
 0x2e8   : > { %1021 = vst [vmem:[#allocation4 + $0x18] sm:$0xff] %v1013_v9  ;;  %v1011_v30 = vadd.f32 %v982_v2, %v886_v41  ;;  %v1924_v14 = vpop.xlane.xlu1 %1923  ;;  %v1926_v11 = vpop.xlane.xlu0 %1925  ;;  %v890_v2 = vmul.f32 %v4463_v38, %v842_v22 }
 0x2e9   : > { %v4669_v8 = vmax.f32 %v4653_v50, %v1924_v14  ;;  %v4672_v53 = vmax.f32 %v4655_v61, %v1926_v11  ;;  %v3040_v7 = vpop.f32.mrf.mxu0 }
 0x2ea   : > { %1019 = vst [vmem:[#allocation4] sm:$0xff] %v1011_v30  ;;  %v1016_v55 = vadd.f32 %v3040_v7, %v891_v54  ;;  %v1281_v7 = vld [vmem:[#allocation4 + $0x80] sm:$0xff] }
 0x2eb   : > { %2220 = vst.msk [vmem:[#allocation2 + $0xf0] sm:$0xff] %vm828_vm1, %v4669_v8  ;;  %2221 = vst.msk [vmem:[#allocation2 + $0xf8] sm:$0xff] %vm828_vm1, %v4672_v53  ;;  %v995_v41 = vpop.f32.mrf.mxu0  ;;  %1976 = vperm.xlu1 %3225, %v4588_v29   ;;  %1996 = vperm.xlu0 %3226, %v4672_v53  }
 0x2ec   : > { %1024 = vst [vmem:[#allocation4 + $0x30] sm:$0xff] %v1016_v55  ;;  %v1014_v31 = vadd.f32 %v995_v41, %v889_v48  ;;  %v1292_v9 = vpop.permute.xlu1 %1291 }
 0x2ed   : > { %v3041_v16 = vpop.f32.mrf.mxu0  ;;  %v1329_v48 = vmul.f32 %v1292_v9, %v1281_v7 }
 0x2ee   : > { %1022 = vst [vmem:[#allocation4 + $0x50] sm:$0xff] %v1014_v31  ;;  %v1017_v54 = vadd.f32 %v3041_v16, %v892_v35 }
 0x2ef   : > { %v998_v30 = vpop.f32.mrf.mxu0  ;;  %1585 = vperm.xlu1 %3225, %v4604_v39  }
 0x2f0   : > { %1025 = vst [vmem:[#allocation4 + $0x48] sm:$0xff] %v1017_v54  ;;  %v1015_v14 = vadd.f32 %v998_v30, %v890_v2  ;;  %v1566_v11 = vpop.permute.xlu0 %1565 }
 0x2f1   : > { %v1603_v37 = vsub.f32 %v5161_v32, %v1566_v11 }
 0x2f2   : > { %1023 = vst [vmem:[#allocation4 + $0x68] sm:$0xff] %v1015_v14 }
 0x2f3   : > { %1981 = vperm.xlu1 %3225, %v4625_v17   ;;  %v1611_v38 = vmul.f32 1.442695, %v1603_v37 }
 0x2f5   : > { %v4690_v55 = vpop.f32.mrf.mxu1  ;;  %3299 = vpow2.f32 %v1611_v38 }
 0x2f7   : > { %v1375_v36 = vpop.f32.mrf.mxu1  ;;  %1595 = vperm.xlu1 %3225, %v4647_v45  }
 0x2f8   : > { %v1406_v22 = vadd.f32 %v1375_v36, %v1329_v48 }
 0x2fa   : > { %1414 = vst [vmem:[#allocation4 + $0x80] sm:$0xff] %v1406_v22 }
 0x2fb   : > { %1991 = vperm.xlu1 %3225, %v4669_v8  }
 0x302   : > { %v3300_v41 = vpop.eup %3299 }
 0x30a   : > { %1644 = vadd.xlane.f32.xlu0 %v3300_v41 }
 0x34e   : > { %v1571_v35 = vpop.permute.xlu1 %1570 }
 0x34f   : > { %v1604_v31 = vsub.f32 %v4368_v40, %v1571_v35 }
 0x351   : > { %v1613_v16 = vmul.f32 1.442695, %v1604_v31 }
 0x352   : > { %v1962_v2 = vpop.permute.xlu1 %1961 }
 0x353   : > { %3301 = vpow2.f32 %v1613_v16  ;;  %v1999_v32 = vsub.f32 %v4351_v13, %v1962_v2 }
 0x355   : > { %v2007_v9 = vmul.f32 1.442695, %v1999_v32 }
 0x356   : > { %v1967_v54 = vpop.permute.xlu1 %1966 }
 0x357   : > { %v2000_v30 = vsub.f32 %v4365_v34, %v1967_v54  ;;  %3303 = vpow2.f32 %v2007_v9 }
 0x359   : > { %v2009_v14 = vmul.f32 1.442695, %v2000_v30 }
 0x35a   : > { %v1576_v11 = vpop.permute.xlu1 %1575  ;;  %v1591_v7 = vpop.permute.xlu0 %1590 }
 0x35b   : > { %3305 = vpow2.f32 %v2009_v14  ;;  %v1605_v37 = vsub.f32 %v4384_v57, %v1576_v11  ;;  %v1608_v40 = vsub.f32 %v4413_v15, %v1591_v7 }
 0x35d   : > { %v1615_v48 = vmul.f32 1.442695, %v1605_v37  ;;  %v1621_v2 = vmul.f32 1.442695, %v1608_v40 }
 0x35e   : > { %v1581_v36 = vpop.permute.xlu1 %1580  ;;  %v1987_v38 = vpop.permute.xlu0 %1986 }
 0x35f   : > { %3307 = vpow2.f32 %v1615_v48  ;;  %v1606_v22 = vsub.f32 %v4381_v49, %v1581_v36  ;;  %v2004_v7 = vsub.f32 %v4430_v24, %v1987_v38 }
 0x360   : > { %v3302_v13 = vpop.eup %3301 }
 0x361   : > { %v1617_v35 = vmul.f32 1.442695, %v1606_v22  ;;  %1646 = vadd.xlane.f32.xlu1 %v3302_v13  ;;  %v1733_v31 = vpack.c.bf16 %v3302_v13, %v3300_v41  ;;  %v2017_v36 = vmul.f32 1.442695, %v2004_v7 }
 0x362   : > { %v1972_v34 = vpop.permute.xlu1 %1971  ;;  %v1601_v16 = vpop.permute.xlu0 %1600 }
 0x363   : > { %3309 = vpow2.f32 %v1617_v35  ;;  %v2001_v32 = vsub.f32 %v4398_v42, %v1972_v34  ;;  %v1610_v57 = vsub.f32 %v4438_v21, %v1601_v16  ;;  %3082 = vmatprep.mubr.bf16.mxu0 %v1733_v31 }
 0x364   : > { %v3304_v14 = vpop.eup %3303  ;;  %3311 = vpow2.f32 %v1621_v2 }
 0x365   : > { %v2011_v9 = vmul.f32 1.442695, %v2001_v32  ;;  %v1625_v54 = vmul.f32 1.442695, %v1610_v57 }
 0x366   : > { %v1977_v30 = vpop.permute.xlu1 %1976  ;;  %v1997_v22 = vpop.permute.xlu0 %1996 }
 0x367   : > { %v2002_v49 = vsub.f32 %v4395_v60, %v1977_v30  ;;  %3313 = vpow2.f32 %v2011_v9  ;;  %v2006_v24 = vsub.f32 %v4446_v63, %v1997_v22 }
 0x368   : > { %v3306_v15 = vpop.eup %3305  ;;  %3315 = vpow2.f32 %v1625_v54 }
 0x369   : > { %v2013_v11 = vmul.f32 1.442695, %v2002_v49  ;;  %v2129_v41 = vpack.c.bf16 %v3306_v15, %v3304_v14  ;;  %v2021_v32 = vmul.f32 1.442695, %v2006_v24  ;;  %v5165_v24 = vsub.f32 %v4552_v44, %v4566_v46  ;;  %v5171_v46 = vld [vmem:[#allocation19_spill] sm:$0xff] }
 0x36a   : > { %v1586_v37 = vpop.permute.xlu1 %1585 }
 0x36b   : > { %3317 = vpow2.f32 %v2013_v11  ;;  %v1607_v42 = vsub.f32 %v4416_v58, %v1586_v37  ;;  %3106 = vmatprep.mubr.bf16.mxu1 %v2129_v41  ;;  %v5162_v11 = vsub.f32 %v4400_v51, %v4409_v56  ;;  %v1628_v56 = vld [vmem:[#allocation3 + $0x80] sm:$0xff] }
 0x36c   : > { %v3308_v21 = vpop.eup %3307 }
 0x36d   : > { %v1619_v48 = vmul.f32 1.442695, %v1607_v42  ;;  %1648 = vadd.xlane.f32.xlu0 %v3308_v21  ;;  %v1547_v41 = vmul.f32 1.442695, %v5162_v11 }
 0x36e   : > { %v1982_v40 = vpop.permute.xlu1 %1981 }
 0x36f   : > { %3319 = vpow2.f32 %v1619_v48  ;;  %v2003_v60 = vsub.f32 %v4433_v1, %v1982_v40 }
 0x370   : > { %v3310_v13 = vpop.eup %3309  ;;  %3321 = vpow2.f32 %v2017_v36 }
 0x371   : > { %v2015_v35 = vmul.f32 1.442695, %v2003_v60  ;;  %1650 = vadd.xlane.f32.xlu0 %v3310_v13  ;;  %v1734_v31 = vpack.c.bf16 %v3310_v13, %v3308_v21  ;;  %v3312_v34 = vpop.eup %3311  ;;  %v5163_v13 = vsub.f32 %v4537_v43, %v4547_v59  ;;  %v5167_v43 = vsub.f32 %v4554_v47, %v4569_v27 }
 0x372   : > { %v1596_v38 = vpop.permute.xlu1 %1595 }
 0x373   : > { %3323 = vpow2.f32 %v2015_v35  ;;  %v1609_v58 = vsub.f32 %v4441_v20, %v1596_v38  ;;  %3083 = vmatmul.mubr.bf16.vlgmr.msra.gmra.mxu0 %v1734_v31  ;;  %v1549_v35 = vmul.f32 1.442695, %v5163_v13  ;;  %v1551_v38 = vmul.f32 1.442695, %v5165_v24 }
 0x374   : > { %v3314_v2 = vpop.eup %3313 }
 0x375   : > { %v1623_v16 = vmul.f32 1.442695, %v1609_v58  ;;  %1654 = vadd.xlane.f32.xlu0 %v3312_v34  ;;  %v3316_v9 = vpop.eup %3315  ;;  %v5166_v58 = vsub.f32 %v4631_v33, %v4647_v45  ;;  %v5169_v33 = vsub.f32 %v4592_v4, %v4607_v0 }
 0x376   : > { %v1992_v57 = vpop.permute.xlu1 %1991 }
 0x377   : > { %3325 = vpow2.f32 %v1623_v16  ;;  %v2005_v1 = vsub.f32 %v4449_v28, %v1992_v57 }
 0x378   : > { %v3318_v54 = vpop.eup %3317  ;;  %3327 = vpow2.f32 %v2021_v32 }
 0x379   : > { %v2019_v30 = vmul.f32 1.442695, %v2005_v1  ;;  %1658 = vadd.xlane.f32.xlu0 %v3316_v9  ;;  %v2130_v49 = vpack.c.bf16 %v3318_v54, %v3314_v2 }
 0x37b   : > { %3329 = vpow2.f32 %v2019_v30  ;;  %3107 = vmatmul.mubr.bf16.vlgmr.msra.gmra.mxu1 %v2130_v49  ;;  %v5183_v30 = vld [vmem:[#allocation39_spill] sm:$0xff] }
 0x37c   : > { %v3320_v63 = vpop.eup %3319  ;;  %3331 = vpow2.f32 %v1547_v41 }
 0x37d   : > { %1652 = vadd.xlane.f32.xlu1 %v3320_v63  ;;  %2040 = vadd.xlane.f32.xlu0 %v3304_v14  ;;  %v1735_v20 = vpack.c.bf16 %v3312_v34, %v3320_v63  ;;  %v3322_v7 = vpop.eup %3321  ;;  %3333 = vpow2.f32 %v1549_v35  ;;  %v1559_v34 = vmul.f32 1.442695, %v5166_v58  ;;  %v1633_v35 = vld [vmem:[#allocation3 + $0xa8] sm:$0xff] }
 0x37f   : > { %3086 = vmatprep.mubr.bf16.mxu0 %v1735_v20 }
 0x380   : > { %v3324_v37 = vpop.eup %3323 }
 0x381   : > { %2044 = vadd.xlane.f32.xlu0 %v3314_v2  ;;  %v2131_v28 = vpack.c.bf16 %v3322_v7, %v3324_v37  ;;  %v5180_v2 = vld [vmem:[#allocation38_spill] sm:$0xff] }
 0x382   : > { %v5181_v32 = vsub.f32 %v5180_v2, %v4588_v29  ;;  %v5185_v29 = vsub.f32 %v4655_v61, %v4672_v53  ;;  %v1630_v61 = vld [vmem:[#allocation3 + $0x90] sm:$0xff] }
 0x383   : > { %3110 = vmatprep.mubr.bf16.mxu1 %v2131_v28 }
 0x384   : > { %v3326_v42 = vpop.eup %3325  ;;  %v1949_v57 = vmul.f32 1.442695, %v5181_v32  ;;  %v1957_v41 = vmul.f32 1.442695, %v5185_v29 }
 0x385   : > { %1656 = vadd.xlane.f32.xlu1 %v3326_v42  ;;  %2046 = vadd.xlane.f32.xlu0 %v3318_v54  ;;  %v1736_v21 = vpack.c.bf16 %v3316_v9, %v3326_v42  ;;  %v3328_v48 = vpop.eup %3327  ;;  %v5182_v54 = vld [vmem:[#allocation28_spill] sm:$0xff] }
 0x386   : > { %v5184_v49 = vsub.f32 %v5182_v54, %v5183_v30  ;;  %v2031_v54 = vld [vmem:[#allocation3 + $0xf8] sm:$0xff] }
 0x387   : > { %3087 = vmatmul.mubr.bf16.gmra.mxu0 %v1736_v21 }
 0x388   : > { %v3330_v36 = vpop.eup %3329  ;;  %v1953_v63 = vmul.f32 1.442695, %v5184_v49  ;;  %v3061_v49 = vpop.f32.mrf.mxu1 }
 0x389   : > { %2042 = vadd.xlane.f32.xlu1 %v3306_v15  ;;  %2050 = vadd.xlane.f32.xlu0 %v3322_v7  ;;  %v2132_v14 = vpack.c.bf16 %v3328_v48, %v3330_v36  ;;  %v3332_v51 = vpop.eup %3331  ;;  %v5164_v15 = vsub.f32 %v4590_v62, %v4604_v39  ;;  %v5175_v62 = vld [vmem:[#allocation21_spill] sm:$0xff] }
 0x38a   : > { %v1636_v40 = vmul.f32 %v3332_v51, %v1628_v56  ;;  %v3334_v47 = vpop.eup %3333 }
 0x38b   : > { %3111 = vmatmul.mubr.bf16.gmra.mxu1 %v2132_v14  ;;  %v1555_v31 = vmul.f32 1.442695, %v5164_v15 }
 0x38d   : > { %2048 = vadd.xlane.f32.xlu1 %v3324_v37  ;;  %2054 = vadd.xlane.f32.xlu0 %v3328_v48  ;;  %3335 = vpow2.f32 %v1555_v31  ;;  %v1629_v48 = vld [vmem:[#allocation3 + $0x88] sm:$0xff] }
 0x38e   : > { %3337 = vpow2.f32 %v1551_v38  ;;  %v1635_v38 = vld [vmem:[#allocation3 + $0xb8] sm:$0xff] }
 0x38f   : > { %3339 = vpow2.f32 %v1559_v34 }
 0x391   : > { %2052 = vadd.xlane.f32.xlu1 %v3330_v36  ;;  %v1637_v36 = vmul.f32 %v3334_v47, %v1629_v48 }
 0x393   : > { %v1645_v22 = vpop.xlane.xlu0 %1644 }
 0x394   : > { %v1660_v60 = vadd.f32 %v1645_v22, %v1636_v40  ;;  %v1631_v40 = vld [vmem:[#allocation3 + $0x98] sm:$0xff] }
 0x396   : > { %1668 = vst.msk [vmem:[#allocation3 + $0x80] sm:$0xff] %vm828_vm1, %v1660_v60 }
 0x39a   : > { %v4750_v27 = vpop.eup %3335 }
 0x39b   : > { %v3338_v0 = vpop.eup %3337 }
 0x39c   : > { %v1638_v53 = vmul.f32 %v3338_v0, %v1630_v61  ;;  %v1283_v61 = vld [vmem:[#allocation4 + $0xe8] sm:$0xff] }
 0x3a2   : > { %1296 = vperm.xlu1 %3225, %v4496_v18   ;;  %v1553_v18 = vmul.f32 1.442695, %v5167_v43 }
 0x3a3   : > { %1301 = vperm.xlu0 %3226, %v4504_v19   ;;  %v5168_v19 = vsub.f32 %v4539_v26, %v4550_v12 }
 0x3a4   : > { %3341 = vpow2.f32 %v1553_v18  ;;  %v1632_v18 = vld [vmem:[#allocation3 + $0xa0] sm:$0xff] }
 0x3a5   : > { %v1945_v59 = vmul.f32 1.442695, %v5168_v19  ;;  %v2024_v19 = vld [vmem:[#allocation3 + $0xc0] sm:$0xff] }
 0x3a6   : > { %1306 = vperm.xlu1 %3225, %v4512_v10   ;;  %v1557_v10 = vmul.f32 1.442695, %v5169_v33  ;;  %v1640_v33 = vmul.f32 %v4750_v27, %v1632_v18 }
 0x3a7   : > { %1311 = vperm.xlu0 %3226, %v4516_v25   ;;  %3343 = vpow2.f32 %v1945_v59  ;;  %v5170_v25 = vsub.f32 %v4609_v3, %v4625_v17  ;;  %v5174_v17 = vld [vmem:[#allocation20_spill] sm:$0xff]  ;;  %v4756_v3 = vpop.eup %3339 }
 0x3a8   : > { %3345 = vpow2.f32 %v1557_v10  ;;  %v5176_v4 = vsub.f32 %v5174_v17, %v5175_v62  ;;  %v2027_v17 = vld [vmem:[#allocation3 + $0xd8] sm:$0xff] }
 0x3a9   : > { %v1951_v44 = vmul.f32 1.442695, %v5170_v25 }
 0x3aa   : > { %1316 = vperm.xlu1 %3225, %v4520_v6   ;;  %v5172_v6 = vsub.f32 %v4633_v52, %v4650_v23  ;;  %v1943_v39 = vmul.f32 1.442695, %v5176_v4  ;;  %v5178_v52 = vld [vmem:[#allocation25_spill] sm:$0xff] }
 0x3ab   : > { %1321 = vperm.xlu0 %3226, %v4524_v5   ;;  %3347 = vpow2.f32 %v1951_v44  ;;  %v5173_v5 = vsub.f32 %v4653_v50, %v4669_v8  ;;  %v5177_v50 = vld [vmem:[#allocation23_spill] sm:$0xff] }
 0x3ac   : > { %v1561_v26 = vmul.f32 1.442695, %v5172_v6  ;;  %v5179_v45 = vsub.f32 %v5177_v50, %v5178_v52  ;;  %v2025_v50 = vld [vmem:[#allocation3 + $0xc8] sm:$0xff] }
 0x3ad   : > { %v1955_v12 = vmul.f32 1.442695, %v5173_v5  ;;  %v2029_v52 = vld [vmem:[#allocation3 + $0xe8] sm:$0xff] }
 0x3ae   : > { %1326 = vperm.xlu1 %3225, %v5171_v46   ;;  %3349 = vpow2.f32 %v1561_v26  ;;  %v1947_v23 = vmul.f32 1.442695, %v5179_v45 }
 0x3af   : > { %1692 = vperm.xlu0 %3226, %v3334_v47   ;;  %3351 = vpow2.f32 %v1955_v12  ;;  %v2026_v47 = vld [vmem:[#allocation3 + $0xd0] sm:$0xff] }
 0x3b0   : > { %3353 = vpow2.f32 %v1943_v39  ;;  %v1634_v12 = vld [vmem:[#allocation3 + $0xb0] sm:$0xff] }
 0x3b1   : > { %v3342_v8 = vpop.eup %3341  ;;  %3355 = vpow2.f32 %v1947_v23  ;;  %v1642_v4 = vmul.f32 %v4756_v3, %v1634_v12 }
 0x3b2   : > { %1687 = vperm.xlu1 %3225, %v3332_v51   ;;  %3357 = vpow2.f32 %v1949_v57  ;;  %v1639_v60 = vmul.f32 %v3342_v8, %v1631_v40 }
 0x3b3   : > { %1707 = vperm.xlu0 %3226, %v4750_v27   ;;  %3359 = vpow2.f32 %v1953_v63 }
 0x3b4   : > { %v4762_v16 = vpop.eup %3343  ;;  %3361 = vpow2.f32 %v1957_v41 }
 0x3b5   : > { %v3346_v9 = vpop.eup %3345 }
 0x3b6   : > { %1697 = vperm.xlu1 %3225, %v3338_v0   ;;  %v1641_v31 = vmul.f32 %v3346_v9, %v1633_v35 }
 0x3b7   : > { %1717 = vperm.xlu0 %3226, %v4756_v3  }
 0x3b8   : > { %v4768_v1 = vpop.eup %3347 }
 0x3ba   : > { %1702 = vperm.xlu1 %3225, %v3342_v8   ;;  %v2033_v8 = vmul.f32 %v4762_v16, %v2025_v50 }
 0x3bb   : > { %2088 = vperm.xlu0 %3226, %v4762_v16   ;;  %v3350_v20 = vpop.eup %3349 }
 0x3bc   : > { %v4774_v11 = vpop.eup %3351  ;;  %v1643_v34 = vmul.f32 %v3350_v20, %v1635_v38 }
 0x3bd   : > { %v3354_v7 = vpop.eup %3353 }
 0x3be   : > { %1712 = vperm.xlu1 %3225, %v3346_v9   ;;  %v3356_v37 = vpop.eup %3355  ;;  %v2032_v10 = vmul.f32 %v3354_v7, %v2024_v19  ;;  %v2028_v9 = vld [vmem:[#allocation3 + $0xe0] sm:$0xff] }
 0x3bf   : > { %2103 = vperm.xlu0 %3226, %v4768_v1   ;;  %v3358_v28 = vpop.eup %3357  ;;  %v2034_v26 = vmul.f32 %v3356_v37, %v2026_v47  ;;  %v2036_v63 = vmul.f32 %v4768_v1, %v2028_v9 }
 0x3c0   : > { %v3360_v42 = vpop.eup %3359  ;;  %v2035_v27 = vmul.f32 %v3358_v28, %v2027_v17 }
 0x3c1   : > { %v4780_v21 = vpop.eup %3361  ;;  %v2037_v2 = vmul.f32 %v3360_v42, %v2029_v52  ;;  %v1680_v52 = vld [vmem:[#allocation4 + $0xc8] sm:$0xff] }
 0x3c2   : > { %1722 = vperm.xlu1 %3225, %v3350_v20   ;;  %v2039_v20 = vmul.f32 %v4780_v21, %v2031_v54 }
 0x3c3   : > { %2113 = vperm.xlu0 %3226, %v4774_v11  }
 0x3c6   : > { %2083 = vperm.xlu1 %3225, %v3354_v7   ;;  %v2030_v7 = vld [vmem:[#allocation3 + $0xf0] sm:$0xff] }
 0x3ca   : > { %2093 = vperm.xlu1 %3225, %v3356_v37  }
 0x3ce   : > { %2098 = vperm.xlu1 %3225, %v3358_v28   ;;  %v2038_v28 = vmul.f32 %v4774_v11, %v2030_v7  ;;  %v2074_v7 = vld [vmem:[#allocation4 + $0xd0] sm:$0xff] }
 0x3d2   : > { %2108 = vperm.xlu1 %3225, %v3360_v42   ;;  %v1378_v42 = vpop.f32.mrf.mxu1 }
 0x3d6   : > { %2118 = vperm.xlu1 %3225, %v4780_v21  }
 0x3ea   : > { %v1647_v14 = vpop.xlane.xlu1 %1646 }
 0x3eb   : > { %v1661_v51 = vadd.f32 %v1647_v14, %v1637_v36  ;;  %v3064_v14 = vpop.f32.mrf.mxu1 }
 0x3ed   : > { %1669 = vst.msk [vmem:[#allocation3 + $0x88] sm:$0xff] %vm828_vm1, %v1661_v51  ;;  %v1282_v51 = vld [vmem:[#allocation4 + $0x88] sm:$0xff]  ;;  %v1391_v40 = vpop.f32.mrf.mxu1 }
 0x3ef   : > { %v3065_v38 = vpop.f32.mrf.mxu1 }
 0x3f6   : > { %v1649_v56 = vpop.xlane.xlu0 %1648 }
 0x3f7   : > { %v1662_v22 = vadd.f32 %v1649_v56, %v1638_v53 }
 0x3f9   : > { %1670 = vst.msk [vmem:[#allocation3 + $0x90] sm:$0xff] %vm828_vm1, %v1662_v22  ;;  %v1284_v22 = vld [vmem:[#allocation4 + $0xb8] sm:$0xff] }
 0x3fa   : > { %v1651_v13 = vpop.xlane.xlu0 %1650 }
 0x3fb   : > { %v1663_v15 = vadd.f32 %v1651_v13, %v1639_v60  ;;  %v1285_v60 = vld [vmem:[#allocation4 + $0x60] sm:$0xff] }
 0x3fd   : > { %1671 = vst.msk [vmem:[#allocation3 + $0x98] sm:$0xff] %vm828_vm1, %v1663_v15 }
 0x3fe   : > { %v1655_v24 = vpop.xlane.xlu0 %1654 }
 0x3ff   : > { %v1665_v58 = vadd.f32 %v1655_v24, %v1641_v31 }
 0x401   : > { %1673 = vst.msk [vmem:[#allocation3 + $0xa8] sm:$0xff] %vm828_vm1, %v1665_v58  ;;  %v1286_v58 = vld [vmem:[#allocation4 + $0xf0] sm:$0xff] }
 0x402   : > { %v1659_v43 = vpop.xlane.xlu0 %1658 }
 0x403   : > { %v1667_v59 = vadd.f32 %v1659_v43, %v1643_v34  ;;  %v1287_v34 = vld [vmem:[#allocation4 + $0x8] sm:$0xff] }
 0x405   : > { %1675 = vst.msk [vmem:[#allocation3 + $0xb8] sm:$0xff] %vm828_vm1, %v1667_v59 }
 0x406   : > { %v1653_v25 = vpop.xlane.xlu1 %1652  ;;  %v2041_v44 = vpop.xlane.xlu0 %2040 }
 0x407   : > { %v1664_v46 = vadd.f32 %v1653_v25, %v1640_v33  ;;  %v2056_v6 = vadd.f32 %v2041_v44, %v2032_v10  ;;  %v1394_v25 = vpop.f32.mrf.mxu1  ;;  %v1288_v44 = vld [vmem:[#allocation4 + $0x78] sm:$0xff] }
 0x409   : > { %1672 = vst.msk [vmem:[#allocation3 + $0xa0] sm:$0xff] %vm828_vm1, %v1664_v46  ;;  %2064 = vst.msk [vmem:[#allocation3 + $0xc0] sm:$0xff] %vm828_vm1, %v2056_v6 }
 0x40a   : > { %v2045_v5 = vpop.xlane.xlu0 %2044 }
 0x40b   : > { %v2058_v62 = vadd.f32 %v2045_v5, %v2034_v26 }
 0x40d   : > { %2066 = vst.msk [vmem:[#allocation3 + $0xd0] sm:$0xff] %vm828_vm1, %v2058_v62  ;;  %v1679_v62 = vld [vmem:[#allocation4 + $0x40] sm:$0xff] }
 0x40e   : > { %v1657_v39 = vpop.xlane.xlu1 %1656  ;;  %v2047_v0 = vpop.xlane.xlu0 %2046 }
 0x40f   : > { %v1666_v45 = vadd.f32 %v1657_v39, %v1642_v4  ;;  %v2059_v23 = vadd.f32 %v2047_v0, %v2035_v27  ;;  %v1677_v4 = vld [vmem:[#allocation4 + $0x38] sm:$0xff] }
 0x411   : > { %1674 = vst.msk [vmem:[#allocation3 + $0xb0] sm:$0xff] %vm828_vm1, %v1666_v45  ;;  %2067 = vst.msk [vmem:[#allocation3 + $0xd8] sm:$0xff] %vm828_vm1, %v2059_v23  ;;  %v1678_v45 = vld [vmem:[#allocation4 + $0x58] sm:$0xff] }
 0x412   : > { %v2043_v32 = vpop.xlane.xlu1 %2042  ;;  %v2051_v57 = vpop.xlane.xlu0 %2050 }
 0x413   : > { %v2057_v30 = vadd.f32 %v2043_v32, %v2033_v8  ;;  %v2061_v3 = vadd.f32 %v2051_v57, %v2037_v2 }
 0x415   : > { %2065 = vst.msk [vmem:[#allocation3 + $0xc8] sm:$0xff] %vm828_vm1, %v2057_v30  ;;  %2069 = vst.msk [vmem:[#allocation3 + $0xe8] sm:$0xff] %vm828_vm1, %v2061_v3 }
 0x416   : > { %v2049_v29 = vpop.xlane.xlu1 %2048  ;;  %v2055_v41 = vpop.xlane.xlu0 %2054 }
 0x417   : > { %v2060_v16 = vadd.f32 %v2049_v29, %v2036_v63  ;;  %v2063_v37 = vadd.f32 %v2055_v41, %v2039_v20 }
 0x419   : > { %2068 = vst.msk [vmem:[#allocation3 + $0xe0] sm:$0xff] %vm828_vm1, %v2060_v16  ;;  %2071 = vst.msk [vmem:[#allocation3 + $0xf8] sm:$0xff] %vm828_vm1, %v2063_v37 }
 0x41a   : > { %v2053_v48 = vpop.xlane.xlu1 %2052 }
 0x41b   : > { %v2062_v36 = vadd.f32 %v2053_v48, %v2038_v28  ;;  %v2073_v48 = vld [vmem:[#allocation4 + $0xa8] sm:$0xff] }
 0x41d   : > { %2070 = vst.msk [vmem:[#allocation3 + $0xf0] sm:$0xff] %vm828_vm1, %v2062_v36 }
 0x41e   : > { %v1297_v1 = vpop.permute.xlu1 %1296  ;;  %v1302_v21 = vpop.permute.xlu0 %1301 }
 0x41f   : > { %v1330_v53 = vmul.f32 %v1297_v1, %v1282_v51  ;;  %v1331_v56 = vmul.f32 %v1302_v21, %v1283_v61  ;;  %v1683_v1 = vld [vmem:[#allocation4 + $0x70] sm:$0xff] }
 0x421   : > { %v1407_v13 = vadd.f32 %v1378_v42, %v1330_v53  ;;  %v1408_v35 = vadd.f32 %v4690_v55, %v1331_v56  ;;  %v2075_v53 = vld [vmem:[#allocation4 + $0x10] sm:$0xff]  ;;  %v1681_v56 = vld [vmem:[#allocation4 + $0xe0] sm:$0xff] }
 0x422   : > { %v1307_v15 = vpop.permute.xlu1 %1306  ;;  %v1312_v11 = vpop.permute.xlu0 %1311 }
 0x423   : > { %1415 = vst [vmem:[#allocation4 + $0x88] sm:$0xff] %v1407_v13  ;;  %1416 = vst [vmem:[#allocation4 + $0xe8] sm:$0xff] %v1408_v35  ;;  %v1332_v31 = vmul.f32 %v1307_v15, %v1284_v22  ;;  %v1333_v24 = vmul.f32 %v1312_v11, %v1285_v60  ;;  %v1684_v13 = vld [vmem:[#allocation4 + $0xc0] sm:$0xff] }
 0x424   : > { %v2079_v35 = vld [vmem:[#allocation4 + $0x20] sm:$0xff] }
 0x425   : > { %v1409_v43 = vadd.f32 %v3061_v49, %v1332_v31  ;;  %v1410_v18 = vadd.f32 %v1391_v40, %v1333_v24 }
 0x426   : > { %v1317_v19 = vpop.permute.xlu1 %1316  ;;  %v1322_v59 = vpop.permute.xlu0 %1321 }
 0x427   : > { %1417 = vst [vmem:[#allocation4 + $0xb8] sm:$0xff] %v1409_v43  ;;  %1418 = vst [vmem:[#allocation4 + $0x60] sm:$0xff] %v1410_v18  ;;  %v1334_v33 = vmul.f32 %v1317_v19, %v1286_v58  ;;  %v1335_v10 = vmul.f32 %v1322_v59, %v1287_v34  ;;  %v2076_v58 = vld [vmem:[#allocation4 + $0x28] sm:$0xff]  ;;  %v1682_v34 = vld [vmem:[#allocation4 + $0x90] sm:$0xff] }
 0x428   : > { %v2077_v43 = vld [vmem:[#allocation4 + $0xa0] sm:$0xff] }
 0x429   : > { %v1411_v55 = vadd.f32 %v1394_v25, %v1334_v33  ;;  %v1412_v47 = vadd.f32 %v3064_v14, %v1335_v10 }
 0x42a   : > { %v1327_v46 = vpop.permute.xlu1 %1326  ;;  %v1693_v6 = vpop.permute.xlu0 %1692 }
 0x42b   : > { %1419 = vst [vmem:[#allocation4 + $0xf0] sm:$0xff] %v1411_v55  ;;  %1420 = vst [vmem:[#allocation4 + $0x8] sm:$0xff] %v1412_v47  ;;  %v1336_v26 = vmul.f32 %v1327_v46, %v1288_v44  ;;  %v1726_v30 = vmul.f32 %v1693_v6, %v1678_v45  ;;  %v2080_v45 = vld [vmem:[#allocation4 + $0x98] sm:$0xff] }
 0x42d   : > { %v1413_v5 = vadd.f32 %v3065_v38, %v1336_v26 }
 0x42e   : > { %v1688_v12 = vpop.permute.xlu1 %1687  ;;  %v1708_v17 = vpop.permute.xlu0 %1707 }
 0x42f   : > { %1421 = vst [vmem:[#allocation4 + $0x78] sm:$0xff] %v1413_v5  ;;  %v1725_v50 = vmul.f32 %v1688_v12, %v1677_v4  ;;  %v1729_v24 = vmul.f32 %v1708_v17, %v1681_v56  ;;  %v2078_v12 = vld [vmem:[#allocation4 + $0xf8] sm:$0xff] }
 0x432   : > { %v1698_v27 = vpop.permute.xlu1 %1697  ;;  %v1718_v23 = vpop.permute.xlu0 %1717 }
 0x433   : > { %v1727_v39 = vmul.f32 %v1698_v27, %v1679_v62  ;;  %v3084_v0 = vpop.f32.mrf.mxu0  ;;  %v1731_v22 = vmul.f32 %v1718_v23, %v1683_v1 }
 0x435   : > { %v1804_v8 = vadd.f32 %v3084_v0, %v1727_v39  ;;  %v1771_v2 = vpop.f32.mrf.mxu0 }
 0x436   : > { %v1802_v32 = vadd.f32 %v1771_v2, %v1725_v50  ;;  %v1703_v57 = vpop.permute.xlu1 %1702  ;;  %v2089_v29 = vpop.permute.xlu0 %2088 }
 0x437   : > { %1812 = vst [vmem:[#allocation4 + $0x40] sm:$0xff] %v1804_v8  ;;  %v1728_v9 = vmul.f32 %v1703_v57, %v1680_v52  ;;  %v3085_v54 = vpop.f32.mrf.mxu0  ;;  %v2122_v42 = vmul.f32 %v2089_v29, %v2074_v7 }
 0x438   : > { %1810 = vst [vmem:[#allocation4 + $0x38] sm:$0xff] %v1802_v32 }
 0x439   : > { %v1805_v3 = vadd.f32 %v3085_v54, %v1728_v9  ;;  %v1774_v49 = vpop.f32.mrf.mxu0 }
 0x43a   : > { %v1803_v63 = vadd.f32 %v1774_v49, %v1726_v30  ;;  %v1713_v20 = vpop.permute.xlu1 %1712  ;;  %v2104_v36 = vpop.permute.xlu0 %2103 }
 0x43b   : > { %1813 = vst [vmem:[#allocation4 + $0xc8] sm:$0xff] %v1805_v3  ;;  %v3108_v41 = vpop.f32.mrf.mxu1  ;;  %v1730_v46 = vmul.f32 %v1713_v20, %v1682_v34  ;;  %v2125_v6 = vmul.f32 %v2104_v36, %v2077_v43 }
 0x43c   : > { %1811 = vst [vmem:[#allocation4 + $0x58] sm:$0xff] %v1803_v63 }
 0x43d   : > { %v2167_v16 = vpop.f32.mrf.mxu1 }
 0x43e   : > { %v1723_v37 = vpop.permute.xlu1 %1722  ;;  %v2114_v15 = vpop.permute.xlu0 %2113 }
 0x43f   : > { %v3109_v28 = vpop.f32.mrf.mxu1  ;;  %v1732_v59 = vmul.f32 %v1723_v37, %v1684_v13  ;;  %v2127_v33 = vmul.f32 %v2114_v15, %v2079_v35 }
 0x441   : > { %v2170_v14 = vpop.f32.mrf.mxu1 }
 0x442   : > { %v2199_v51 = vadd.f32 %v2170_v14, %v2122_v42  ;;  %v2084_v61 = vpop.permute.xlu1 %2083 }
 0x443   : > { %v2121_v21 = vmul.f32 %v2084_v61, %v2073_v48 }
 0x444   : > { %2207 = vst [vmem:[#allocation4 + $0xd0] sm:$0xff] %v2199_v51 }
 0x445   : > { %v2198_v40 = vadd.f32 %v2167_v16, %v2121_v21 }
 0x446   : > { %v2094_v60 = vpop.permute.xlu1 %2093 }
 0x447   : > { %2206 = vst [vmem:[#allocation4 + $0xa8] sm:$0xff] %v2198_v40  ;;  %v2123_v11 = vmul.f32 %v2094_v60, %v2075_v53  ;;  %v3088_v31 = vpop.f32.mrf.mxu0 }
 0x448   : > { %v1808_v38 = vadd.f32 %v3088_v31, %v1731_v22 }
 0x449   : > { %v2200_v18 = vadd.f32 %v3108_v41, %v2123_v11  ;;  %v1787_v19 = vpop.f32.mrf.mxu0 }
 0x44a   : > { %1816 = vst [vmem:[#allocation4 + $0x70] sm:$0xff] %v1808_v38  ;;  %v1806_v10 = vadd.f32 %v1787_v19, %v1729_v24  ;;  %v2099_v25 = vpop.permute.xlu1 %2098 }
 0x44b   : > { %2208 = vst [vmem:[#allocation4 + $0x10] sm:$0xff] %v2200_v18  ;;  %v2124_v44 = vmul.f32 %v2099_v25, %v2076_v58  ;;  %v3089_v55 = vpop.f32.mrf.mxu0  ;;  %v3112_v47 = vpop.f32.mrf.mxu1 }
 0x44c   : > { %1814 = vst [vmem:[#allocation4 + $0xe0] sm:$0xff] %v1806_v10  ;;  %v1809_v26 = vadd.f32 %v3089_v55, %v1732_v59  ;;  %v2204_v5 = vadd.f32 %v3112_v47, %v2127_v33 }
 0x44d   : > { %v2201_v17 = vadd.f32 %v3109_v28, %v2124_v44  ;;  %v1790_v62 = vpop.f32.mrf.mxu0  ;;  %v2183_v4 = vpop.f32.mrf.mxu1 }
 0x44e   : > { %1817 = vst [vmem:[#allocation4 + $0xc0] sm:$0xff] %v1809_v26  ;;  %2212 = vst [vmem:[#allocation4 + $0x20] sm:$0xff] %v2204_v5  ;;  %v1807_v27 = vadd.f32 %v1790_v62, %v1730_v46  ;;  %v2202_v39 = vadd.f32 %v2183_v4, %v2125_v6  ;;  %v2109_v0 = vpop.permute.xlu1 %2108 }
 0x44f   : > { %2209 = vst [vmem:[#allocation4 + $0x28] sm:$0xff] %v2201_v17  ;;  %v2126_v50 = vmul.f32 %v2109_v0, %v2078_v12  ;;  %v3113_v52 = vpop.f32.mrf.mxu1 }
 0x450   : > { %1815 = vst [vmem:[#allocation4 + $0x90] sm:$0xff] %v1807_v27  ;;  %2210 = vst [vmem:[#allocation4 + $0xa0] sm:$0xff] %v2202_v39 }
 0x451   : > { %v2186_v23 = vpop.f32.mrf.mxu1 }
 0x452   : > { %v2203_v8 = vadd.f32 %v2186_v23, %v2126_v50  ;;  %v2119_v2 = vpop.permute.xlu1 %2118 }
 0x453   : > { %v2128_v32 = vmul.f32 %v2119_v2, %v2080_v45  ;;  %2225 = sbr.rel (%p2951_p8) target bundleno = 1636 (0x664), region = 98 }
 0x454   : > { %2211 = vst [vmem:[#allocation4 + $0xf8] sm:$0xff] %v2203_v8 }
 0x455   : > { %v2205_v57 = vadd.f32 %v3113_v52, %v2128_v32 }
 0x457   : > { %2213 = vst [vmem:[#allocation4 + $0x98] sm:$0xff] %v2205_v57 }
 0x458   : > { %v2228_v9 = vld [vmem:[#allocation3 + $0x10] sm:$0xff]  ;;  %v2226_v54 = vld [vmem:[#allocation3] sm:$0xff]  ;;  %v2229_v30 = vld [vmem:[#allocation3 + $0x18] sm:$0xff]  ;;  %v3561_v3 = vmov 0  }
 0x459   : > { %3364 = vset.pattern.permute.xlu1 %v3561_v3  ;;  %3363 = vset.pattern.permute.xlu0 %v3561_v3  ;;  %3365 = vrcp.f32 %v2228_v9  ;;  %v2227_v49 = vld [vmem:[#allocation3 + $0x8] sm:$0xff]  ;;  %v2230_v20 = vld [vmem:[#allocation3 + $0x20] sm:$0xff]  ;;  %v2233_v29 = vld [vmem:[#allocation3 + $0x38] sm:$0xff] }
 0x45a   : > { %3367 = vrcp.f32 %v2226_v54  ;;  %v2231_v63 = vld [vmem:[#allocation3 + $0x28] sm:$0xff]  ;;  %v2232_v41 = vld [vmem:[#allocation3 + $0x30] sm:$0xff]  ;;  %v2321_v16 = vld [vmem:[#allocation3 + $0x40] sm:$0xff] }
 0x45b   : > { %3369 = vrcp.f32 %v2229_v30  ;;  %v2322_v7 = vld [vmem:[#allocation3 + $0x48] sm:$0xff]  ;;  %v2324_v48 = vld [vmem:[#allocation3 + $0x58] sm:$0xff]  ;;  %v2323_v14 = vld [vmem:[#allocation3 + $0x50] sm:$0xff] }
 0x45c   : > { %3371 = vrcp.f32 %v2227_v49  ;;  %v2326_v61 = vld [vmem:[#allocation3 + $0x68] sm:$0xff]  ;;  %v2325_v21 = vld [vmem:[#allocation3 + $0x60] sm:$0xff]  ;;  %v2328_v56 = vld [vmem:[#allocation3 + $0x78] sm:$0xff] }
 0x45d   : > { %3373 = vrcp.f32 %v2231_v63  ;;  %v2327_v22 = vld [vmem:[#allocation3 + $0x70] sm:$0xff]  ;;  %v2418_v13 = vld [vmem:[#allocation3 + $0x88] sm:$0xff]  ;;  %v2417_v15 = vld [vmem:[#allocation3 + $0x80] sm:$0xff] }
 0x45e   : > { %3375 = vrcp.f32 %v2230_v20  ;;  %v2420_v31 = vld [vmem:[#allocation3 + $0x98] sm:$0xff]  ;;  %v2419_v38 = vld [vmem:[#allocation3 + $0x90] sm:$0xff]  ;;  %v2422_v34 = vld [vmem:[#allocation3 + $0xa8] sm:$0xff] }
 0x45f   : > { %3377 = vrcp.f32 %v2233_v29  ;;  %v2421_v18 = vld [vmem:[#allocation3 + $0xa0] sm:$0xff]  ;;  %v2424_v59 = vld [vmem:[#allocation3 + $0xb8] sm:$0xff]  ;;  %v2423_v10 = vld [vmem:[#allocation3 + $0xb0] sm:$0xff] }
 0x460   : > { %3379 = vrcp.f32 %v2232_v41  ;;  %v2514_v44 = vld [vmem:[#allocation3 + $0xc8] sm:$0xff]  ;;  %v2513_v47 = vld [vmem:[#allocation3 + $0xc0] sm:$0xff]  ;;  %v2516_v6 = vld [vmem:[#allocation3 + $0xd8] sm:$0xff] }
 0x461   : > { %3381 = vrcp.f32 %v2322_v7  ;;  %v2515_v5 = vld [vmem:[#allocation3 + $0xd0] sm:$0xff]  ;;  %v2518_v17 = vld [vmem:[#allocation3 + $0xe8] sm:$0xff]  ;;  %v2517_v4 = vld [vmem:[#allocation3 + $0xe0] sm:$0xff] }
 0x462   : > { %3383 = vrcp.f32 %v2321_v16  ;;  %v2520_v39 = vld [vmem:[#allocation3 + $0xf8] sm:$0xff]  ;;  %v2519_v50 = vld [vmem:[#allocation3 + $0xf0] sm:$0xff] }
 0x463   : > { %3385 = vrcp.f32 %v2324_v48 }
 0x464   : > { %3387 = vrcp.f32 %v2323_v14 }
 0x465   : > { %3389 = vrcp.f32 %v2326_v61 }
 0x466   : > { %v3366_v37 = vpop.eup %3365  ;;  %3391 = vrcp.f32 %v2325_v21  ;;  %v2244_v21 = vld [vmem:[#allocation4 + $0xd8] sm:$0xff] }
 0x467   : > { %v3368_v28 = vpop.eup %3367  ;;  %2262 = vperm.xlu1 %3364, %v3366_v37   ;;  %3393 = vrcp.f32 %v2328_v56  ;;  %v2242_v56 = vld [vmem:[#allocation4 + $0xb0] sm:$0xff] }
 0x468   : > { %v3370_v42 = vpop.eup %3369  ;;  %2252 = vperm.xlu0 %3363, %v3368_v28   ;;  %3395 = vrcp.f32 %v2327_v22  ;;  %v2338_v22 = vld [vmem:[#allocation4 + $0x88] sm:$0xff] }
 0x469   : > { %v3372_v36 = vpop.eup %3371  ;;  %3397 = vrcp.f32 %v2418_v13  ;;  %v2337_v13 = vld [vmem:[#allocation4 + $0x80] sm:$0xff] }
 0x46a   : > { %v3374_v51 = vpop.eup %3373  ;;  %3399 = vrcp.f32 %v2417_v15  ;;  %v2247_v15 = vld [vmem:[#allocation4 + $0x68] sm:$0xff] }
 0x46b   : > { %2267 = vperm.xlu1 %3364, %v3370_v42   ;;  %v3376_v1 = vpop.eup %3375  ;;  %3401 = vrcp.f32 %v2420_v31  ;;  %v2434_v31 = vld [vmem:[#allocation4 + $0x58] sm:$0xff] }
 0x46c   : > { %2257 = vperm.xlu0 %3363, %v3372_v36   ;;  %v3378_v53 = vpop.eup %3377  ;;  %3403 = vrcp.f32 %v2419_v38 }
 0x46d   : > { %v3380_v40 = vpop.eup %3379  ;;  %3405 = vrcp.f32 %v2422_v34  ;;  %v2246_v34 = vld [vmem:[#allocation4 + $0x50] sm:$0xff] }
 0x46e   : > { %v3382_v60 = vpop.eup %3381  ;;  %3407 = vrcp.f32 %v2421_v18  ;;  %v2433_v18 = vld [vmem:[#allocation4 + $0x38] sm:$0xff] }
 0x46f   : > { %2277 = vperm.xlu1 %3364, %v3374_v51   ;;  %v3384_v35 = vpop.eup %3383  ;;  %3409 = vrcp.f32 %v2424_v59  ;;  %v4819_v59 = vld [vmem:[%s5033_s4] ss:$0 sm:$0xff] }
 0x470   : > { %2272 = vperm.xlu0 %3363, %v3376_v1   ;;  %v3386_v11 = vpop.eup %3385  ;;  %3411 = vrcp.f32 %v2423_v10 }
 0x471   : > { %v3388_v24 = vpop.eup %3387  ;;  %3413 = vrcp.f32 %v2514_v44  ;;  %v4824_v44 = vld [vmem:[%s5033_s4 + $0x1] ss:$0 sm:$0xff] }
 0x472   : > { %v3390_v58 = vpop.eup %3389  ;;  %3415 = vrcp.f32 %v2513_v47 }
 0x473   : > { %2287 = vperm.xlu1 %3364, %v3378_v53   ;;  %v3392_v43 = vpop.eup %3391  ;;  %3417 = vrcp.f32 %v2516_v6 }
 0x474   : > { %2282 = vperm.xlu0 %3363, %v3380_v40   ;;  %v3394_v19 = vpop.eup %3393  ;;  %3419 = vrcp.f32 %v2515_v5  ;;  %v2245_v40 = vld [vmem:[#allocation4 + $0x18] sm:$0xff] }
 0x475   : > { %v3396_v33 = vpop.eup %3395  ;;  %3421 = vrcp.f32 %v2518_v17  ;;  %v4829_v17 = vld [vmem:[%s5033_s4 + $0x2] ss:$0 sm:$0xff] }
 0x476   : > { %v3398_v25 = vpop.eup %3397  ;;  %3423 = vrcp.f32 %v2517_v4 }
 0x477   : > { %2352 = vperm.xlu1 %3364, %v3382_v60   ;;  %v3400_v55 = vpop.eup %3399  ;;  %3425 = vrcp.f32 %v2520_v39  ;;  %v2243_v60 = vld [vmem:[#allocation4] sm:$0xff] }
 0x478   : > { %2347 = vperm.xlu0 %3363, %v3384_v35   ;;  %v3402_v46 = vpop.eup %3401  ;;  %3427 = vrcp.f32 %v2519_v50  ;;  %v2340_v35 = vld [vmem:[#allocation4 + $0xb8] sm:$0xff] }
 0x479   : > { %v3404_v26 = vpop.eup %3403 }
 0x47a   : > { %v3406_v12 = vpop.eup %3405 }
 0x47b   : > { %2362 = vperm.xlu1 %3364, %v3386_v11   ;;  %v3408_v62 = vpop.eup %3407  ;;  %v2339_v11 = vld [vmem:[#allocation4 + $0xe8] sm:$0xff] }
 0x47c   : > { %2357 = vperm.xlu0 %3363, %v3388_v24   ;;  %v3410_v27 = vpop.eup %3409 }
 0x47d   : > { %v3412_v0 = vpop.eup %3411 }
 0x47e   : > { %v3414_v52 = vpop.eup %3413 }
 0x47f   : > { %2372 = vperm.xlu1 %3364, %v3390_v58   ;;  %v3416_v45 = vpop.eup %3415 }
 0x480   : > { %2367 = vperm.xlu0 %3363, %v3392_v43   ;;  %v3418_v23 = vpop.eup %3417 }
 0x481   : > { %v3420_v8 = vpop.eup %3419 }
 0x482   : > { %v3422_v2 = vpop.eup %3421 }
 0x483   : > { %2382 = vperm.xlu1 %3364, %v3394_v19   ;;  %v3424_v32 = vpop.eup %3423 }
 0x484   : > { %2377 = vperm.xlu0 %3363, %v3396_v33   ;;  %v3426_v57 = vpop.eup %3425 }
 0x485   : > { %v3428_v9 = vpop.eup %3427 }
 0x487   : > { %2448 = vperm.xlu1 %3364, %v3398_v25   ;;  %v2248_v25 = vld [vmem:[#allocation4 + $0x30] sm:$0xff] }
 0x488   : > { %2443 = vperm.xlu0 %3363, %v3400_v55  }
 0x48b   : > { %2458 = vperm.xlu1 %3364, %v3402_v46  }
 0x48c   : > { %2453 = vperm.xlu0 %3363, %v3404_v26  }
 0x48f   : > { %2468 = vperm.xlu1 %3364, %v3406_v12   ;;  %v2341_v12 = vld [vmem:[#allocation4 + $0x60] sm:$0xff] }
 0x490   : > { %2463 = vperm.xlu0 %3363, %v3408_v62  }
 0x493   : > { %2478 = vperm.xlu1 %3364, %v3410_v27  }
 0x494   : > { %2473 = vperm.xlu0 %3363, %v3412_v0   ;;  %v2249_v0 = vld [vmem:[#allocation4 + $0x48] sm:$0xff] }
 0x497   : > { %2544 = vperm.xlu1 %3364, %v3414_v52  }
 0x498   : > { %2539 = vperm.xlu0 %3363, %v3416_v45   ;;  %v2435_v45 = vld [vmem:[#allocation4 + $0x40] sm:$0xff] }
 0x49b   : > { %2554 = vperm.xlu1 %3364, %v3418_v23  }
 0x49c   : > { %2549 = vperm.xlu0 %3363, %v3420_v8  }
 0x49f   : > { %2564 = vperm.xlu1 %3364, %v3422_v2  }
 0x4a0   : > { %2559 = vperm.xlu0 %3363, %v3424_v32  }
 0x4a3   : > { %2574 = vperm.xlu1 %3364, %v3426_v57  }
 0x4a4   : > { %2569 = vperm.xlu0 %3363, %v3428_v9   ;;  %v2436_v9 = vld [vmem:[#allocation4 + $0xc8] sm:$0xff] }
 0x4e2   : > { %v2263_v54 = vpop.permute.xlu1 %2262 }
 0x4e3   : > { %v2253_v30 = vpop.permute.xlu0 %2252  ;;  %v2292_v38 = vmul.f32 %v2263_v54, %v2244_v21  ;;  %v2530_v54 = vld [vmem:[#allocation4 + $0xd0] sm:$0xff] }
 0x4e4   : > { %v2290_v58 = vmul.f32 %v2253_v30, %v2242_v56 }
 0x4e5   : > { %v2307_v27 = vmul.f32 %v4819_v59, %v2292_v38 }
 0x4e6   : > { %v2268_v3 = vpop.permute.xlu1 %2267  ;;  %v2305_v39 = vmul.f32 %v4819_v59, %v2290_v58 }
 0x4e7   : > { %v2258_v49 = vpop.permute.xlu0 %2257  ;;  %v2293_v33 = vmul.f32 %v2268_v3, %v2245_v40  ;;  %v2437_v40 = vld [vmem:[#allocation4 + $0xe0] sm:$0xff] }
 0x4e8   : > { %v2291_v10 = vmul.f32 %v2258_v49, %v2243_v60  ;;  %v2342_v49 = vld [vmem:[#allocation4 + $0xf0] sm:$0xff] }
 0x4e9   : > { %v2308_v8 = vmul.f32 %v4819_v59, %v2293_v33  ;;  %v2344_v33 = vld [vmem:[#allocation4 + $0x78] sm:$0xff] }
 0x4ea   : > { %v2278_v63 = vpop.permute.xlu1 %2277  ;;  %v2306_v2 = vmul.f32 %v4819_v59, %v2291_v10 }
 0x4eb   : > { %v2273_v20 = vpop.permute.xlu0 %2272  ;;  %v2295_v46 = vmul.f32 %v2278_v63, %v2247_v15  ;;  %v2343_v15 = vld [vmem:[#allocation4 + $0x8] sm:$0xff] }
 0x4ec   : > { %v2294_v5 = vmul.f32 %v2273_v20, %v2246_v34  ;;  %v2438_v34 = vld [vmem:[#allocation4 + $0x90] sm:$0xff] }
 0x4ed   : > { %v4841_v30 = vmul.f32 %v4819_v59, %v2295_v46  ;;  %v4866_v46 = vld [vmem:[%s5034_s5] ss:$0 sm:$0xff] }
 0x4ee   : > { %v4806_v29 = vpop.permute.xlu1 %2287 }
 0x4ef   : > { %v2283_v41 = vpop.permute.xlu0 %2282 }
 0x4f0   : > { %v2296_v50 = vmul.f32 %v2283_v41, %v2248_v25  ;;  %v2529_v41 = vld [vmem:[#allocation4 + $0xa8] sm:$0xff] }
 0x4f2   : > { %v2353_v7 = vpop.permute.xlu1 %2352  ;;  %v4856_v21 = vmul.f32 %v4819_v59, %v2296_v50 }
 0x4f3   : > { %v2348_v16 = vpop.permute.xlu0 %2347  ;;  %v2386_v43 = vmul.f32 %v2353_v7, %v2338_v22  ;;  %v2309_v7 = vmul.f32 %v4819_v59, %v2294_v5 }
 0x4f4   : > { %v2385_v55 = vmul.f32 %v2348_v16, %v2337_v13  ;;  %v4847_v16 = vmul.f32 %v4806_v29, %v2249_v0  ;;  %v2534_v0 = vld [vmem:[#allocation4 + $0xf8] sm:$0xff] }
 0x4f5   : > { %v2402_v52 = vmul.f32 %v4824_v44, %v2386_v43 }
 0x4f6   : > { %v2363_v37 = vpop.permute.xlu1 %2362  ;;  %v2401_v32 = vmul.f32 %v4824_v44, %v2385_v55  ;;  %v2439_v55 = vld [vmem:[#allocation4 + $0x70] sm:$0xff] }
 0x4f7   : > { %v2358_v28 = vpop.permute.xlu0 %2357  ;;  %v2388_v47 = vmul.f32 %v2363_v37, %v2340_v35 }
 0x4f8   : > { %v2387_v6 = vmul.f32 %v2358_v28, %v2339_v11  ;;  %v2409_v13 = vadd.f32 %v2401_v32, %v2305_v39  ;;  %v2532_v11 = vld [vmem:[#allocation4 + $0x28] sm:$0xff]  ;;  %v2533_v32 = vld [vmem:[#allocation4 + $0xa0] sm:$0xff] }
 0x4f9   : > { %v2404_v57 = vmul.f32 %v4824_v44, %v2388_v47 }
 0x4fa   : > { %v4808_v42 = vpop.permute.xlu1 %2372  ;;  %v2403_v3 = vmul.f32 %v4824_v44, %v2387_v6 }
 0x4fb   : > { %v2368_v48 = vpop.permute.xlu0 %2367  ;;  %v2412_v29 = vadd.f32 %v2404_v57, %v2308_v8  ;;  %v2390_v35 = vmul.f32 %v4808_v42, %v2342_v49 }
 0x4fc   : > { %v2389_v63 = vmul.f32 %v2368_v48, %v2341_v12  ;;  %v2410_v48 = vadd.f32 %v2402_v52, %v2306_v2 }
 0x4fe   : > { %v4810_v36 = vpop.permute.xlu1 %2382  ;;  %v2405_v38 = vmul.f32 %v4824_v44, %v2389_v63 }
 0x4ff   : > { %v4812_v14 = vpop.permute.xlu0 %2377  ;;  %v2392_v52 = vmul.f32 %v4810_v36, %v2344_v33 }
 0x500   : > { %v2391_v6 = vmul.f32 %v4812_v14, %v2343_v15  ;;  %v2413_v49 = vadd.f32 %v2405_v38, %v2309_v7 }
 0x501   : > { %v2408_v7 = vmul.f32 %v4824_v44, %v2392_v52 }
 0x502   : > { %v2449_v51 = vpop.permute.xlu1 %2448  ;;  %v2407_v36 = vmul.f32 %v4824_v44, %v2391_v6  ;;  %v5186_v6 = vlaneseq }
 0x503   : > { %v2444_v61 = vpop.permute.xlu0 %2443  ;;  %v2482_v26 = vmul.f32 %v2449_v51, %v2434_v31  ;;  %v4853_v51 = vld [vmem:[%s5033_s4 + $0x3] ss:$0 sm:$0xff]  ;;  %v2411_v31 = vadd.f32 %v2403_v3, %v2307_v27  ;;  %v2406_v27 = vmul.f32 %v4824_v44, %v2390_v35 }
 0x504   : > { %v2481_v62 = vmul.f32 %v2444_v61, %v2433_v18  ;;  %v2531_v18 = vld [vmem:[#allocation4 + $0x10] sm:$0xff] }
 0x505   : > { %v2498_v20 = vmul.f32 %v4829_v17, %v2482_v26 }
 0x506   : > { %v2459_v1 = vpop.permute.xlu1 %2458  ;;  %v2497_v37 = vmul.f32 %v4829_v17, %v2481_v62 }
 0x507   : > { %v2454_v53 = vpop.permute.xlu0 %2453  ;;  %v2484_v56 = vmul.f32 %v2459_v1, %v2436_v9  ;;  %v2506_v58 = vadd.f32 %v2498_v20, %v2410_v48 }
 0x508   : > { %v2483_v28 = vmul.f32 %v2454_v53, %v2435_v45  ;;  %v2505_v1 = vadd.f32 %v2497_v37, %v2409_v13  ;;  %v2440_v45 = vld [vmem:[#allocation4 + $0xc0] sm:$0xff] }
 0x509   : > { %v2500_v26 = vmul.f32 %v4829_v17, %v2484_v56  ;;  %v2414_v56 = vadd.f32 %v2406_v27, %v4841_v30  ;;  %v3562_v27 = vmov 0.0  }
 0x50a   : > { %v4814_v24 = vpop.permute.xlu1 %2468  ;;  %v2499_v10 = vmul.f32 %v4829_v17, %v2483_v28 }
 0x50b   : > { %v2464_v19 = vpop.permute.xlu0 %2463  ;;  %v2508_v63 = vadd.f32 %v2500_v26, %v2412_v29  ;;  %v2625_v26 = vand.u32 127, %v5186_v6 }
 0x50c   : > { %v2485_v25 = vmul.f32 %v2464_v19, %v2437_v40  ;;  %v2486_v19 = vmul.f32 %v4814_v24, %v2438_v34  ;;  %v2507_v57 = vadd.f32 %v2499_v10, %v2411_v31 }
 0x50d   : > { %vm2626_vm1 = vcmp.lt.s32.totalorder %v2625_v26, 32 }
 0x50e   : > { %v4831_v4 = vpop.permute.xlu1 %2478  ;;  %v2501_v9 = vmul.f32 %v4829_v17, %v2485_v25 }
 0x50f   : > { %v2474_v23 = vpop.permute.xlu0 %2473  ;;  %v2488_v37 = vmul.f32 %v4831_v4, %v2440_v45 }
 0x510   : > { %v2487_v8 = vmul.f32 %v2474_v23, %v2439_v55  ;;  %v2509_v13 = vadd.f32 %v2501_v9, %v2413_v49 }
 0x511   : > { %v2504_v38 = vmul.f32 %v4829_v17, %v2488_v37 }
 0x512   : > { %v2545_v61 = vpop.permute.xlu1 %2544  ;;  %v2503_v40 = vmul.f32 %v4829_v17, %v2487_v8 }
 0x513   : > { %v2578_v22 = vmul.f32 %v2545_v61, %v2530_v54  ;;  %v2540_v60 = vpop.permute.xlu0 %2539  ;;  %v2536_v61 = vld [vmem:[#allocation4 + $0x98] sm:$0xff] }
 0x514   : > { %v2577_v53 = vmul.f32 %v2540_v60, %v2529_v41  ;;  %v2502_v41 = vmul.f32 %v4829_v17, %v2486_v19  ;;  %v2960_v19 = vsel %vm2626_vm1, 1.0, %v3562_v27 }
 0x515   : > { %v2594_v43 = vmul.f32 %v4853_v51, %v2578_v22  ;;  %v2535_v22 = vld [vmem:[#allocation4 + $0x20] sm:$0xff] }
 0x516   : > { %v2593_v47 = vmul.f32 %v4853_v51, %v2577_v53  ;;  %v2555_v42 = vpop.permute.xlu1 %2554  ;;  %v2312_v53 = vmul.f32 %v4819_v59, %v4847_v16  ;;  %v2510_v44 = vadd.f32 %v2502_v41, %v2414_v56 }
 0x517   : > { %v2580_v5 = vmul.f32 %v2555_v42, %v2532_v11  ;;  %v2550_v12 = vpop.permute.xlu0 %2549  ;;  %v2602_v62 = vadd.f32 %v2594_v43, %v2506_v58  ;;  %v2415_v11 = vadd.f32 %v2407_v36, %v4856_v21 }
 0x518   : > { %v2579_v39 = vmul.f32 %v2550_v12, %v2531_v18  ;;  %v2601_v50 = vadd.f32 %v2593_v47, %v2505_v1  ;;  %v2416_v43 = vadd.f32 %v2408_v7, %v2312_v53 }
 0x519   : > { %v2596_v2 = vmul.f32 %v4853_v51, %v2580_v5  ;;  %v4875_v14 = vadd.f32 %v4866_v46, %v2602_v62  ;;  %v2511_v18 = vadd.f32 %v2503_v40, %v2415_v11 }
 0x51a   : > { %v2595_v54 = vmul.f32 %v4853_v51, %v2579_v39  ;;  %v2565_v3 = vpop.permute.xlu1 %2564  ;;  %v4880_v24 = vadd.f32 %v4866_v46, %v2601_v50  ;;  %v2512_v21 = vadd.f32 %v2504_v38, %v2416_v43 }
 0x51b   : > { %v2582_v23 = vmul.f32 %v2565_v3, %v2534_v0  ;;  %v2560_v20 = vpop.permute.xlu0 %2559  ;;  %2631 = vadd.xlane.f32.xlu1 %v4875_v14  ;;  %v2604_v60 = vadd.f32 %v2596_v2, %v2508_v63 }
 0x51c   : > { %v2581_v28 = vmul.f32 %v2560_v20, %v2533_v32  ;;  %2629 = vadd.xlane.f32.xlu0 %v4880_v24  ;;  %v2603_v48 = vadd.f32 %v2595_v54, %v2507_v57 }
 0x51d   : > { %v2598_v29 = vmul.f32 %v4853_v51, %v2582_v23  ;;  %v2619_v33 = vadd.f32 %v4866_v46, %v2604_v60 }
 0x51e   : > { %v2597_v35 = vmul.f32 %v4853_v51, %v2581_v28  ;;  %v2575_v15 = vpop.permute.xlu1 %2574  ;;  %v2618_v4 = vadd.f32 %v4866_v46, %v2603_v48 }
 0x51f   : > { %v2584_v30 = vmul.f32 %v2575_v15, %v2536_v61  ;;  %v2570_v31 = vpop.permute.xlu0 %2569  ;;  %v2606_v16 = vadd.f32 %v2598_v29, %v2510_v44 }
 0x520   : > { %v2583_v58 = vmul.f32 %v2570_v31, %v2535_v22  ;;  %2633 = vadd.xlane.f32.xlu0 %v2618_v4  ;;  %v2605_v34 = vadd.f32 %v2597_v35, %v2509_v13 }
 0x521   : > { %v2600_v1 = vmul.f32 %v4853_v51, %v2584_v30  ;;  %v2621_v17 = vadd.f32 %v4866_v46, %v2606_v16 }
 0x522   : > { %v2599_v10 = vmul.f32 %v4853_v51, %v2583_v58  ;;  %v2620_v59 = vadd.f32 %v4866_v46, %v2605_v34 }
 0x523   : > { %v2608_v47 = vadd.f32 %v2600_v1, %v2512_v21 }
 0x524   : > { %2635 = vadd.xlane.f32.xlu0 %v2619_v33  ;;  %2637 = vadd.xlane.f32.xlu1 %v2620_v59  ;;  %v2607_v25 = vadd.f32 %v2599_v10, %v2511_v18 }
 0x525   : > { %v2623_v42 = vadd.f32 %v4866_v46, %v2608_v47 }
 0x526   : > { %v2622_v55 = vadd.f32 %v4866_v46, %v2607_v25 }
 0x528   : > { %2639 = vadd.xlane.f32.xlu0 %v2621_v17  ;;  %2641 = vadd.xlane.f32.xlu1 %v2622_v55 }
 0x52c   : > { %2643 = vadd.xlane.f32.xlu0 %v2623_v42 }
 0x5a4   : > { %v2632_v51 = vpop.xlane.xlu1 %2631 }
 0x5a5   : > { %v2646_v5 = vmul.f32 0.03125, %v2632_v51  ;;  %v2630_v12 = vpop.xlane.xlu0 %2629 }
 0x5a6   : > { %v2645_v62 = vmul.f32 0.03125, %v2630_v12 }
 0x5a7   : > { %v2654_v39 = vsub.f32 %v4875_v14, %v2646_v5  ;;  %v2961_v5 = vld [vmem:[%s5035_s6] ss:$0 sm:$0xff] }
 0x5a8   : > { %v2653_v0 = vsub.f32 %v4880_v24, %v2645_v62 }
 0x5a9   : > { %v2634_v50 = vpop.xlane.xlu0 %2633  ;;  %v4907_v52 = vmul.f32 %v2960_v19, %v2654_v39 }
 0x5aa   : > { %v2647_v45 = vmul.f32 0.03125, %v2634_v50  ;;  %v4909_v8 = vmul.f32 %v2960_v19, %v2653_v0 }
 0x5ab   : > { %v2670_v46 = vmul.f32 %v4907_v52, %v4907_v52 }
 0x5ac   : > { %v2655_v2 = vsub.f32 %v2618_v4, %v2647_v45  ;;  %v2669_v32 = vmul.f32 %v4909_v8, %v4909_v8 }
 0x5ad   : > { %v2638_v57 = vpop.xlane.xlu1 %2637  ;;  %v2636_v9 = vpop.xlane.xlu0 %2635  ;;  %2679 = vadd.xlane.f32.xlu0 %v2670_v46 }
 0x5ae   : > { %v2649_v54 = vmul.f32 0.03125, %v2638_v57  ;;  %v2648_v14 = vmul.f32 0.03125, %v2636_v9  ;;  %2677 = vadd.xlane.f32.xlu1 %v2669_v32  ;;  %v4915_v3 = vmul.f32 %v2960_v19, %v2655_v2 }
 0x5b0   : > { %v2657_v24 = vsub.f32 %v2620_v59, %v2649_v54  ;;  %v2656_v49 = vsub.f32 %v2619_v33, %v2648_v14  ;;  %v2671_v36 = vmul.f32 %v4915_v3, %v4915_v3 }
 0x5b1   : > { %v2642_v63 = vpop.xlane.xlu1 %2641  ;;  %v2640_v23 = vpop.xlane.xlu0 %2639 }
 0x5b2   : > { %v2651_v20 = vmul.f32 0.03125, %v2642_v63  ;;  %v2650_v41 = vmul.f32 0.03125, %v2640_v23  ;;  %2681 = vadd.xlane.f32.xlu1 %v2671_v36  ;;  %v4919_v37 = vmul.f32 %v2960_v19, %v2657_v24  ;;  %v4921_v28 = vmul.f32 %v2960_v19, %v2656_v49 }
 0x5b4   : > { %v2659_v61 = vsub.f32 %v2622_v55, %v2651_v20  ;;  %v2658_v48 = vsub.f32 %v2621_v17, %v2650_v41  ;;  %v2673_v56 = vmul.f32 %v4919_v37, %v4919_v37  ;;  %v2672_v7 = vmul.f32 %v4921_v28, %v4921_v28 }
 0x5b5   : > { %v2644_v40 = vpop.xlane.xlu0 %2643 }
 0x5b6   : > { %v2652_v22 = vmul.f32 0.03125, %v2644_v40  ;;  %2685 = vadd.xlane.f32.xlu1 %v2673_v56  ;;  %2683 = vadd.xlane.f32.xlu0 %v2672_v7  ;;  %v4927_v60 = vmul.f32 %v2960_v19, %v2659_v61  ;;  %v4929_v13 = vmul.f32 %v2960_v19, %v2658_v48 }
 0x5b8   : > { %v2660_v29 = vsub.f32 %v2623_v42, %v2652_v22  ;;  %v2675_v35 = vmul.f32 %v4927_v60, %v4927_v60  ;;  %v2674_v15 = vmul.f32 %v4929_v13, %v4929_v13 }
 0x5ba   : > { %2689 = vadd.xlane.f32.xlu1 %v2675_v35  ;;  %2687 = vadd.xlane.f32.xlu0 %v2674_v15  ;;  %v4935_v4 = vmul.f32 %v2960_v19, %v2660_v29  ;;  %v2962_v19 = vld [vmem:[%s5036_s7] ss:$0 sm:$0xff] }
 0x5bc   : > { %v2676_v53 = vmul.f32 %v4935_v4, %v4935_v4 }
 0x5be   : > { %2691 = vadd.xlane.f32.xlu0 %v2676_v53 }
 0x636   : > { %v2680_v11 = vpop.xlane.xlu0 %2679 }
 0x637   : > { %v2678_v30 = vpop.xlane.xlu1 %2677  ;;  %v2694_v31 = vmul.f32 0.03125, %v2680_v11 }
 0x638   : > { %v2693_v44 = vmul.f32 0.03125, %v2678_v30 }
 0x639   : > { %v2702_v38 = vadd.f32 1e-05, %v2694_v31 }
 0x63a   : > { %v2701_v58 = vadd.f32 1e-05, %v2693_v44 }
 0x63b   : > { %3429 = vrsqrt.f32 %v2702_v38  ;;  %v2682_v34 = vpop.xlane.xlu1 %2681 }
 0x63c   : > { %3431 = vrsqrt.f32 %v2701_v58  ;;  %v2695_v43 = vmul.f32 0.03125, %v2682_v34 }
 0x63e   : > { %v2703_v18 = vadd.f32 1e-05, %v2695_v43 }
 0x63f   : > { %v2686_v33 = vpop.xlane.xlu1 %2685  ;;  %v2684_v1 = vpop.xlane.xlu0 %2683 }
 0x640   : > { %3433 = vrsqrt.f32 %v2703_v18  ;;  %v2697_v10 = vmul.f32 0.03125, %v2686_v33  ;;  %v2696_v59 = vmul.f32 0.03125, %v2684_v1 }
 0x642   : > { %v2705_v16 = vadd.f32 1e-05, %v2697_v10  ;;  %v2704_v21 = vadd.f32 1e-05, %v2696_v59 }
 0x643   : > { %v2690_v25 = vpop.xlane.xlu1 %2689  ;;  %v2688_v17 = vpop.xlane.xlu0 %2687 }
 0x644   : > { %3435 = vrsqrt.f32 %v2705_v16  ;;  %v2699_v55 = vmul.f32 0.03125, %v2690_v25  ;;  %v2698_v47 = vmul.f32 0.03125, %v2688_v17 }
 0x645   : > { %3437 = vrsqrt.f32 %v2704_v21 }
 0x646   : > { %v2707_v42 = vadd.f32 1e-05, %v2699_v55  ;;  %v2706_v6 = vadd.f32 1e-05, %v2698_v47 }
 0x647   : > { %v2692_v26 = vpop.xlane.xlu0 %2691 }
 0x648   : > { %v3430_v51 = vpop.eup %3429  ;;  %3439 = vrsqrt.f32 %v2707_v42  ;;  %v2700_v12 = vmul.f32 0.03125, %v2692_v26 }
 0x649   : > { %v3432_v62 = vpop.eup %3431  ;;  %v2718_v27 = vmul.f32 %v3430_v51, %v4907_v52  ;;  %3441 = vrsqrt.f32 %v2706_v6 }
 0x64a   : > { %v2717_v39 = vmul.f32 %v3432_v62, %v4909_v8  ;;  %v2708_v0 = vadd.f32 1e-05, %v2700_v12 }
 0x64b   : > { %v2733_v50 = vmul.f32 %v2961_v5, %v2718_v27 }
 0x64c   : > { %v2732_v45 = vmul.f32 %v2961_v5, %v2717_v39  ;;  %3443 = vrsqrt.f32 %v2708_v0 }
 0x64d   : > { %v3434_v46 = vpop.eup %3433  ;;  %v2748_v2 = vadd.f32 %v2962_v19, %v2733_v50 }
 0x64e   : > { %v2747_v32 = vadd.f32 %v2962_v19, %v2732_v45  ;;  %v2719_v57 = vmul.f32 %v3434_v46, %v4915_v3 }
 0x64f   : > { %vm2756_vm3 = vcmp.gt.f32.partialorder %v2748_v2, 0.0  ;;  %v2764_v52 = vmul.f32 0.2, %v2748_v2 }
 0x650   : > { %vm2755_vm4 = vcmp.gt.f32.partialorder %v2747_v32, 0.0  ;;  %v2763_v9 = vmul.f32 0.2, %v2747_v32  ;;  %v2734_v54 = vmul.f32 %v2961_v5, %v2719_v57 }
 0x651   : > { %v3436_v14 = vpop.eup %3435  ;;  %v2772_v24 = vsel %vm2756_vm3, %v2748_v2, %v2764_v52 }
 0x652   : > { %v3438_v49 = vpop.eup %3437  ;;  %v2771_v8 = vsel %vm2755_vm4, %v2747_v32, %v2763_v9  ;;  %2780 = vst [vmem:[%s3738_s29 + $0x8] sm:$0xff] %v2772_v24  ;;  %v2749_v36 = vadd.f32 %v2962_v19, %v2734_v54  ;;  %v2721_v63 = vmul.f32 %v3436_v14, %v4919_v37 }
 0x653   : > { %2779 = vst [vmem:[%s3738_s29] sm:$0xff] %v2771_v8  ;;  %v2720_v23 = vmul.f32 %v3438_v49, %v4921_v28 }
 0x654   : > { %vm2757_vm5 = vcmp.gt.f32.partialorder %v2749_v36, 0.0  ;;  %v2765_v20 = vmul.f32 0.2, %v2749_v36  ;;  %v2736_v3 = vmul.f32 %v2961_v5, %v2721_v63 }
 0x655   : > { %v3440_v41 = vpop.eup %3439  ;;  %v2735_v61 = vmul.f32 %v2961_v5, %v2720_v23 }
 0x656   : > { %v3442_v48 = vpop.eup %3441  ;;  %v2773_v56 = vsel %vm2757_vm5, %v2749_v36, %v2765_v20  ;;  %v2751_v7 = vadd.f32 %v2962_v19, %v2736_v3  ;;  %v2723_v40 = vmul.f32 %v3440_v41, %v4927_v60 }
 0x657   : > { %2781 = vst [vmem:[%s3738_s29 + $0x10] sm:$0xff] %v2773_v56  ;;  %v2750_v22 = vadd.f32 %v2962_v19, %v2735_v61  ;;  %v2722_v29 = vmul.f32 %v3442_v48, %v4929_v13 }
 0x658   : > { %vm2759_vm6 = vcmp.gt.f32.partialorder %v2751_v7, 0.0  ;;  %v2767_v37 = vmul.f32 0.2, %v2751_v7  ;;  %v2738_v35 = vmul.f32 %v2961_v5, %v2723_v40 }
 0x659   : > { %v3444_v28 = vpop.eup %3443  ;;  %vm2758_vm7 = vcmp.gt.f32.partialorder %v2750_v22, 0.0  ;;  %v2766_v15 = vmul.f32 0.2, %v2750_v22  ;;  %v2737_v53 = vmul.f32 %v2961_v5, %v2722_v29 }
 0x65a   : > { %v2775_v11 = vsel %vm2759_vm6, %v2751_v7, %v2767_v37  ;;  %v2753_v30 = vadd.f32 %v2962_v19, %v2738_v35  ;;  %v2724_v31 = vmul.f32 %v3444_v28, %v4935_v4 }
 0x65b   : > { %2783 = vst [vmem:[%s3738_s29 + $0x20] sm:$0xff] %v2775_v11  ;;  %v2774_v60 = vsel %vm2758_vm7, %v2750_v22, %v2766_v15  ;;  %v2752_v44 = vadd.f32 %v2962_v19, %v2737_v53 }
 0x65c   : > { %2782 = vst [vmem:[%s3738_s29 + $0x18] sm:$0xff] %v2774_v60  ;;  %vm2761_vm8 = vcmp.gt.f32.partialorder %v2753_v30, 0.0  ;;  %v2769_v13 = vmul.f32 0.2, %v2753_v30  ;;  %v2739_v38 = vmul.f32 %v2961_v5, %v2724_v31 }
 0x65d   : > { %vm2760_vm9 = vcmp.gt.f32.partialorder %v2752_v44, 0.0  ;;  %v2768_v58 = vmul.f32 0.2, %v2752_v44 }
 0x65e   : > { %v2777_v34 = vsel %vm2761_vm8, %v2753_v30, %v2769_v13  ;;  %v2754_v43 = vadd.f32 %v2962_v19, %v2739_v38 }
 0x65f   : > { %2785 = vst [vmem:[%s3738_s29 + $0x30] sm:$0xff] %v2777_v34  ;;  %v2776_v18 = vsel %vm2760_vm9, %v2752_v44, %v2768_v58 }
 0x660   : > { %2784 = vst [vmem:[%s3738_s29 + $0x28] sm:$0xff] %v2776_v18  ;;  %vm2762_vm10 = vcmp.gt.f32.partialorder %v2754_v43, 0.0  ;;  %v2770_v33 = vmul.f32 0.2, %v2754_v43 }
 0x662   : > { %v2778_v1 = vsel %vm2762_vm10, %v2754_v43, %v2770_v33 }
 0x663   : > { %2786 = vst [vmem:[%s3738_s29 + $0x38] sm:$0xff] %v2778_v1 }
 0x664 PF: > { %s2969_s19 = sshll.u32 %s3541_s11, 10  ;;  %s2801_s2 = sshll.u32 %s3738_s29, 4  ;;  %s4968_s2 = int_to_ptr.vmem [resolvable:$true] %s2801_s2 }
 0x665   : > { %s4965_s24 = scalar_lea.hbm %s5037_s8, %s2969_s19  ;;  %s5187_s9 = sand.u32 1, %s3521_s28  }
 0x666   : > { %s4972_s10 = scalar_lea.sflag [#allocation7], %s5187_s9  ;;  %s3445_s12 = scalar_lea.vmem %s4968_s2, 1024 }
 0x667   : > { %p3446_p9 = scmp.ne.s32.totalorder %s4968_s2, %s3445_s12  ;;  %s3563_s11 = smov [#allocation6]  }
 0x668   : > { %s3449_s13 = sshll.u32 %s3563_s11, 4  ;;  %s3450_s13 = int_to_ptr.vmem [resolvable:$false] %s3449_s13 }
 0x669   : > { %p3447_p10 = pnand %p3446_p9, %p3683_p7  ;;  %s3451_s17 = scalar_lea.vmem %s3450_s13, 2048 }
 0x66a   : > { %p3452_p13 = scmp.lt.s32.totalorder %s4968_s2, %s3450_s13  ;;  %p3453_p0 = scmp.lt.s32.totalorder %s3451_s17, %s3445_s12 }
 0x66b   : > { %p3448_p11 = pneg %p3447_p10 }
 0x66c   : > { %p3454_p1 = por %p3453_p0, %p3452_p13 }
 0x66e   : > { %p3455_p2 = pnand %p3454_p1, %p3448_p11 }
 0x670   : > { %3458 = shalt.err (!%p3455_p2)
}
 0x671   : > { %s3459_s29 = scalar_lea.hbm %s4965_s24, 1024  ;;  %s3463_s21 = scalar_lea.hbm %s5037_s8, 4096 }
 0x672   : > { %p3460_p3 = scmp.ne.s32.totalorder %s4965_s24, %s3459_s29  ;;  %p3464_p6 = scmp.lt.s32.totalorder %s4965_s24, %s5037_s8 }
 0x673   : > { %p3465_p8 = scmp.lt.s32.totalorder %s3463_s21, %s3459_s29 }
 0x674   : > { %p3461_p4 = pnand %p3460_p3, %p3683_p7 }
 0x675   : > { %p3466_p9 = por %p3465_p8, %p3464_p6 }
 0x676   : > { %p3462_p5 = pneg %p3461_p4 }
 0x678   : > { %p3467_p10 = pnand %p3466_p9, %p3462_p5 }
 0x67a   : > { %3470 = shalt.err (!%p3467_p10)
}
 0x67b   : > { %s3564_s20 = smov 128   ;;  %s3565_s25 = smov 8  }
 0x67c   : > { %3114 = dma.vmem_to_hbm [thread:$0]  (%p3683_p7), %s4968_s2, 1024, %s4965_s24, %s4972_s10, %s3564_s20, %s3564_s20, %s3565_s25  }
 0x67d PF: > { %s5188_s22 = sld [smem:[#allocation9_spill]]  ;;  %p3120_p11 = scmp.ge.s32.totalorder %s3553_s14, 2 }
 0x67f   : > { %p3117_p13 = pnand %p3120_p11, %p3691_p12 }
 0x681   : > { %p3118_p0 = pneg %p3117_p13 }
 0x683   : > { %s2816_s30 = sand.u32 1, %s5188_s22  }
 0x684   : > { %s2817_s27 = scalar_lea.sflag [#allocation7], %s2816_s30 }
 0x685   : > { %3512 = dma.done.wait (%p3118_p0), %s2817_s27, 1024  }
 0x686   : > { %3514 = vsyncadd (%p3118_p0), %s2817_s27, 4294966272  ;;  %s21_s14 = sadd.s32 1, %s3553_s14   ;;  %s5190_s9 = sld [smem:[#allocation10_spill]] }
 0x687   : > { %p18_p1 = scmp.ge.s32.totalorder %s21_s14, 10   ;;  %s5191_s29 = sld [smem:[#allocation17_spill]] }
 0x688   : > { %s5192_s30 = sld [smem:[#allocation11_spill]]  ;;  %s5198_s27 = smov %s3521_s28 }
 0x689   : > { %s5193_s23 = sld [smem:[#allocation18_spill]] }
 0x68a   : > { %s5194_s10 = sld [smem:[#allocation12_spill]] }
 0x68b   : > { %s5195_s11 = sld [smem:[#allocation13_spill]]  ;;  %20 = sbr.rel (!%p18_p1) target bundleno = 8 (0x8), region = 159 }
 0x68c   : > { %s5196_s12 = sld [smem:[#allocation14_spill]]  ;;  %s5199_s28 = smov %s5190_s9 }
 0x68d   : > { %s5197_s13 = sld [smem:[#allocation15_spill]] }
 0x68f   : > { %s5200_s9 = smov %s5193_s23 }
 0x690   :  { %2822 = vsyncpa [#allocation7], 1 }
 0x691   :  { %2824 = vsyncpa [#allocation7 + $0x1], 1 }

</bundles_post_ra>
